<compile_context>
chip_gen: v7x
topology: tpu7x:2x2x1
jax: 0.10.0
libtpu: 0.0.40
codegen_flags: <defaults>
</compile_context>

<pallas_src>
import jax
import jax.numpy as jnp
from jax.experimental import pallas as pl
from jax.experimental.pallas import tpu as pltpu


def _round_up(v, m):
    return (v + m - 1) // m * m


NH = 512          # fc4 hidden width
K4_PAD = 3200     # 64*7*7 = 3136 padded to a multiple of 128 (lane-aligned)
TM_HEAD = 256     # max rows per head grid step (batch-independent VMEM)


# ------------------- M-tiled matmul + bias + ReLU (conv layers) --------------

def _mm_bias_relu_kernel(x_ref, w_ref, b_ref, o_ref):
    # x: (TM, Kp) bf16, w: (Kp, Np) bf16, b: (1, Np) f32, o: (TM, Np) bf16
    acc = jnp.dot(x_ref[...], w_ref[...], preferred_element_type=jnp.float32)
    o_ref[...] = jnp.maximum(acc + b_ref[...], 0.0).astype(o_ref.dtype)


def matmul_bias_relu(x_bf16, w_bf16, b_f32, *, tm):
    """relu(x @ w + b).  x:(Mp,Kp) bf16, w:(Kp,Np) bf16, b:(1,Np) f32 -> (Mp,Np) bf16."""
    Mp, Kp = x_bf16.shape
    Kp2, Np = w_bf16.shape
    assert Kp == Kp2 and Mp % tm == 0, (Mp, Kp, Kp2, tm)
    return pl.pallas_call(
        _mm_bias_relu_kernel,
        out_shape=jax.ShapeDtypeStruct((Mp, Np), jnp.bfloat16),
        grid=(Mp // tm,),
        in_specs=[
            pl.BlockSpec((tm, Kp), lambda i: (i, 0)),
            pl.BlockSpec((Kp, Np), lambda i: (0, 0)),
            pl.BlockSpec((1, Np), lambda i: (0, 0)),
        ],
        out_specs=pl.BlockSpec((tm, Np), lambda i: (i, 0)),
        compiler_params=pltpu.CompilerParams(
            dimension_semantics=("parallel",)),
    )(x_bf16, w_bf16, b_f32)


def _pick_tiling(m_rows, tm_max=512):
    """Return (padded_M, tile_M): tile_M % 8 == 0, padded_M % tile_M == 0,
    minimal zero-row padding, mild preference for 2 tiles (TensorCore sharding)."""
    m8 = _round_up(m_rows, 8)
    if m8 <= tm_max:
        if m8 >= 128:                           # split for 2-TC sharding (v7x)
            tm = _round_up(-(-m8 // 2), 8)
            return 2 * tm, tm
        return m8, m8
    best_mp, best_tm = None, None
    for tm in range(tm_max, 0, -8):
        mp = _round_up(m8, tm)
        if best_mp is None or mp < best_mp:
            best_mp, best_tm = mp, tm
        if mp == m8:                            # zero extra padding: optimal
            break
    return best_mp, best_tm


# --------------------------- conv layer (NHWC) -------------------------------

def conv2d_bias_relu(x, wmat, b2d, *, kh, kw, stride, cout):
    """x: (B,H,W,C) f32/bf16.  wmat: (Kp,Np) bf16, rows ordered (kh,kw,Cin),
    pre-padded.  b2d: (1,Np) f32.  Returns relu(conv(x)+b) as (B,Ho,Wo,cout) bf16."""
    B, H, W, C = x.shape
    Ho = (H - kh) // stride + 1
    Wo = (W - kw) // stride + 1
    # TODO(synk): this im2col is materialized by XLA in HBM; fuse into the kernel.
    cols = []
    for i in range(kh):
        for j in range(kw):
            cols.append(x[:, i:i + stride * Ho:stride, j:j + stride * Wo:stride, :])
    p = jnp.concatenate(cols, axis=-1)                 # (B,Ho,Wo, kh*kw*C)
    K = kh * kw * C
    M = B * Ho * Wo
    Kp = wmat.shape[0]
    p = p.reshape(M, K).astype(jnp.bfloat16)
    Mp, tm = _pick_tiling(M)
    p = jnp.pad(p, ((0, Mp - M), (0, Kp - K)))
    y = matmul_bias_relu(p, wmat, b2d, tm=tm)          # (Mp, Np) bf16
    return y[:M, :cout].reshape(B, Ho, Wo, cout)


# ---------------------- fused fc4 (+ReLU) + fc5 head --------------------------

def _head_kernel(x_ref, w4_ref, b4_ref, w5_ref, b5_ref, o_ref):
    # x: (tm, K4_PAD) bf16, w4: (K4_PAD, NH) bf16 (whole matrix resident in VMEM)
    # b4: (1, NH) f32, w5: (NH, n_out) bf16, b5: (1, n_out) f32, o: (tm, n_out) f32
    h = jnp.dot(x_ref[...], w4_ref[...], preferred_element_type=jnp.float32)
    h = jnp.maximum(h + b4_ref[...], 0.0)                       # f32 epilogue
    o_ref[...] = jnp.dot(h.astype(jnp.bfloat16), w5_ref[...],
                         preferred_element_type=jnp.float32) + b5_ref[...]


def head_fc(x_bf16, w4p, b4p, w5p, b5p, *, tm):
    """Fused relu(x@w4+b4) @ w5 + b5.  x:(Mp,K4_PAD) bf16 -> (Mp, n_out) f32."""
    Mp, Kp = x_bf16.shape
    assert Kp == w4p.shape[0] and Mp % tm == 0, (Mp, Kp, w4p.shape, tm)
    n_out = w5p.shape[1]
    return pl.pallas_call(
        _head_kernel,
        out_shape=jax.ShapeDtypeStruct((Mp, n_out), jnp.float32),
        grid=(Mp // tm,),
        in_specs=[
            pl.BlockSpec((tm, Kp), lambda i: (i, 0)),
            pl.BlockSpec((Kp, NH), lambda i: (0, 0)),     # whole w4 resident
            pl.BlockSpec((1, NH), lambda i: (0, 0)),
            pl.BlockSpec((NH, n_out), lambda i: (0, 0)),
            pl.BlockSpec((1, n_out), lambda i: (0, 0)),
        ],
        out_specs=pl.BlockSpec((tm, n_out), lambda i: (i, 0)),
        compiler_params=pltpu.CompilerParams(
            dimension_semantics=("parallel",)),
    )(x_bf16, w4p, b4p, w5p, b5p)


# ------------------------- one-time weight preparation ------------------------

def prepare_params(params):
    """Permute/pad/cast PyTorch-layout weights once (outside the forward pass)."""
    def conv_w(w):
        cout, cin, kh, kw = w.shape
        m = jnp.transpose(w, (2, 3, 1, 0)).reshape(kh * kw * cin, cout)  # (kh,kw,Cin) rows
        K, N = m.shape
        Kp, Np = _round_up(K, 128), _round_up(N, 128)
        return jnp.pad(m, ((0, Kp - K), (0, Np - N))).astype(jnp.bfloat16)

    def bias2d(b, n_pad):
        return jnp.pad(b.astype(jnp.float32), (0, n_pad - b.shape[0])).reshape(1, n_pad)

    # fc4 rows stored torch-style in (C,H,W) order -> permute to NHWC (H,W,C) order.
    w4 = params["w4"].reshape(64, 7, 7, NH).transpose(1, 2, 0, 3).reshape(64 * 7 * 7, NH)
    w4 = jnp.pad(w4, ((0, K4_PAD - 64 * 7 * 7), (0, 0))).astype(jnp.bfloat16)

    # fc5 weight in bf16 (MXU-native); bias stays f32.
    w5 = jnp.pad(params["w5"], ((0, 0), (0, 128 - params["w5"].shape[1]))).astype(jnp.bfloat16)

    return {
        "w1": conv_w(params["w1"]), "b1": bias2d(params["b1"], 128),
        "w2": conv_w(params["w2"]), "b2": bias2d(params["b2"], 128),
        "w3": conv_w(params["w3"]), "b3": bias2d(params["b3"], 128),
        "w4": w4, "b4": bias2d(params["b4"], NH),
        "w5": w5, "b5": bias2d(params["b5"], 128),
    }


# --------------------------------- forward -----------------------------------

def critic_cnn_forward(prep, x_nchw):
    # x: (B, in_channels, 84, 84) f32 (PyTorch layout); convert to NHWC once.
    x = jnp.transpose(x_nchw, (0, 2, 3, 1))
    h = conv2d_bias_relu(x, prep["w1"], prep["b1"], kh=8, kw=8, stride=4, cout=32)  # (B,20,20,32)
    h = conv2d_bias_relu(h, prep["w2"], prep["b2"], kh=4, kw=4, stride=2, cout=64)  # (B,9,9,64)
    h = conv2d_bias_relu(h, prep["w3"], prep["b3"], kh=3, kw=3, stride=1, cout=64)  # (B,7,7,64)
    B = h.shape[0]
    flat = h.reshape(B, -1)                              # bf16, (B, 3136) in (H,W,C) order
    Mp, tm = _pick_tiling(B, tm_max=TM_HEAD)
    flat = jnp.pad(flat, ((0, Mp - B), (0, K4_PAD - flat.shape[1])))
    v = head_fc(flat, prep["w4"], prep["b4"], prep["w5"], prep["b5"], tm=tm)  # (Mp,128) f32
    return v[:B, :1]


def _reference_forward(params, x):
    """Pure-JAX f32 reference (lax conv, PyTorch layouts) for correctness check."""
    def conv(x, w, b, s):
        y = jax.lax.conv_general_dilated(
            x, w, window_strides=(s, s), padding="VALID",
            dimension_numbers=("NCHW", "OIHW", "NCHW"))
        return jnp.maximum(y + b[None, :, None, None], 0.0)

    h = conv(x, params["w1"], params["b1"], 4)
    h = conv(h, params["w2"], params["b2"], 2)
    h = conv(h, params["w3"], params["b3"], 1)
    h = h.reshape(h.shape[0], -1)                        # NCHW flatten (C,H,W)
    h = jnp.maximum(h @ params["w4"] + params["b4"], 0.0)
    return h @ params["w5"] + params["b5"]


if __name__ == "__main__":
    key = jax.random.PRNGKey(0)
    in_channels = 4
    batch = 2
    ks = jax.random.split(key, 11)

    def init(k, shape, scale=0.05):
        return jax.random.normal(k, shape, dtype=jnp.float32) * scale

    params = {
        "w1": init(ks[0], (32, in_channels, 8, 8)),
        "b1": init(ks[1], (32,)),
        "w2": init(ks[2], (64, 32, 4, 4)),
        "b2": init(ks[3], (64,)),
        "w3": init(ks[4], (64, 64, 3, 3)),
        "b3": init(ks[5], (64,)),
        # Linear weights stored as (in_features, out_features) = torch weight.T
        "w4": init(ks[6], (64 * 7 * 7, 512), scale=0.02),
        "b4": init(ks[7], (512,)),
        "w5": init(ks[8], (512, 1), scale=0.02),
        "b5": init(ks[9], (1,)),
    }

    x = jax.random.normal(ks[10], (batch, in_channels, 84, 84), dtype=jnp.float32)

    prep = prepare_params(params)                 # one-time pad/permute/cast
    fwd = jax.jit(critic_cnn_forward)

    out = jax.block_until_ready(fwd(prep, x))
    assert out.shape == (batch, 1), out.shape

    ref = jax.block_until_ready(_reference_forward(params, x))
    # bf16 matmul inputs with f32 accumulation -> looser tolerance than f32.
    assert jnp.allclose(out, ref, atol=5e-2, rtol=5e-2), (out, ref)

    print("KERNEL_OK")
</pallas_src>

<mosaic_0001>
module attributes {stable_mosaic.version = 11 : i64} {
  func.func @_mm_bias_relu_kernel(%arg0: i32, %arg1: memref<400x256xbf16, #tpu.memory_space<vmem>>, %arg2: memref<256x128xbf16, #tpu.memory_space<vmem>>, %arg3: memref<1x128xf32, #tpu.memory_space<vmem>>, %arg4: memref<400x128xbf16, #tpu.memory_space<vmem>>) attributes {dimension_semantics = [#tpu.dimension_semantics<parallel>], iteration_bounds = array<i64: 2>, scalar_prefetch = 0 : i64, scratch_operands = 0 : i64, tpu.core_type = #tpu.core_type<tc>, window_params = [{transform_indices = @transform_0, window_bounds = array<i64: 400, 256>}, {pipeline_mode = #tpu.pipeline_mode<synchronous>, transform_indices = @transform_1, window_bounds = array<i64: 256, 128>}, {pipeline_mode = #tpu.pipeline_mode<synchronous>, transform_indices = @transform_2, window_bounds = array<i64: 1, 128>}, {transform_indices = @transform_3, window_bounds = array<i64: 400, 128>}]} {
    %c0 = arith.constant 0 : index
    %c0_0 = arith.constant 0 : index
    %0 = vector.load %arg1[%c0, %c0_0] : memref<400x256xbf16, #tpu.memory_space<vmem>>, vector<400x256xbf16>
    %c0_1 = arith.constant 0 : index
    %c0_2 = arith.constant 0 : index
    %1 = vector.load %arg2[%c0_1, %c0_2] : memref<256x128xbf16, #tpu.memory_space<vmem>>, vector<256x128xbf16>
    %cst = arith.constant dense<0.000000e+00> : vector<400x128xf32>
    %2 = tpu.matmul %0, %1, %cst {dimension_numbers = #tpu.dot_dimension_numbers<[1], [0], [0], [1], [0, 0, 1, 1], [], []>} : vector<400x256xbf16>, vector<256x128xbf16>, vector<400x128xf32> -> vector<400x128xf32>
    %c0_3 = arith.constant 0 : index
    %c0_4 = arith.constant 0 : index
    %3 = vector.load %arg3[%c0_3, %c0_4] : memref<1x128xf32, #tpu.memory_space<vmem>>, vector<1x128xf32>
    %4 = vector.broadcast %3 : vector<1x128xf32> to vector<400x128xf32>
    %5 = arith.addf %2, %4 : vector<400x128xf32>
    %cst_5 = arith.constant 0.000000e+00 : f32
    %6 = vector.broadcast %cst_5 : f32 to vector<400x128xf32>
    %7 = arith.maximumf %5, %6 : vector<400x128xf32>
    %8 = arith.truncf %7 : vector<400x128xf32> to vector<400x128xbf16>
    %c0_6 = arith.constant 0 : index
    %c0_7 = arith.constant 0 : index
    %9 = vector.load %arg4[%c0_6, %c0_7] : memref<400x128xbf16, #tpu.memory_space<vmem>>, vector<400x128xbf16>
    tpu.vector_store %arg4[%c0_6, %c0_7], %8 {strides = array<i32>} : memref<400x128xbf16, #tpu.memory_space<vmem>>, vector<400x128xbf16>,
    return
  }
  func.func @transform_0(%arg0: i32) -> (i32, i32) {
    %c0_i32 = arith.constant 0 : i32
    %c0_i32_0 = arith.constant 0 : i32
    return %arg0, %c0_i32 : i32, i32
  }
  func.func @transform_1(%arg0: i32) -> (i32, i32) {
    %c0_i32 = arith.constant 0 : i32
    %c0_i32_0 = arith.constant 0 : i32
    %c0_i32_1 = arith.constant 0 : i32
    return %c0_i32, %c0_i32_0 : i32, i32
  }
  func.func @transform_2(%arg0: i32) -> (i32, i32) {
    %c0_i32 = arith.constant 0 : i32
    %c0_i32_0 = arith.constant 0 : i32
    %c0_i32_1 = arith.constant 0 : i32
    return %c0_i32, %c0_i32_0 : i32, i32
  }
  func.func @transform_3(%arg0: i32) -> (i32, i32) {
    %c0_i32 = arith.constant 0 : i32
    %c0_i32_0 = arith.constant 0 : i32
    return %arg0, %c0_i32 : i32, i32
  }
}

module attributes {stable_mosaic.version = 11 : i64} {
  func.func @_mm_bias_relu_kernel(%arg0: i32, %arg1: memref<88x512xbf16, #tpu.memory_space<vmem>>, %arg2: memref<512x128xbf16, #tpu.memory_space<vmem>>, %arg3: memref<1x128xf32, #tpu.memory_space<vmem>>, %arg4: memref<88x128xbf16, #tpu.memory_space<vmem>>) attributes {dimension_semantics = [#tpu.dimension_semantics<parallel>], iteration_bounds = array<i64: 2>, scalar_prefetch = 0 : i64, scratch_operands = 0 : i64, tpu.core_type = #tpu.core_type<tc>, window_params = [{transform_indices = @transform_0, window_bounds = array<i64: 88, 512>}, {pipeline_mode = #tpu.pipeline_mode<synchronous>, transform_indices = @transform_1, window_bounds = array<i64: 512, 128>}, {pipeline_mode = #tpu.pipeline_mode<synchronous>, transform_indices = @transform_2, window_bounds = array<i64: 1, 128>}, {transform_indices = @transform_3, window_bounds = array<i64: 88, 128>}]} {
    %c0 = arith.constant 0 : index
    %c0_0 = arith.constant 0 : index
    %0 = vector.load %arg1[%c0, %c0_0] : memref<88x512xbf16, #tpu.memory_space<vmem>>, vector<88x512xbf16>
    %c0_1 = arith.constant 0 : index
    %c0_2 = arith.constant 0 : index
    %1 = vector.load %arg2[%c0_1, %c0_2] : memref<512x128xbf16, #tpu.memory_space<vmem>>, vector<512x128xbf16>
    %cst = arith.constant dense<0.000000e+00> : vector<88x128xf32>
    %2 = tpu.matmul %0, %1, %cst {dimension_numbers = #tpu.dot_dimension_numbers<[1], [0], [0], [1], [0, 0, 1, 1], [], []>} : vector<88x512xbf16>, vector<512x128xbf16>, vector<88x128xf32> -> vector<88x128xf32>
    %c0_3 = arith.constant 0 : index
    %c0_4 = arith.constant 0 : index
    %3 = vector.load %arg3[%c0_3, %c0_4] : memref<1x128xf32, #tpu.memory_space<vmem>>, vector<1x128xf32>
    %4 = vector.broadcast %3 : vector<1x128xf32> to vector<88x128xf32>
    %5 = arith.addf %2, %4 : vector<88x128xf32>
    %cst_5 = arith.constant 0.000000e+00 : f32
    %6 = vector.broadcast %cst_5 : f32 to vector<88x128xf32>
    %7 = arith.maximumf %5, %6 : vector<88x128xf32>
    %8 = arith.truncf %7 : vector<88x128xf32> to vector<88x128xbf16>
    %c0_6 = arith.constant 0 : index
    %c0_7 = arith.constant 0 : index
    %9 = vector.load %arg4[%c0_6, %c0_7] : memref<88x128xbf16, #tpu.memory_space<vmem>>, vector<88x128xbf16>
    tpu.vector_store %arg4[%c0_6, %c0_7], %8 {strides = array<i32>} : memref<88x128xbf16, #tpu.memory_space<vmem>>, vector<88x128xbf16>,
    return
  }
  func.func @transform_0(%arg0: i32) -> (i32, i32) {
    %c0_i32 = arith.constant 0 : i32
    %c0_i32_0 = arith.constant 0 : i32
    return %arg0, %c0_i32 : i32, i32
  }
  func.func @transform_1(%arg0: i32) -> (i32, i32) {
    %c0_i32 = arith.constant 0 : i32
    %c0_i32_0 = arith.constant 0 : i32
    %c0_i32_1 = arith.constant 0 : i32
    return %c0_i32, %c0_i32_0 : i32, i32
  }
  func.func @transform_2(%arg0: i32) -> (i32, i32) {
    %c0_i32 = arith.constant 0 : i32
    %c0_i32_0 = arith.constant 0 : i32
    %c0_i32_1 = arith.constant 0 : i32
    return %c0_i32, %c0_i32_0 : i32, i32
  }
  func.func @transform_3(%arg0: i32) -> (i32, i32) {
    %c0_i32 = arith.constant 0 : i32
    %c0_i32_0 = arith.constant 0 : i32
    return %arg0, %c0_i32 : i32, i32
  }
}

module attributes {stable_mosaic.version = 11 : i64} {
  func.func @_mm_bias_relu_kernel(%arg0: i32, %arg1: memref<104x640xbf16, #tpu.memory_space<vmem>>, %arg2: memref<640x128xbf16, #tpu.memory_space<vmem>>, %arg3: memref<1x128xf32, #tpu.memory_space<vmem>>, %arg4: memref<104x128xbf16, #tpu.memory_space<vmem>>) attributes {dimension_semantics = [#tpu.dimension_semantics<parallel>], iteration_bounds = array<i64: 1>, scalar_prefetch = 0 : i64, scratch_operands = 0 : i64, tpu.core_type = #tpu.core_type<tc>, window_params = [{transform_indices = @transform_0, window_bounds = array<i64: 104, 640>}, {pipeline_mode = #tpu.pipeline_mode<synchronous>, transform_indices = @transform_1, window_bounds = array<i64: 640, 128>}, {pipeline_mode = #tpu.pipeline_mode<synchronous>, transform_indices = @transform_2, window_bounds = array<i64: 1, 128>}, {transform_indices = @transform_3, window_bounds = array<i64: 104, 128>}]} {
    %c0 = arith.constant 0 : index
    %c0_0 = arith.constant 0 : index
    %0 = vector.load %arg1[%c0, %c0_0] : memref<104x640xbf16, #tpu.memory_space<vmem>>, vector<104x640xbf16>
    %c0_1 = arith.constant 0 : index
    %c0_2 = arith.constant 0 : index
    %1 = vector.load %arg2[%c0_1, %c0_2] : memref<640x128xbf16, #tpu.memory_space<vmem>>, vector<640x128xbf16>
    %cst = arith.constant dense<0.000000e+00> : vector<104x128xf32>
    %2 = tpu.matmul %0, %1, %cst {dimension_numbers = #tpu.dot_dimension_numbers<[1], [0], [0], [1], [0, 0, 1, 1], [], []>} : vector<104x640xbf16>, vector<640x128xbf16>, vector<104x128xf32> -> vector<104x128xf32>
    %c0_3 = arith.constant 0 : index
    %c0_4 = arith.constant 0 : index
    %3 = vector.load %arg3[%c0_3, %c0_4] : memref<1x128xf32, #tpu.memory_space<vmem>>, vector<1x128xf32>
    %4 = vector.broadcast %3 : vector<1x128xf32> to vector<104x128xf32>
    %5 = arith.addf %2, %4 : vector<104x128xf32>
    %cst_5 = arith.constant 0.000000e+00 : f32
    %6 = vector.broadcast %cst_5 : f32 to vector<104x128xf32>
    %7 = arith.maximumf %5, %6 : vector<104x128xf32>
    %8 = arith.truncf %7 : vector<104x128xf32> to vector<104x128xbf16>
    %c0_6 = arith.constant 0 : index
    %c0_7 = arith.constant 0 : index
    %9 = vector.load %arg4[%c0_6, %c0_7] : memref<104x128xbf16, #tpu.memory_space<vmem>>, vector<104x128xbf16>
    tpu.vector_store %arg4[%c0_6, %c0_7], %8 {strides = array<i32>} : memref<104x128xbf16, #tpu.memory_space<vmem>>, vector<104x128xbf16>,
    return
  }
  func.func @transform_0(%arg0: i32) -> (i32, i32) {
    %c0_i32 = arith.constant 0 : i32
    %c0_i32_0 = arith.constant 0 : i32
    return %arg0, %c0_i32 : i32, i32
  }
  func.func @transform_1(%arg0: i32) -> (i32, i32) {
    %c0_i32 = arith.constant 0 : i32
    %c0_i32_0 = arith.constant 0 : i32
    %c0_i32_1 = arith.constant 0 : i32
    return %c0_i32, %c0_i32_0 : i32, i32
  }
  func.func @transform_2(%arg0: i32) -> (i32, i32) {
    %c0_i32 = arith.constant 0 : i32
    %c0_i32_0 = arith.constant 0 : i32
    %c0_i32_1 = arith.constant 0 : i32
    return %c0_i32, %c0_i32_0 : i32, i32
  }
  func.func @transform_3(%arg0: i32) -> (i32, i32) {
    %c0_i32 = arith.constant 0 : i32
    %c0_i32_0 = arith.constant 0 : i32
    return %arg0, %c0_i32 : i32, i32
  }
}

module attributes {stable_mosaic.version = 11 : i64} {
  func.func @_head_kernel(%arg0: i32, %arg1: memref<8x3200xbf16, #tpu.memory_space<vmem>>, %arg2: memref<3200x512xbf16, #tpu.memory_space<vmem>>, %arg3: memref<1x512xf32, #tpu.memory_space<vmem>>, %arg4: memref<512x128xbf16, #tpu.memory_space<vmem>>, %arg5: memref<1x128xf32, #tpu.memory_space<vmem>>, %arg6: memref<8x128xf32, #tpu.memory_space<vmem>>) attributes {dimension_semantics = [#tpu.dimension_semantics<parallel>], iteration_bounds = array<i64: 1>, scalar_prefetch = 0 : i64, scratch_operands = 0 : i64, tpu.core_type = #tpu.core_type<tc>, window_params = [{transform_indices = @transform_0, window_bounds = array<i64: 8, 3200>}, {pipeline_mode = #tpu.pipeline_mode<synchronous>, transform_indices = @transform_1, window_bounds = array<i64: 3200, 512>}, {pipeline_mode = #tpu.pipeline_mode<synchronous>, transform_indices = @transform_2, window_bounds = array<i64: 1, 512>}, {pipeline_mode = #tpu.pipeline_mode<synchronous>, transform_indices = @transform_3, window_bounds = array<i64: 512, 128>}, {pipeline_mode = #tpu.pipeline_mode<synchronous>, transform_indices = @transform_4, window_bounds = array<i64: 1, 128>}, {transform_indices = @transform_5, window_bounds = array<i64: 8, 128>}]} {
    %c0 = arith.constant 0 : index
    %c0_0 = arith.constant 0 : index
    %0 = vector.load %arg1[%c0, %c0_0] : memref<8x3200xbf16, #tpu.memory_space<vmem>>, vector<8x3200xbf16>
    %c0_1 = arith.constant 0 : index
    %c0_2 = arith.constant 0 : index
    %1 = vector.load %arg2[%c0_1, %c0_2] : memref<3200x512xbf16, #tpu.memory_space<vmem>>, vector<3200x512xbf16>
    %cst = arith.constant dense<0.000000e+00> : vector<8x512xf32>
    %2 = tpu.matmul %0, %1, %cst {dimension_numbers = #tpu.dot_dimension_numbers<[1], [0], [0], [1], [0, 0, 1, 1], [], []>} : vector<8x3200xbf16>, vector<3200x512xbf16>, vector<8x512xf32> -> vector<8x512xf32>
    %c0_3 = arith.constant 0 : index
    %c0_4 = arith.constant 0 : index
    %3 = vector.load %arg3[%c0_3, %c0_4] : memref<1x512xf32, #tpu.memory_space<vmem>>, vector<1x512xf32>
    %4 = vector.broadcast %3 : vector<1x512xf32> to vector<8x512xf32>
    %5 = arith.addf %2, %4 : vector<8x512xf32>
    %cst_5 = arith.constant 0.000000e+00 : f32
    %6 = vector.broadcast %cst_5 : f32 to vector<8x512xf32>
    %7 = arith.maximumf %5, %6 : vector<8x512xf32>
    %8 = arith.truncf %7 : vector<8x512xf32> to vector<8x512xbf16>
    %c0_6 = arith.constant 0 : index
    %c0_7 = arith.constant 0 : index
    %9 = vector.load %arg4[%c0_6, %c0_7] : memref<512x128xbf16, #tpu.memory_space<vmem>>, vector<512x128xbf16>
    %cst_8 = arith.constant dense<0.000000e+00> : vector<8x128xf32>
    %10 = tpu.matmul %8, %9, %cst_8 {dimension_numbers = #tpu.dot_dimension_numbers<[1], [0], [0], [1], [0, 0, 1, 1], [], []>} : vector<8x512xbf16>, vector<512x128xbf16>, vector<8x128xf32> -> vector<8x128xf32>
    %c0_9 = arith.constant 0 : index
    %c0_10 = arith.constant 0 : index
    %11 = vector.load %arg5[%c0_9, %c0_10] : memref<1x128xf32, #tpu.memory_space<vmem>>, vector<1x128xf32>
    %12 = vector.broadcast %11 : vector<1x128xf32> to vector<8x128xf32>
    %13 = arith.addf %10, %12 : vector<8x128xf32>
    %c0_11 = arith.constant 0 : index
    %c0_12 = arith.constant 0 : index
    %14 = vector.load %arg6[%c0_11, %c0_12] : memref<8x128xf32, #tpu.memory_space<vmem>>, vector<8x128xf32>
    tpu.vector_store %arg6[%c0_11, %c0_12], %13 {strides = array<i32>} : memref<8x128xf32, #tpu.memory_space<vmem>>, vector<8x128xf32>,
    return
  }
  func.func @transform_0(%arg0: i32) -> (i32, i32) {
    %c0_i32 = arith.constant 0 : i32
    %c0_i32_0 = arith.constant 0 : i32
    return %arg0, %c0_i32 : i32, i32
  }
  func.func @transform_1(%arg0: i32) -> (i32, i32) {
    %c0_i32 = arith.constant 0 : i32
    %c0_i32_0 = arith.constant 0 : i32
    %c0_i32_1 = arith.constant 0 : i32
    return %c0_i32, %c0_i32_0 : i32, i32
  }
  func.func @transform_2(%arg0: i32) -> (i32, i32) {
    %c0_i32 = arith.constant 0 : i32
    %c0_i32_0 = arith.constant 0 : i32
    %c0_i32_1 = arith.constant 0 : i32
    return %c0_i32, %c0_i32_0 : i32, i32
  }
  func.func @transform_3(%arg0: i32) -> (i32, i32) {
    %c0_i32 = arith.constant 0 : i32
    %c0_i32_0 = arith.constant 0 : i32
    %c0_i32_1 = arith.constant 0 : i32
    return %c0_i32, %c0_i32_0 : i32, i32
  }
  func.func @transform_4(%arg0: i32) -> (i32, i32) {
    %c0_i32 = arith.constant 0 : i32
    %c0_i32_0 = arith.constant 0 : i32
    %c0_i32_1 = arith.constant 0 : i32
    return %c0_i32, %c0_i32_0 : i32, i32
  }
  func.func @transform_5(%arg0: i32) -> (i32, i32) {
    %c0_i32 = arith.constant 0 : i32
    %c0_i32_0 = arith.constant 0 : i32
    return %arg0, %c0_i32 : i32, i32
  }
}

</mosaic_0001>

<bundles_post_ra>
// kernel: critic_cnn_forward.4
= control target key start
LH: loop header
LB: loop body
LE: loop exit
PB: predicated region body
PF: predicated region fallthrough
CT: control target
= control target key end

     0   :  { %s1690_s12 = smov 0   ;;  %s1925_s0 = inlined_call_operand.vmem [shape: bf16[800,256], index: 0, kind: input, shape index: {}]   ;;  %s1926_s1 = inlined_call_operand.vmem [shape: bf16[256,128], index: 1, kind: input, shape index: {}]   ;;  %s1927_s2 = inlined_call_operand.vmem [shape: f32[1,128], index: 2, kind: input, shape index: {}]   ;;  %s1928_s3 = inlined_call_operand.vmem [shape: bf16[800,128], index: 3, kind: output, shape index: {}]  }
   0x1 LB: > { %s1202_s13 = sadd.s32 4294967295, %s1667_s12   ;;  %p1206_p0 = scmp.ge.s32.totalorder %s1667_s12, 1  ;;  %s1667_s12 = sphi %s1690_s12, %s13_s12  }
   0x2   : > { %p139_p1 = scmp.lt.s32.totalorder %s1667_s12, 3 }
   0x4   : > { %p140_p2 = pnand %p1206_p0, %p139_p1 }
   0x5   : > { %v1570_v0 = vld [vmem:[%s1926_s1] sm:$0xff] (!%p140_p2)   ;;  %v1669_v1 = vmov (!%p140_p2), 0   ;;  %s164_s16 = smul.u32 (!%p140_p2), 50, %s1202_s13  ;;  %v1571_v2 = vld [vmem:[%s1926_s1 + $0x8] sm:$0xff] (!%p140_p2)   ;;  %v1572_v3 = vld [vmem:[%s1926_s1 + $0x10] sm:$0xff] (!%p140_p2)  }
   0x6   : > { %143 = sbr.rel (%p140_p2) target bundleno = 387 (0x183), region = 32  ;;  %613 = vmatprep.subr.bf16.mxu0 (!%p140_p2), %v1669_v1  ;;  %1529 = vmatprep.subr.bf16.mxu1 (!%p140_p2), %v1669_v1  ;;  %v1573_v4 = vld [vmem:[%s1926_s1 + $0x18] sm:$0xff] (!%p140_p2)   ;;  %v1574_v5 = vld [vmem:[%s1926_s1 + $0x20] sm:$0xff] (!%p140_p2)   ;;  %v1575_v7 = vld [vmem:[%s1926_s1 + $0x28] sm:$0xff] (!%p140_p2)  }
   0x7   : > { %614 = vmatpush1.bf16.msra.mxu0 (!%p140_p2), %v1570_v0  ;;  %1545 = vmatpush1.bf16.msra.mxu1 (!%p140_p2), %v1570_v0  ;;  %p165_p3 = scmp.lt.s32.totalorder (!%p140_p2), %s164_s16, 99  ;;  %v1576_v9 = vld [vmem:[%s1926_s1 + $0x30] sm:$0xff] (!%p140_p2)   ;;  %v1577_v10 = vld [vmem:[%s1926_s1 + $0x38] sm:$0xff] (!%p140_p2)   ;;  %v1578_v11 = vld [vmem:[%s1926_s1 + $0x40] sm:$0xff] (!%p140_p2)  }
   0x8   : > { %615 = vmatprep.subr.bf16.mxu0 (!%p140_p2), %v1669_v1  ;;  %1530 = vmatprep.subr.bf16.mxu1 (!%p140_p2), %v1669_v1  ;;  %v1579_v12 = vld [vmem:[%s1926_s1 + $0x48] sm:$0xff] (!%p140_p2)   ;;  %v1580_v13 = vld [vmem:[%s1926_s1 + $0x50] sm:$0xff] (!%p140_p2)   ;;  %v1581_v14 = vld [vmem:[%s1926_s1 + $0x58] sm:$0xff] (!%p140_p2)  }
   0x9   : > { %v1582_v15 = vld [vmem:[%s1926_s1 + $0x60] sm:$0xff] (!%p140_p2)   ;;  %v1583_v16 = vld [vmem:[%s1926_s1 + $0x68] sm:$0xff] (!%p140_p2)   ;;  %v1584_v17 = vld [vmem:[%s1926_s1 + $0x70] sm:$0xff] (!%p140_p2)  }
   0xa   : > { %v1585_v18 = vld [vmem:[%s1926_s1 + $0x78] sm:$0xff] (!%p140_p2)  }
   0xb   : > { %616 = vmatpush1.bf16.msra.mxu0 (!%p140_p2), %v1571_v2  ;;  %1546 = vmatpush1.bf16.msra.mxu1 (!%p140_p2), %v1571_v2 }
   0xc   : > { %617 = vmatprep.subr.bf16.mxu0 (!%p140_p2), %v1669_v1  ;;  %1531 = vmatprep.subr.bf16.mxu1 (!%p140_p2), %v1669_v1 }
   0xd   : > { %s1930_s16 = smov (!%p165_p3, %s164_s16), 99 }
   0xe   : > { %s1329_s23 = sshll.u32 %s1930_s16, 3  ;;  %s1209_s29 = sshll.u32 %s1930_s16, 2 }
   0xf   : > { %618 = vmatpush1.bf16.msra.mxu0 %v1572_v3  ;;  %1547 = vmatpush1.bf16.msra.mxu1 %v1572_v3  ;;  %s1727_s28 = scalar_lea.vmem %s1925_s0, %s1329_s23  ;;  %v1839_v3 = vld [vmem:[%s1927_s2] ss:$0 sm:$0xff]  ;;  %s1849_s4 = scalar_lea.vmem %s1928_s3, %s1209_s29 }
  0x10   : > { %619 = vmatprep.subr.bf16.mxu0 %v1669_v1  ;;  %1532 = vmatprep.subr.bf16.mxu1 %v1669_v1  ;;  %v1588_v6 = vld [vmem:[%s1727_s28 + $0x4] ss:$8 sps:$4 sm:$0xff]   ;;  %v1591_v8 = vld [vmem:[%s1727_s28 + $0xd4] ss:$8 sps:$4 sm:$0xff]   ;;  %v1586_v19 = vld [vmem:[%s1727_s28] ss:$8 sps:$4 sm:$0xff]  }
  0x11   : > { %645 = vmatprep.mubr.bf16.mxu0 %v1588_v6  ;;  %749 = vmatprep.mubr.bf16.mxu1 %v1591_v8  ;;  %v1589_v20 = vld [vmem:[%s1727_s28 + $0xd0] ss:$8 sps:$4 sm:$0xff]   ;;  %v1592_v21 = vld [vmem:[%s1727_s28 + $0x14] ss:$8 sps:$4 sm:$0xff]   ;;  %v1595_v22 = vld [vmem:[%s1727_s28 + $0xe4] ss:$8 sps:$4 sm:$0xff]  }
  0x12   : > { %v1594_v23 = vld [vmem:[%s1727_s28 + $0x10] ss:$8 sps:$4 sm:$0xff]   ;;  %v1597_v24 = vld [vmem:[%s1727_s28 + $0xe0] ss:$8 sps:$4 sm:$0xff]   ;;  %v1598_v25 = vld [vmem:[%s1727_s28 + $0x24] ss:$8 sps:$4 sm:$0xff]  }
  0x13   : > { %620 = vmatpush1.bf16.msra.mxu0 %v1573_v4  ;;  %1548 = vmatpush1.bf16.msra.mxu1 %v1573_v4  ;;  %v1601_v26 = vld [vmem:[%s1727_s28 + $0xf4] ss:$8 sps:$4 sm:$0xff]   ;;  %v1600_v27 = vld [vmem:[%s1727_s28 + $0x20] ss:$8 sps:$4 sm:$0xff]   ;;  %v1603_v28 = vld [vmem:[%s1727_s28 + $0xf0] ss:$8 sps:$4 sm:$0xff]  }
  0x14   : > { %621 = vmatprep.subr.bf16.mxu0 %v1669_v1  ;;  %1533 = vmatprep.subr.bf16.mxu1 %v1669_v1  ;;  %v1604_v29 = vld [vmem:[%s1727_s28 + $0x34] ss:$8 sps:$4 sm:$0xff]   ;;  %v1607_v30 = vld [vmem:[%s1727_s28 + $0x104] ss:$8 sps:$4 sm:$0xff]   ;;  %v1606_v31 = vld [vmem:[%s1727_s28 + $0x30] ss:$8 sps:$4 sm:$0xff]  }
  0x15   : > { %v1609_v32 = vld [vmem:[%s1727_s28 + $0x100] ss:$8 sps:$4 sm:$0xff]   ;;  %v1610_v33 = vld [vmem:[%s1727_s28 + $0x44] ss:$8 sps:$4 sm:$0xff]   ;;  %v1613_v34 = vld [vmem:[%s1727_s28 + $0x114] ss:$8 sps:$4 sm:$0xff]  }
  0x16   : > { %v1612_v35 = vld [vmem:[%s1727_s28 + $0x40] ss:$8 sps:$4 sm:$0xff]   ;;  %v1615_v36 = vld [vmem:[%s1727_s28 + $0x110] ss:$8 sps:$4 sm:$0xff]   ;;  %v1616_v37 = vld [vmem:[%s1727_s28 + $0x54] ss:$8 sps:$4 sm:$0xff]  }
  0x17   : > { %622 = vmatpush1.bf16.msra.mxu0 %v1574_v5  ;;  %1549 = vmatpush1.bf16.msra.mxu1 %v1574_v5  ;;  %v1619_v38 = vld [vmem:[%s1727_s28 + $0x124] ss:$8 sps:$4 sm:$0xff]   ;;  %v1618_v39 = vld [vmem:[%s1727_s28 + $0x50] ss:$8 sps:$4 sm:$0xff]   ;;  %v1621_v40 = vld [vmem:[%s1727_s28 + $0x120] ss:$8 sps:$4 sm:$0xff]  }
  0x18   : > { %623 = vmatprep.subr.bf16.mxu0 %v1669_v1  ;;  %1534 = vmatprep.subr.bf16.mxu1 %v1669_v1  ;;  %v1622_v41 = vld [vmem:[%s1727_s28 + $0x64] ss:$8 sps:$4 sm:$0xff]   ;;  %v1625_v42 = vld [vmem:[%s1727_s28 + $0x134] ss:$8 sps:$4 sm:$0xff]   ;;  %v1624_v43 = vld [vmem:[%s1727_s28 + $0x60] ss:$8 sps:$4 sm:$0xff]  }
  0x19   : > { %v1627_v44 = vld [vmem:[%s1727_s28 + $0x130] ss:$8 sps:$4 sm:$0xff]   ;;  %v1628_v45 = vld [vmem:[%s1727_s28 + $0x74] ss:$8 sps:$4 sm:$0xff]   ;;  %v1631_v46 = vld [vmem:[%s1727_s28 + $0x144] ss:$8 sps:$4 sm:$0xff]  }
  0x1a   : > { %v1630_v47 = vld [vmem:[%s1727_s28 + $0x70] ss:$8 sps:$4 sm:$0xff]   ;;  %v1633_v48 = vld [vmem:[%s1727_s28 + $0x140] ss:$8 sps:$4 sm:$0xff]   ;;  %v1634_v49 = vld [vmem:[%s1727_s28 + $0x84] ss:$8 sps:$4 sm:$0xff]  }
  0x1b   : > { %624 = vmatpush1.bf16.msra.mxu0 %v1575_v7  ;;  %1550 = vmatpush1.bf16.msra.mxu1 %v1575_v7  ;;  %v1637_v50 = vld [vmem:[%s1727_s28 + $0x154] ss:$8 sps:$4 sm:$0xff]   ;;  %v1636_v51 = vld [vmem:[%s1727_s28 + $0x80] ss:$8 sps:$4 sm:$0xff]   ;;  %v1639_v52 = vld [vmem:[%s1727_s28 + $0x150] ss:$8 sps:$4 sm:$0xff]  }
  0x1c   : > { %625 = vmatprep.subr.bf16.mxu0 %v1669_v1  ;;  %1535 = vmatprep.subr.bf16.mxu1 %v1669_v1  ;;  %v1640_v53 = vld [vmem:[%s1727_s28 + $0x94] ss:$8 sps:$4 sm:$0xff]   ;;  %v1643_v54 = vld [vmem:[%s1727_s28 + $0x164] ss:$8 sps:$4 sm:$0xff]   ;;  %v1642_v55 = vld [vmem:[%s1727_s28 + $0x90] ss:$8 sps:$4 sm:$0xff]  }
  0x1d   : > { %v1645_v56 = vld [vmem:[%s1727_s28 + $0x160] ss:$8 sps:$4 sm:$0xff]   ;;  %v1646_v57 = vld [vmem:[%s1727_s28 + $0xa4] ss:$8 sps:$4 sm:$0xff]   ;;  %v1649_v58 = vld [vmem:[%s1727_s28 + $0x174] ss:$8 sps:$4 sm:$0xff]  }
  0x1e   : > { %v1648_v59 = vld [vmem:[%s1727_s28 + $0xa0] ss:$8 sps:$4 sm:$0xff]   ;;  %v1651_v60 = vld [vmem:[%s1727_s28 + $0x170] ss:$8 sps:$4 sm:$0xff]   ;;  %v1652_v61 = vld [vmem:[%s1727_s28 + $0xb4] ss:$8 sps:$4 sm:$0xff]  }
  0x1f   : > { %626 = vmatpush1.bf16.msra.mxu0 %v1576_v9  ;;  %1551 = vmatpush1.bf16.msra.mxu1 %v1576_v9  ;;  %v1655_v62 = vld [vmem:[%s1727_s28 + $0x184] ss:$8 sps:$4 sm:$0xff]   ;;  %v1654_v63 = vld [vmem:[%s1727_s28 + $0xb0] ss:$8 sps:$4 sm:$0xff]   ;;  %v1657_v0 = vld [vmem:[%s1727_s28 + $0x180] ss:$8 sps:$4 sm:$0xff]  }
  0x20   : > { %627 = vmatprep.subr.bf16.mxu0 %v1669_v1  ;;  %1536 = vmatprep.subr.bf16.mxu1 %v1669_v1  ;;  %v1660_v2 = vld [vmem:[%s1727_s28 + $0xc0] ss:$8 sps:$4 sm:$0xff]  }
  0x23   : > { %628 = vmatpush1.bf16.msra.mxu0 %v1577_v10  ;;  %1552 = vmatpush1.bf16.msra.mxu1 %v1577_v10 }
  0x24   : > { %629 = vmatprep.subr.bf16.mxu0 %v1669_v1  ;;  %1537 = vmatprep.subr.bf16.mxu1 %v1669_v1 }
  0x27   : > { %630 = vmatpush1.bf16.msra.mxu0 %v1578_v11  ;;  %1553 = vmatpush1.bf16.msra.mxu1 %v1578_v11 }
  0x28   : > { %631 = vmatprep.subr.bf16.mxu0 %v1669_v1  ;;  %1538 = vmatprep.subr.bf16.mxu1 %v1669_v1 }
  0x2b   : > { %632 = vmatpush1.bf16.msra.mxu0 %v1579_v12  ;;  %1554 = vmatpush1.bf16.msra.mxu1 %v1579_v12 }
  0x2c   : > { %633 = vmatprep.subr.bf16.mxu0 %v1669_v1  ;;  %1539 = vmatprep.subr.bf16.mxu1 %v1669_v1 }
  0x2f   : > { %634 = vmatpush1.bf16.msra.mxu0 %v1580_v13  ;;  %1555 = vmatpush1.bf16.msra.mxu1 %v1580_v13 }
  0x30   : > { %635 = vmatprep.subr.bf16.mxu0 %v1669_v1  ;;  %1540 = vmatprep.subr.bf16.mxu1 %v1669_v1 }
  0x33   : > { %636 = vmatpush1.bf16.msra.mxu0 %v1581_v14  ;;  %1556 = vmatpush1.bf16.msra.mxu1 %v1581_v14 }
  0x34   : > { %637 = vmatprep.subr.bf16.mxu0 %v1669_v1  ;;  %1541 = vmatprep.subr.bf16.mxu1 %v1669_v1 }
  0x37   : > { %638 = vmatpush1.bf16.msra.mxu0 %v1582_v15  ;;  %1557 = vmatpush1.bf16.msra.mxu1 %v1582_v15 }
  0x38   : > { %639 = vmatprep.subr.bf16.mxu0 %v1669_v1  ;;  %1542 = vmatprep.subr.bf16.mxu1 %v1669_v1 }
  0x3b   : > { %640 = vmatpush1.bf16.msra.mxu0 %v1583_v16  ;;  %1558 = vmatpush1.bf16.msra.mxu1 %v1583_v16 }
  0x3c   : > { %641 = vmatprep.subr.bf16.mxu0 %v1669_v1  ;;  %1543 = vmatprep.subr.bf16.mxu1 %v1669_v1 }
  0x3f   : > { %642 = vmatpush1.bf16.msra.mxu0 %v1584_v17  ;;  %1559 = vmatpush1.bf16.msra.mxu1 %v1584_v17 }
  0x40   : > { %643 = vmatprep.subr.bf16.mxu0 %v1669_v1  ;;  %1544 = vmatprep.subr.bf16.mxu1 %v1669_v1  ;;  %v1658_v1 = vld [vmem:[%s1727_s28 + $0xc4] ss:$8 sps:$4 sm:$0xff]  }
  0x43   : > { %644 = vmatpush1.bf16.msra.mxu0 %v1585_v18  ;;  %1560 = vmatpush1.bf16.msra.mxu1 %v1585_v18 }
  0x46   : > { %646 = vmatmul.mubr.bf16.vlgmr.msra.gmra.mrb[0].mxu0 %v1586_v19  ;;  %750 = vmatmul.mubr.bf16.vlgmr.msra.gmra.mrb[0].mxu1 %v1589_v20 }
  0x47   : > { %653 = vmatprep.mubr.bf16.mxu0 %v1592_v21  ;;  %757 = vmatprep.mubr.bf16.mxu1 %v1595_v22 }
  0x4e   : > { %654 = vmatmul.mubr.bf16.gmra.mrb[4].mxu0 %v1594_v23  ;;  %758 = vmatmul.mubr.bf16.gmra.mrb[4].mxu1 %v1597_v24 }
  0x4f   : > { %661 = vmatprep.mubr.bf16.mxu0 %v1598_v25  ;;  %765 = vmatprep.mubr.bf16.mxu1 %v1601_v26 }
  0x56   : > { %662 = vmatmul.mubr.bf16.gmra.mrb[8].mxu0 %v1600_v27  ;;  %766 = vmatmul.mubr.bf16.gmra.mrb[8].mxu1 %v1603_v28 }
  0x57   : > { %669 = vmatprep.mubr.bf16.mxu0 %v1604_v29  ;;  %773 = vmatprep.mubr.bf16.mxu1 %v1607_v30 }
  0x5e   : > { %670 = vmatmul.mubr.bf16.gmra.mrb[12].mxu0 %v1606_v31  ;;  %774 = vmatmul.mubr.bf16.gmra.mrb[12].mxu1 %v1609_v32 }
  0x5f   : > { %677 = vmatprep.mubr.bf16.mxu0 %v1610_v33  ;;  %781 = vmatprep.mubr.bf16.mxu1 %v1613_v34 }
  0x66   : > { %678 = vmatmul.mubr.bf16.gmra.mrb[16].mxu0 %v1612_v35  ;;  %782 = vmatmul.mubr.bf16.gmra.mrb[16].mxu1 %v1615_v36 }
  0x67   : > { %685 = vmatprep.mubr.bf16.mxu0 %v1616_v37  ;;  %789 = vmatprep.mubr.bf16.mxu1 %v1619_v38 }
  0x6e   : > { %686 = vmatmul.mubr.bf16.gmra.mrb[20].mxu0 %v1618_v39  ;;  %790 = vmatmul.mubr.bf16.gmra.mrb[20].mxu1 %v1621_v40 }
  0x6f   : > { %693 = vmatprep.mubr.bf16.mxu0 %v1622_v41  ;;  %797 = vmatprep.mubr.bf16.mxu1 %v1625_v42 }
  0x76   : > { %694 = vmatmul.mubr.bf16.gmra.mrb[24].mxu0 %v1624_v43  ;;  %798 = vmatmul.mubr.bf16.gmra.mrb[24].mxu1 %v1627_v44 }
  0x77   : > { %701 = vmatprep.mubr.bf16.mxu0 %v1628_v45  ;;  %805 = vmatprep.mubr.bf16.mxu1 %v1631_v46 }
  0x7e   : > { %702 = vmatmul.mubr.bf16.gmra.mrb[28].mxu0 %v1630_v47  ;;  %806 = vmatmul.mubr.bf16.gmra.mrb[28].mxu1 %v1633_v48 }
  0x7f   : > { %709 = vmatprep.mubr.bf16.mxu0 %v1634_v49  ;;  %813 = vmatprep.mubr.bf16.mxu1 %v1637_v50 }
  0x86   : > { %710 = vmatmul.mubr.bf16.gmra.mrb[32].mxu0 %v1636_v51  ;;  %814 = vmatmul.mubr.bf16.gmra.mrb[32].mxu1 %v1639_v52 }
  0x87   : > { %717 = vmatprep.mubr.bf16.mxu0 %v1640_v53  ;;  %821 = vmatprep.mubr.bf16.mxu1 %v1643_v54 }
  0x8e   : > { %718 = vmatmul.mubr.bf16.gmra.mrb[36].mxu0 %v1642_v55  ;;  %822 = vmatmul.mubr.bf16.gmra.mrb[36].mxu1 %v1645_v56 }
  0x8f   : > { %725 = vmatprep.mubr.bf16.mxu0 %v1646_v57  ;;  %829 = vmatprep.mubr.bf16.mxu1 %v1649_v58 }
  0x96   : > { %726 = vmatmul.mubr.bf16.gmra.mrb[40].mxu0 %v1648_v59  ;;  %830 = vmatmul.mubr.bf16.gmra.mrb[40].mxu1 %v1651_v60 }
  0x97   : > { %733 = vmatprep.mubr.bf16.mxu0 %v1652_v61  ;;  %837 = vmatprep.mubr.bf16.mxu1 %v1655_v62 }
  0x9e   : > { %734 = vmatmul.mubr.bf16.gmra.mrb[44].mxu0 %v1654_v63  ;;  %838 = vmatmul.mubr.bf16.gmra.mrb[44].mxu1 %v1657_v0 }
  0x9f   : > { %741 = vmatprep.mubr.bf16.mxu0 %v1658_v1 }
  0xa6   : > { %742 = vmatmul.mubr.bf16.gmra.mrb[48].mxu0 %v1660_v2 }
 0x119   : > { %v647_v4 = vpop.f32.mrb[0].mxu0  ;;  %v751_v5 = vpop.f32.mrb[0].mxu1 }
 0x11a   : > { %v648_v6 = vadd.f32 %v1839_v3, %v647_v4  ;;  %v649_v7 = vpop.f32.mrb[1].mxu0  ;;  %v752_v8 = vadd.f32 %v1839_v3, %v751_v5  ;;  %v753_v9 = vpop.f32.mrb[1].mxu1 }
 0x11b   : > { %v650_v10 = vpop.f32.mrb[2].mxu0  ;;  %v754_v11 = vpop.f32.mrb[2].mxu1 }
 0x11c   : > { %v651_v12 = vadd.f32 %v1839_v3, %v650_v10  ;;  %v652_v13 = vpop.f32.mrb[3].mxu0  ;;  %v872_v14 = vmax.f32 %v752_v8, 0.0  ;;  %v755_v15 = vadd.f32 %v1839_v3, %v754_v11  ;;  %v756_v16 = vpop.f32.mrb[3].mxu1  ;;  %v846_v17 = vmax.f32 %v648_v6, 0.0 }
 0x11e   : > { %v847_v18 = vmax.f32 %v651_v12, 0.0  ;;  %v873_v19 = vmax.f32 %v755_v15, 0.0 }
 0x120   : > { %v1383_v20 = vpack.c.bf16 %v847_v18, %v846_v17  ;;  %v1448_v21 = vpack.c.bf16 %v873_v19, %v872_v14 }
 0x121   : > { %v655_v22 = vpop.f32.mrb[4].mxu0  ;;  %v759_v23 = vpop.f32.mrb[4].mxu1 }
 0x122   : > { %1384 = vst [vmem:[%s1849_s4] sm:$0xff] %v1383_v20   ;;  %1517 = vst [vmem:[%s1849_s4 + $0x68] sm:$0xff] %v1448_v21   ;;  %v656_v24 = vadd.f32 %v1839_v3, %v655_v22  ;;  %v657_v25 = vpop.f32.mrb[5].mxu0  ;;  %v760_v26 = vadd.f32 %v1839_v3, %v759_v23  ;;  %v761_v27 = vpop.f32.mrb[5].mxu1 }
 0x123   : > { %v658_v28 = vpop.f32.mrb[6].mxu0  ;;  %v762_v29 = vpop.f32.mrb[6].mxu1 }
 0x124   : > { %v659_v30 = vadd.f32 %v1839_v3, %v658_v28  ;;  %v660_v31 = vpop.f32.mrb[7].mxu0  ;;  %v874_v32 = vmax.f32 %v760_v26, 0.0  ;;  %v763_v33 = vadd.f32 %v1839_v3, %v762_v29  ;;  %v764_v34 = vpop.f32.mrb[7].mxu1  ;;  %v848_v35 = vmax.f32 %v656_v24, 0.0 }
 0x126   : > { %v849_v36 = vmax.f32 %v659_v30, 0.0  ;;  %v875_v37 = vmax.f32 %v763_v33, 0.0 }
 0x128   : > { %v1388_v38 = vpack.c.bf16 %v849_v36, %v848_v35  ;;  %v1453_v39 = vpack.c.bf16 %v875_v37, %v874_v32 }
 0x129   : > { %v663_v40 = vpop.f32.mrb[8].mxu0  ;;  %v767_v41 = vpop.f32.mrb[8].mxu1 }
 0x12a   : > { %1505 = vst [vmem:[%s1849_s4 + $0x8] sm:$0xff] %v1388_v38   ;;  %1518 = vst [vmem:[%s1849_s4 + $0x70] sm:$0xff] %v1453_v39   ;;  %v664_v42 = vadd.f32 %v1839_v3, %v663_v40  ;;  %v665_v43 = vpop.f32.mrb[9].mxu0  ;;  %v768_v44 = vadd.f32 %v1839_v3, %v767_v41  ;;  %v769_v45 = vpop.f32.mrb[9].mxu1 }
 0x12b   : > { %v666_v46 = vpop.f32.mrb[10].mxu0  ;;  %v770_v47 = vpop.f32.mrb[10].mxu1 }
 0x12c   : > { %v667_v48 = vadd.f32 %v1839_v3, %v666_v46  ;;  %v668_v49 = vpop.f32.mrb[11].mxu0  ;;  %v876_v50 = vmax.f32 %v768_v44, 0.0  ;;  %v771_v51 = vadd.f32 %v1839_v3, %v770_v47  ;;  %v772_v52 = vpop.f32.mrb[11].mxu1  ;;  %v850_v53 = vmax.f32 %v664_v42, 0.0 }
 0x12e   : > { %v851_v54 = vmax.f32 %v667_v48, 0.0  ;;  %v877_v55 = vmax.f32 %v771_v51, 0.0 }
 0x130   : > { %v1393_v56 = vpack.c.bf16 %v851_v54, %v850_v53  ;;  %v1458_v57 = vpack.c.bf16 %v877_v55, %v876_v50 }
 0x131   : > { %v671_v58 = vpop.f32.mrb[12].mxu0  ;;  %v775_v59 = vpop.f32.mrb[12].mxu1 }
 0x132   : > { %1506 = vst [vmem:[%s1849_s4 + $0x10] sm:$0xff] %v1393_v56   ;;  %1519 = vst [vmem:[%s1849_s4 + $0x78] sm:$0xff] %v1458_v57   ;;  %v672_v60 = vadd.f32 %v1839_v3, %v671_v58  ;;  %v673_v61 = vpop.f32.mrb[13].mxu0  ;;  %v776_v62 = vadd.f32 %v1839_v3, %v775_v59  ;;  %v777_v63 = vpop.f32.mrb[13].mxu1 }
 0x133   : > { %v674_v0 = vpop.f32.mrb[14].mxu0  ;;  %v778_v1 = vpop.f32.mrb[14].mxu1 }
 0x134   : > { %v675_v2 = vadd.f32 %v1839_v3, %v674_v0  ;;  %v676_v4 = vpop.f32.mrb[15].mxu0  ;;  %v878_v5 = vmax.f32 %v776_v62, 0.0  ;;  %v779_v6 = vadd.f32 %v1839_v3, %v778_v1  ;;  %v780_v7 = vpop.f32.mrb[15].mxu1  ;;  %v852_v8 = vmax.f32 %v672_v60, 0.0 }
 0x136   : > { %v853_v9 = vmax.f32 %v675_v2, 0.0  ;;  %v879_v10 = vmax.f32 %v779_v6, 0.0 }
 0x138   : > { %v1398_v11 = vpack.c.bf16 %v853_v9, %v852_v8  ;;  %v1463_v12 = vpack.c.bf16 %v879_v10, %v878_v5 }
 0x139   : > { %v679_v13 = vpop.f32.mrb[16].mxu0  ;;  %v783_v14 = vpop.f32.mrb[16].mxu1 }
 0x13a   : > { %1507 = vst [vmem:[%s1849_s4 + $0x18] sm:$0xff] %v1398_v11   ;;  %1520 = vst [vmem:[%s1849_s4 + $0x80] sm:$0xff] %v1463_v12   ;;  %v680_v15 = vadd.f32 %v1839_v3, %v679_v13  ;;  %v681_v16 = vpop.f32.mrb[17].mxu0  ;;  %v784_v17 = vadd.f32 %v1839_v3, %v783_v14  ;;  %v785_v18 = vpop.f32.mrb[17].mxu1 }
 0x13b   : > { %v682_v19 = vpop.f32.mrb[18].mxu0  ;;  %v786_v20 = vpop.f32.mrb[18].mxu1 }
 0x13c   : > { %v683_v21 = vadd.f32 %v1839_v3, %v682_v19  ;;  %v684_v22 = vpop.f32.mrb[19].mxu0  ;;  %v880_v23 = vmax.f32 %v784_v17, 0.0  ;;  %v787_v24 = vadd.f32 %v1839_v3, %v786_v20  ;;  %v788_v25 = vpop.f32.mrb[19].mxu1  ;;  %v854_v26 = vmax.f32 %v680_v15, 0.0 }
 0x13e   : > { %v855_v27 = vmax.f32 %v683_v21, 0.0  ;;  %v881_v28 = vmax.f32 %v787_v24, 0.0 }
 0x140   : > { %v1403_v29 = vpack.c.bf16 %v855_v27, %v854_v26  ;;  %v1468_v30 = vpack.c.bf16 %v881_v28, %v880_v23 }
 0x141   : > { %v687_v31 = vpop.f32.mrb[20].mxu0  ;;  %v791_v32 = vpop.f32.mrb[20].mxu1 }
 0x142   : > { %1508 = vst [vmem:[%s1849_s4 + $0x20] sm:$0xff] %v1403_v29   ;;  %1521 = vst [vmem:[%s1849_s4 + $0x88] sm:$0xff] %v1468_v30   ;;  %v688_v33 = vadd.f32 %v1839_v3, %v687_v31  ;;  %v689_v34 = vpop.f32.mrb[21].mxu0  ;;  %v792_v35 = vadd.f32 %v1839_v3, %v791_v32  ;;  %v793_v36 = vpop.f32.mrb[21].mxu1 }
 0x143   : > { %v690_v37 = vpop.f32.mrb[22].mxu0  ;;  %v794_v38 = vpop.f32.mrb[22].mxu1 }
 0x144   : > { %v691_v39 = vadd.f32 %v1839_v3, %v690_v37  ;;  %v692_v40 = vpop.f32.mrb[23].mxu0  ;;  %v882_v41 = vmax.f32 %v792_v35, 0.0  ;;  %v795_v42 = vadd.f32 %v1839_v3, %v794_v38  ;;  %v796_v43 = vpop.f32.mrb[23].mxu1  ;;  %v856_v44 = vmax.f32 %v688_v33, 0.0 }
 0x146   : > { %v857_v45 = vmax.f32 %v691_v39, 0.0  ;;  %v883_v46 = vmax.f32 %v795_v42, 0.0 }
 0x148   : > { %v1408_v47 = vpack.c.bf16 %v857_v45, %v856_v44  ;;  %v1473_v48 = vpack.c.bf16 %v883_v46, %v882_v41 }
 0x149   : > { %v695_v49 = vpop.f32.mrb[24].mxu0  ;;  %v799_v50 = vpop.f32.mrb[24].mxu1 }
 0x14a   : > { %1509 = vst [vmem:[%s1849_s4 + $0x28] sm:$0xff] %v1408_v47   ;;  %1522 = vst [vmem:[%s1849_s4 + $0x90] sm:$0xff] %v1473_v48   ;;  %v696_v51 = vadd.f32 %v1839_v3, %v695_v49  ;;  %v697_v52 = vpop.f32.mrb[25].mxu0  ;;  %v800_v53 = vadd.f32 %v1839_v3, %v799_v50  ;;  %v801_v54 = vpop.f32.mrb[25].mxu1 }
 0x14b   : > { %v698_v55 = vpop.f32.mrb[26].mxu0  ;;  %v802_v56 = vpop.f32.mrb[26].mxu1 }
 0x14c   : > { %v699_v57 = vadd.f32 %v1839_v3, %v698_v55  ;;  %v700_v58 = vpop.f32.mrb[27].mxu0  ;;  %v884_v59 = vmax.f32 %v800_v53, 0.0  ;;  %v803_v60 = vadd.f32 %v1839_v3, %v802_v56  ;;  %v804_v61 = vpop.f32.mrb[27].mxu1  ;;  %v858_v62 = vmax.f32 %v696_v51, 0.0 }
 0x14e   : > { %v859_v63 = vmax.f32 %v699_v57, 0.0  ;;  %v885_v0 = vmax.f32 %v803_v60, 0.0 }
 0x150   : > { %v1413_v1 = vpack.c.bf16 %v859_v63, %v858_v62  ;;  %v1478_v2 = vpack.c.bf16 %v885_v0, %v884_v59 }
 0x151   : > { %v703_v4 = vpop.f32.mrb[28].mxu0  ;;  %v807_v5 = vpop.f32.mrb[28].mxu1 }
 0x152   : > { %1510 = vst [vmem:[%s1849_s4 + $0x30] sm:$0xff] %v1413_v1   ;;  %1523 = vst [vmem:[%s1849_s4 + $0x98] sm:$0xff] %v1478_v2   ;;  %v704_v6 = vadd.f32 %v1839_v3, %v703_v4  ;;  %v705_v7 = vpop.f32.mrb[29].mxu0  ;;  %v808_v8 = vadd.f32 %v1839_v3, %v807_v5  ;;  %v809_v9 = vpop.f32.mrb[29].mxu1 }
 0x153   : > { %v706_v10 = vpop.f32.mrb[30].mxu0  ;;  %v810_v11 = vpop.f32.mrb[30].mxu1 }
 0x154   : > { %v707_v12 = vadd.f32 %v1839_v3, %v706_v10  ;;  %v708_v13 = vpop.f32.mrb[31].mxu0  ;;  %v886_v14 = vmax.f32 %v808_v8, 0.0  ;;  %v811_v15 = vadd.f32 %v1839_v3, %v810_v11  ;;  %v812_v16 = vpop.f32.mrb[31].mxu1  ;;  %v860_v17 = vmax.f32 %v704_v6, 0.0 }
 0x156   : > { %v861_v18 = vmax.f32 %v707_v12, 0.0  ;;  %v887_v19 = vmax.f32 %v811_v15, 0.0 }
 0x158   : > { %v1418_v20 = vpack.c.bf16 %v861_v18, %v860_v17  ;;  %v1483_v21 = vpack.c.bf16 %v887_v19, %v886_v14 }
 0x159   : > { %v711_v22 = vpop.f32.mrb[32].mxu0  ;;  %v815_v23 = vpop.f32.mrb[32].mxu1 }
 0x15a   : > { %1511 = vst [vmem:[%s1849_s4 + $0x38] sm:$0xff] %v1418_v20   ;;  %1524 = vst [vmem:[%s1849_s4 + $0xa0] sm:$0xff] %v1483_v21   ;;  %v712_v24 = vadd.f32 %v1839_v3, %v711_v22  ;;  %v713_v25 = vpop.f32.mrb[33].mxu0  ;;  %v816_v26 = vadd.f32 %v1839_v3, %v815_v23  ;;  %v817_v27 = vpop.f32.mrb[33].mxu1 }
 0x15b   : > { %v714_v28 = vpop.f32.mrb[34].mxu0  ;;  %v818_v29 = vpop.f32.mrb[34].mxu1 }
 0x15c   : > { %v715_v30 = vadd.f32 %v1839_v3, %v714_v28  ;;  %v716_v31 = vpop.f32.mrb[35].mxu0  ;;  %v888_v32 = vmax.f32 %v816_v26, 0.0  ;;  %v819_v33 = vadd.f32 %v1839_v3, %v818_v29  ;;  %v820_v34 = vpop.f32.mrb[35].mxu1  ;;  %v862_v35 = vmax.f32 %v712_v24, 0.0 }
 0x15e   : > { %v863_v36 = vmax.f32 %v715_v30, 0.0  ;;  %v889_v37 = vmax.f32 %v819_v33, 0.0 }
 0x160   : > { %v1423_v38 = vpack.c.bf16 %v863_v36, %v862_v35  ;;  %v1488_v39 = vpack.c.bf16 %v889_v37, %v888_v32 }
 0x161   : > { %v719_v40 = vpop.f32.mrb[36].mxu0  ;;  %v823_v41 = vpop.f32.mrb[36].mxu1 }
 0x162   : > { %1512 = vst [vmem:[%s1849_s4 + $0x40] sm:$0xff] %v1423_v38   ;;  %1525 = vst [vmem:[%s1849_s4 + $0xa8] sm:$0xff] %v1488_v39   ;;  %v720_v42 = vadd.f32 %v1839_v3, %v719_v40  ;;  %v721_v43 = vpop.f32.mrb[37].mxu0  ;;  %v824_v44 = vadd.f32 %v1839_v3, %v823_v41  ;;  %v825_v45 = vpop.f32.mrb[37].mxu1 }
 0x163   : > { %v722_v46 = vpop.f32.mrb[38].mxu0  ;;  %v826_v47 = vpop.f32.mrb[38].mxu1 }
 0x164   : > { %v723_v48 = vadd.f32 %v1839_v3, %v722_v46  ;;  %v724_v49 = vpop.f32.mrb[39].mxu0  ;;  %v890_v50 = vmax.f32 %v824_v44, 0.0  ;;  %v827_v51 = vadd.f32 %v1839_v3, %v826_v47  ;;  %v828_v52 = vpop.f32.mrb[39].mxu1  ;;  %v864_v53 = vmax.f32 %v720_v42, 0.0 }
 0x166   : > { %v865_v54 = vmax.f32 %v723_v48, 0.0  ;;  %v891_v55 = vmax.f32 %v827_v51, 0.0 }
 0x168   : > { %v1428_v56 = vpack.c.bf16 %v865_v54, %v864_v53  ;;  %v1493_v57 = vpack.c.bf16 %v891_v55, %v890_v50 }
 0x169   : > { %v727_v58 = vpop.f32.mrb[40].mxu0  ;;  %v831_v59 = vpop.f32.mrb[40].mxu1 }
 0x16a   : > { %1513 = vst [vmem:[%s1849_s4 + $0x48] sm:$0xff] %v1428_v56   ;;  %1526 = vst [vmem:[%s1849_s4 + $0xb0] sm:$0xff] %v1493_v57   ;;  %v728_v60 = vadd.f32 %v1839_v3, %v727_v58  ;;  %v729_v61 = vpop.f32.mrb[41].mxu0  ;;  %v832_v62 = vadd.f32 %v1839_v3, %v831_v59  ;;  %v833_v63 = vpop.f32.mrb[41].mxu1 }
 0x16b   : > { %v730_v0 = vpop.f32.mrb[42].mxu0  ;;  %v834_v1 = vpop.f32.mrb[42].mxu1 }
 0x16c   : > { %v731_v2 = vadd.f32 %v1839_v3, %v730_v0  ;;  %v732_v4 = vpop.f32.mrb[43].mxu0  ;;  %v892_v5 = vmax.f32 %v832_v62, 0.0  ;;  %v835_v6 = vadd.f32 %v1839_v3, %v834_v1  ;;  %v836_v7 = vpop.f32.mrb[43].mxu1  ;;  %v866_v8 = vmax.f32 %v728_v60, 0.0 }
 0x16e   : > { %v867_v9 = vmax.f32 %v731_v2, 0.0  ;;  %v893_v10 = vmax.f32 %v835_v6, 0.0 }
 0x170   : > { %v1433_v11 = vpack.c.bf16 %v867_v9, %v866_v8  ;;  %v1498_v12 = vpack.c.bf16 %v893_v10, %v892_v5 }
 0x171   : > { %v735_v13 = vpop.f32.mrb[44].mxu0  ;;  %v839_v14 = vpop.f32.mrb[44].mxu1 }
 0x172   : > { %1514 = vst [vmem:[%s1849_s4 + $0x50] sm:$0xff] %v1433_v11   ;;  %1527 = vst [vmem:[%s1849_s4 + $0xb8] sm:$0xff] %v1498_v12   ;;  %v736_v15 = vadd.f32 %v1839_v3, %v735_v13  ;;  %v737_v16 = vpop.f32.mrb[45].mxu0  ;;  %v840_v17 = vadd.f32 %v1839_v3, %v839_v14  ;;  %v841_v18 = vpop.f32.mrb[45].mxu1 }
 0x173   : > { %v738_v19 = vpop.f32.mrb[46].mxu0  ;;  %v842_v20 = vpop.f32.mrb[46].mxu1 }
 0x174   : > { %v739_v21 = vadd.f32 %v1839_v3, %v738_v19  ;;  %v740_v22 = vpop.f32.mrb[47].mxu0  ;;  %v894_v23 = vmax.f32 %v840_v17, 0.0  ;;  %v843_v24 = vadd.f32 %v1839_v3, %v842_v20  ;;  %v844_v25 = vpop.f32.mrb[47].mxu1  ;;  %v868_v26 = vmax.f32 %v736_v15, 0.0 }
 0x176   : > { %v869_v27 = vmax.f32 %v739_v21, 0.0  ;;  %v895_v28 = vmax.f32 %v843_v24, 0.0 }
 0x178   : > { %v1438_v29 = vpack.c.bf16 %v869_v27, %v868_v26  ;;  %v1503_v30 = vpack.c.bf16 %v895_v28, %v894_v23 }
 0x179   : > { %v743_v31 = vpop.f32.mrb[48].mxu0 }
 0x17a   : > { %1515 = vst [vmem:[%s1849_s4 + $0x58] sm:$0xff] %v1438_v29   ;;  %1528 = vst [vmem:[%s1849_s4 + $0xc0] sm:$0xff] %v1503_v30   ;;  %v744_v32 = vadd.f32 %v1839_v3, %v743_v31  ;;  %v745_v33 = vpop.f32.mrb[49].mxu0 }
 0x17b   : > { %v746_v34 = vpop.f32.mrb[50].mxu0 }
 0x17c   : > { %v747_v35 = vadd.f32 %v1839_v3, %v746_v34  ;;  %v748_v36 = vpop.f32.mrb[51].mxu0  ;;  %v870_v37 = vmax.f32 %v744_v32, 0.0 }
 0x17e   : > { %v871_v38 = vmax.f32 %v747_v35, 0.0 }
 0x180   : > { %v1443_v39 = vpack.c.bf16 %v871_v38, %v870_v37 }
 0x182   : > { %1516 = vst [vmem:[%s1849_s4 + $0x60] sm:$0xff] %v1443_v39  }
 0x183 PF: > { %s13_s12 = sadd.s32 1, %s1667_s12  }
 0x184   : > { %p10_p4 = scmp.ge.s32.totalorder %s13_s12, 4  }
 0x186   :  { %12 = sbr.rel (!%p10_p4) target bundleno = 1 (0x1), region = 62 }

// kernel: critic_cnn_forward.5
= control target key start
LH: loop header
LB: loop body
LE: loop exit
PB: predicated region body
PF: predicated region fallthrough
CT: control target
= control target key end

     0   :  { %s1185_s12 = smov 0   ;;  %s1352_s0 = inlined_call_operand.vmem [shape: bf16[176,512], index: 0, kind: input, shape index: {}]   ;;  %s1353_s1 = inlined_call_operand.vmem [shape: bf16[512,128], index: 1, kind: input, shape index: {}]   ;;  %s1354_s2 = inlined_call_operand.vmem [shape: f32[1,128], index: 2, kind: input, shape index: {}]   ;;  %s1355_s3 = inlined_call_operand.vmem [shape: bf16[176,128], index: 3, kind: output, shape index: {}]  }
   0x1 LB: > { %s860_s13 = sadd.s32 4294967295, %s1163_s12   ;;  %p864_p0 = scmp.ge.s32.totalorder %s1163_s12, 1  ;;  %s1163_s12 = sphi %s1185_s12, %s13_s12  }
   0x2   : > { %p139_p1 = scmp.lt.s32.totalorder %s1163_s12, 3 }
   0x4   : > { %p140_p2 = pnand %p864_p0, %p139_p1 }
   0x5   : > { %v1091_v0 = vld [vmem:[%s1353_s1 + $0x40] sm:$0xff] (!%p140_p2)   ;;  %v1095_v4 = vld [vmem:[%s1353_s1 + $0x48] sm:$0xff] (!%p140_p2)   ;;  %v1099_v8 = vld [vmem:[%s1353_s1 + $0x50] sm:$0xff] (!%p140_p2)   ;;  %s164_s19 = smul.u32 (!%p140_p2), 11, %s860_s13 }
   0x6   : > { %143 = sbr.rel (%p140_p2) target bundleno = 303 (0x12f), region = 32  ;;  %v1092_v1 = vld [vmem:[%s1353_s1 + $0xc0] sm:$0xff] (!%p140_p2)   ;;  %979 = vmatprep.subr.bf16.mxu0 (!%p140_p2), %v1091_v0  ;;  %v1096_v5 = vld [vmem:[%s1353_s1 + $0xc8] sm:$0xff] (!%p140_p2)   ;;  %v1100_v9 = vld [vmem:[%s1353_s1 + $0xd0] sm:$0xff] (!%p140_p2)  }
   0x7   : > { %v1093_v2 = vld [vmem:[%s1353_s1] sm:$0xff] (!%p140_p2)   ;;  %1031 = vmatprep.subr.bf16.mxu1 (!%p140_p2), %v1092_v1  ;;  %v1097_v6 = vld [vmem:[%s1353_s1 + $0x8] sm:$0xff] (!%p140_p2)   ;;  %v1101_v10 = vld [vmem:[%s1353_s1 + $0x10] sm:$0xff] (!%p140_p2)   ;;  %p165_p3 = scmp.lt.s32.totalorder (!%p140_p2), %s164_s19, 21 }
   0x8   : > { %v1094_v3 = vld [vmem:[%s1353_s1 + $0x80] sm:$0xff] (!%p140_p2)   ;;  %980 = vmatpush3.bf16.msra.mxu0 (!%p140_p2), %v1093_v2  ;;  %v1098_v7 = vld [vmem:[%s1353_s1 + $0x88] sm:$0xff] (!%p140_p2)   ;;  %v1102_v11 = vld [vmem:[%s1353_s1 + $0x90] sm:$0xff] (!%p140_p2)  }
   0x9   : > { %1032 = vmatpush3.bf16.msra.mxu1 (!%p140_p2), %v1094_v3  ;;  %981 = vmatprep.subr.bf16.mxu0 (!%p140_p2), %v1095_v4  ;;  %v1103_v12 = vld [vmem:[%s1353_s1 + $0x58] sm:$0xff] (!%p140_p2)   ;;  %v1107_v16 = vld [vmem:[%s1353_s1 + $0x60] sm:$0xff] (!%p140_p2)   ;;  %v1111_v20 = vld [vmem:[%s1353_s1 + $0x68] sm:$0xff] (!%p140_p2)  }
   0xa   : > { %1033 = vmatprep.subr.bf16.mxu1 (!%p140_p2), %v1096_v5  ;;  %v1104_v13 = vld [vmem:[%s1353_s1 + $0xd8] sm:$0xff] (!%p140_p2)   ;;  %v1108_v17 = vld [vmem:[%s1353_s1 + $0xe0] sm:$0xff] (!%p140_p2)   ;;  %v1112_v21 = vld [vmem:[%s1353_s1 + $0xe8] sm:$0xff] (!%p140_p2)  }
   0xb   : > { %v1105_v14 = vld [vmem:[%s1353_s1 + $0x18] sm:$0xff] (!%p140_p2)   ;;  %v1109_v18 = vld [vmem:[%s1353_s1 + $0x20] sm:$0xff] (!%p140_p2)   ;;  %v1113_v22 = vld [vmem:[%s1353_s1 + $0x28] sm:$0xff] (!%p140_p2)  }
   0xc   : > { %982 = vmatpush3.bf16.msra.mxu0 (!%p140_p2), %v1097_v6  ;;  %v1106_v15 = vld [vmem:[%s1353_s1 + $0x98] sm:$0xff] (!%p140_p2)   ;;  %v1110_v19 = vld [vmem:[%s1353_s1 + $0xa0] sm:$0xff] (!%p140_p2)   ;;  %v1114_v23 = vld [vmem:[%s1353_s1 + $0xa8] sm:$0xff] (!%p140_p2)  }
   0xd   : > { %1034 = vmatpush3.bf16.msra.mxu1 %v1098_v7  ;;  %983 = vmatprep.subr.bf16.mxu0 %v1099_v8  ;;  %s1357_s19 = smov (!%p165_p3, %s164_s19), 21  ;;  %v1115_v24 = vld [vmem:[%s1353_s1 + $0x70] sm:$0xff]   ;;  %v1119_v28 = vld [vmem:[%s1353_s1 + $0x78] sm:$0xff]   ;;  %v1324_v60 = vld [vmem:[%s1354_s2] ss:$0 sm:$0xff] }
   0xe   : > { %1035 = vmatprep.subr.bf16.mxu1 %v1100_v9  ;;  %v1116_v25 = vld [vmem:[%s1353_s1 + $0xf0] sm:$0xff]   ;;  %s938_s18 = sshll.u32 %s1357_s19, 4  ;;  %v1120_v29 = vld [vmem:[%s1353_s1 + $0xf8] sm:$0xff]   ;;  %s867_s7 = sshll.u32 %s1357_s19, 2 }
   0xf   : > { %v1117_v26 = vld [vmem:[%s1353_s1 + $0x30] sm:$0xff]   ;;  %s1291_s13 = scalar_lea.vmem %s1352_s0, %s938_s18  ;;  %v1121_v30 = vld [vmem:[%s1353_s1 + $0x38] sm:$0xff]   ;;  %s1332_s10 = scalar_lea.vmem %s1355_s3, %s867_s7 }
  0x10   : > { %984 = vmatpush3.bf16.msra.mxu0 %v1101_v10  ;;  %v1118_v27 = vld [vmem:[%s1353_s1 + $0xb0] sm:$0xff]   ;;  %v1122_v31 = vld [vmem:[%s1353_s1 + $0xb8] sm:$0xff]   ;;  %v198_v50 = vld [vmem:[%s1291_s13 + $0xa0] sm:$0xff] }
  0x11   : > { %1036 = vmatpush3.bf16.msra.mxu1 %v1102_v11  ;;  %985 = vmatprep.subr.bf16.mxu0 %v1103_v12  ;;  %v1123_v32 = vld [vmem:[%s1291_s13] ss:$16 sps:$4 sm:$0xff]   ;;  %v1125_v33 = vld [vmem:[%s1291_s13 + $0x4] ss:$16 sps:$4 sm:$0xff]   ;;  %v1126_v34 = vld [vmem:[%s1291_s13 + $0x8] ss:$16 sps:$4 sm:$0xff]   ;;  %v890_v54 = vcombine.high %v198_v50, %v198_v50  ;;  %v889_v56 = vcombine.low %v198_v50, %v198_v50 }
  0x12   : > { %1037 = vmatprep.subr.bf16.mxu1 %v1104_v13  ;;  %v1128_v35 = vld [vmem:[%s1291_s13 + $0xc] ss:$16 sps:$4 sm:$0xff]   ;;  %609 = vmatprep.mubr.bf16.mxu0 %v1125_v33  ;;  %v1129_v36 = vld [vmem:[%s1291_s13 + $0x24] ss:$16 sps:$4 sm:$0xff]   ;;  %v1133_v38 = vld [vmem:[%s1291_s13 + $0x20] ss:$16 sps:$4 sm:$0xff]  }
  0x13   : > { %689 = vmatprep.mubr.bf16.mxu1 %v1128_v35  ;;  %v1131_v37 = vld [vmem:[%s1291_s13 + $0x2c] ss:$16 sps:$4 sm:$0xff]   ;;  %v1134_v39 = vld [vmem:[%s1291_s13 + $0x28] ss:$16 sps:$4 sm:$0xff]   ;;  %v1135_v40 = vld [vmem:[%s1291_s13 + $0x44] ss:$16 sps:$4 sm:$0xff]  }
  0x14   : > { %986 = vmatpush3.bf16.msra.mxu0 %v1105_v14  ;;  %v1137_v41 = vld [vmem:[%s1291_s13 + $0x4c] ss:$16 sps:$4 sm:$0xff]   ;;  %v1139_v42 = vld [vmem:[%s1291_s13 + $0x40] ss:$16 sps:$4 sm:$0xff]   ;;  %v1140_v43 = vld [vmem:[%s1291_s13 + $0x48] ss:$16 sps:$4 sm:$0xff]  }
  0x15   : > { %1038 = vmatpush3.bf16.msra.mxu1 %v1106_v15  ;;  %987 = vmatprep.subr.bf16.mxu0 %v1107_v16  ;;  %v1141_v44 = vld [vmem:[%s1291_s13 + $0x64] ss:$16 sps:$4 sm:$0xff]   ;;  %v1143_v45 = vld [vmem:[%s1291_s13 + $0x6c] ss:$16 sps:$4 sm:$0xff]   ;;  %v1145_v46 = vld [vmem:[%s1291_s13 + $0x60] ss:$16 sps:$4 sm:$0xff]  }
  0x16   : > { %1039 = vmatprep.subr.bf16.mxu1 %v1108_v17  ;;  %v1146_v47 = vld [vmem:[%s1291_s13 + $0x68] ss:$16 sps:$4 sm:$0xff]   ;;  %v1147_v48 = vld [vmem:[%s1291_s13 + $0x84] ss:$16 sps:$4 sm:$0xff]   ;;  %v1149_v49 = vld [vmem:[%s1291_s13 + $0x8c] ss:$16 sps:$4 sm:$0xff]  }
  0x17   : > { %v199_v51 = vld [vmem:[%s1291_s13 + $0xa8] sm:$0xff]  ;;  %v1151_v52 = vld [vmem:[%s1291_s13 + $0x80] ss:$16 sps:$4 sm:$0xff]  }
  0x18   : > { %988 = vmatpush3.bf16.msra.mxu0 %v1109_v18  ;;  %v1152_v53 = vld [vmem:[%s1291_s13 + $0x88] ss:$16 sps:$4 sm:$0xff]   ;;  %v892_v55 = vcombine.high %v199_v51, %v199_v51  ;;  %v891_v57 = vcombine.low %v199_v51, %v199_v51 }
  0x19   : > { %1040 = vmatpush3.bf16.msra.mxu1 %v1110_v19  ;;  %989 = vmatprep.subr.bf16.mxu0 %v1111_v20 }
  0x1a   : > { %1041 = vmatprep.subr.bf16.mxu1 %v1112_v21 }
  0x1c   : > { %990 = vmatpush3.bf16.msra.mxu0 %v1113_v22 }
  0x1d   : > { %1042 = vmatpush3.bf16.msra.mxu1 %v1114_v23  ;;  %991 = vmatprep.subr.bf16.mxu0 %v1115_v24 }
  0x1e   : > { %1043 = vmatprep.subr.bf16.mxu1 %v1116_v25 }
  0x20   : > { %992 = vmatpush3.bf16.msra.mxu0 %v1117_v26 }
  0x21   : > { %1044 = vmatpush3.bf16.msra.mxu1 %v1118_v27  ;;  %993 = vmatprep.subr.bf16.mxu0 %v1119_v28 }
  0x22   : > { %1045 = vmatprep.subr.bf16.mxu1 %v1120_v29 }
  0x24   : > { %994 = vmatpush3.bf16.msra.mxu0 %v1121_v30 }
  0x25   : > { %1046 = vmatpush3.bf16.msra.mxu1 %v1122_v31 }
  0x27   : > { %610 = vmatmul.mubr.bf16.vlgmr.msra.gmra.mrb[0].mxu0 %v1123_v32 }
  0x28   : > { %690 = vmatmul.mubr.bf16.vlgmr.msra.gmra.mrb[0].mxu1 %v1126_v34  ;;  %617 = vmatprep.mubr.bf16.mxu0 %v1129_v36 }
  0x29   : > { %697 = vmatprep.mubr.bf16.mxu1 %v1131_v37 }
  0x2f   : > { %618 = vmatmul.mubr.bf16.gmra.mrb[4].mxu0 %v1133_v38 }
  0x30   : > { %698 = vmatmul.mubr.bf16.gmra.mrb[4].mxu1 %v1134_v39  ;;  %625 = vmatprep.mubr.bf16.mxu0 %v1135_v40 }
  0x31   : > { %705 = vmatprep.mubr.bf16.mxu1 %v1137_v41 }
  0x37   : > { %626 = vmatmul.mubr.bf16.gmra.mrb[8].mxu0 %v1139_v42 }
  0x38   : > { %706 = vmatmul.mubr.bf16.gmra.mrb[8].mxu1 %v1140_v43  ;;  %633 = vmatprep.mubr.bf16.mxu0 %v1141_v44 }
  0x39   : > { %713 = vmatprep.mubr.bf16.mxu1 %v1143_v45 }
  0x3f   : > { %634 = vmatmul.mubr.bf16.gmra.mrb[12].mxu0 %v1145_v46 }
  0x40   : > { %714 = vmatmul.mubr.bf16.gmra.mrb[12].mxu1 %v1146_v47  ;;  %641 = vmatprep.mubr.bf16.mxu0 %v1147_v48 }
  0x41   : > { %721 = vmatprep.mubr.bf16.mxu1 %v1149_v49 }
  0x47   : > { %642 = vmatmul.mubr.bf16.gmra.mrb[16].mxu0 %v1151_v52 }
  0x48   : > { %722 = vmatmul.mubr.bf16.gmra.mrb[16].mxu1 %v1152_v53  ;;  %649 = vmatprep.mubr.bf16.mxu0 %v890_v54 }
  0x49   : > { %729 = vmatprep.mubr.bf16.mxu1 %v892_v55 }
  0x4f   : > { %650 = vmatmul.mubr.bf16.gmra.mrb[20].mxu0 %v889_v56 }
  0x50   : > { %730 = vmatmul.mubr.bf16.gmra.mrb[20].mxu1 %v891_v57 }
  0xfa   : > { %v995_v58 = vpop.f32.mrb[0].mxu0 }
  0xfb   : > { %v1047_v59 = vpop.f32.mrb[0].mxu1  ;;  %v996_v61 = vpop.f32.mrb[1].mxu0 }
  0xfc   : > { %v997_v62 = vadd.f32 %v996_v61, %v995_v58  ;;  %v1048_v63 = vpop.f32.mrb[1].mxu1  ;;  %v998_v0 = vpop.f32.mrb[2].mxu0 }
  0xfd   : > { %v1049_v1 = vadd.f32 %v1048_v63, %v1047_v59  ;;  %v1050_v2 = vpop.f32.mrb[2].mxu1  ;;  %v999_v3 = vpop.f32.mrb[3].mxu0 }
  0xfe   : > { %v612_v4 = vadd.f32 %v997_v62, %v1324_v60  ;;  %v1000_v5 = vadd.f32 %v999_v3, %v998_v0  ;;  %v1051_v6 = vpop.f32.mrb[3].mxu1 }
  0xff   : > { %v1052_v7 = vadd.f32 %v1051_v6, %v1050_v2 }
 0x100   : > { %v692_v8 = vadd.f32 %v1049_v1, %v612_v4  ;;  %v615_v9 = vadd.f32 %v1000_v5, %v1324_v60 }
 0x102   : > { %v695_v10 = vadd.f32 %v1052_v7, %v615_v9  ;;  %v1001_v11 = vpop.f32.mrb[4].mxu0  ;;  %v737_v14 = vmax.f32 %v692_v8, 0.0 }
 0x103   : > { %v1053_v12 = vpop.f32.mrb[4].mxu1  ;;  %v1002_v13 = vpop.f32.mrb[5].mxu0 }
 0x104   : > { %v738_v15 = vmax.f32 %v695_v10, 0.0  ;;  %v1003_v16 = vadd.f32 %v1002_v13, %v1001_v11  ;;  %v1054_v17 = vpop.f32.mrb[5].mxu1  ;;  %v1004_v18 = vpop.f32.mrb[6].mxu0 }
 0x105   : > { %v1055_v19 = vadd.f32 %v1054_v17, %v1053_v12  ;;  %v1056_v20 = vpop.f32.mrb[6].mxu1  ;;  %v1005_v21 = vpop.f32.mrb[7].mxu0 }
 0x106   : > { %v953_v22 = vpack.c.bf16 %v738_v15, %v737_v14  ;;  %v620_v23 = vadd.f32 %v1003_v16, %v1324_v60  ;;  %v1006_v24 = vadd.f32 %v1005_v21, %v1004_v18  ;;  %v1057_v25 = vpop.f32.mrb[7].mxu1 }
 0x107   : > { %v1058_v26 = vadd.f32 %v1057_v25, %v1056_v20 }
 0x108   : > { %954 = vst [vmem:[%s1332_s10] sm:$0xff] %v953_v22   ;;  %v700_v27 = vadd.f32 %v1055_v19, %v620_v23  ;;  %v623_v28 = vadd.f32 %v1006_v24, %v1324_v60 }
 0x10a   : > { %v703_v29 = vadd.f32 %v1058_v26, %v623_v28  ;;  %v1007_v30 = vpop.f32.mrb[8].mxu0  ;;  %v739_v33 = vmax.f32 %v700_v27, 0.0 }
 0x10b   : > { %v1059_v31 = vpop.f32.mrb[8].mxu1  ;;  %v1008_v32 = vpop.f32.mrb[9].mxu0 }
 0x10c   : > { %v740_v34 = vmax.f32 %v703_v29, 0.0  ;;  %v1009_v35 = vadd.f32 %v1008_v32, %v1007_v30  ;;  %v1060_v36 = vpop.f32.mrb[9].mxu1  ;;  %v1010_v37 = vpop.f32.mrb[10].mxu0 }
 0x10d   : > { %v1061_v38 = vadd.f32 %v1060_v36, %v1059_v31  ;;  %v1062_v39 = vpop.f32.mrb[10].mxu1  ;;  %v1011_v40 = vpop.f32.mrb[11].mxu0 }
 0x10e   : > { %v958_v41 = vpack.c.bf16 %v740_v34, %v739_v33  ;;  %v628_v42 = vadd.f32 %v1009_v35, %v1324_v60  ;;  %v1012_v43 = vadd.f32 %v1011_v40, %v1010_v37  ;;  %v1063_v44 = vpop.f32.mrb[11].mxu1 }
 0x10f   : > { %v1064_v45 = vadd.f32 %v1063_v44, %v1062_v39 }
 0x110   : > { %975 = vst [vmem:[%s1332_s10 + $0x8] sm:$0xff] %v958_v41   ;;  %v708_v46 = vadd.f32 %v1061_v38, %v628_v42  ;;  %v631_v47 = vadd.f32 %v1012_v43, %v1324_v60 }
 0x112   : > { %v711_v48 = vadd.f32 %v1064_v45, %v631_v47  ;;  %v1013_v49 = vpop.f32.mrb[12].mxu0  ;;  %v741_v52 = vmax.f32 %v708_v46, 0.0 }
 0x113   : > { %v1065_v50 = vpop.f32.mrb[12].mxu1  ;;  %v1014_v51 = vpop.f32.mrb[13].mxu0 }
 0x114   : > { %v742_v53 = vmax.f32 %v711_v48, 0.0  ;;  %v1015_v54 = vadd.f32 %v1014_v51, %v1013_v49  ;;  %v1066_v55 = vpop.f32.mrb[13].mxu1  ;;  %v1016_v56 = vpop.f32.mrb[14].mxu0 }
 0x115   : > { %v1067_v57 = vadd.f32 %v1066_v55, %v1065_v50  ;;  %v1068_v58 = vpop.f32.mrb[14].mxu1  ;;  %v1017_v59 = vpop.f32.mrb[15].mxu0 }
 0x116   : > { %v963_v61 = vpack.c.bf16 %v742_v53, %v741_v52  ;;  %v636_v62 = vadd.f32 %v1015_v54, %v1324_v60  ;;  %v1018_v63 = vadd.f32 %v1017_v59, %v1016_v56  ;;  %v1069_v0 = vpop.f32.mrb[15].mxu1 }
 0x117   : > { %v1070_v1 = vadd.f32 %v1069_v0, %v1068_v58 }
 0x118   : > { %976 = vst [vmem:[%s1332_s10 + $0x10] sm:$0xff] %v963_v61   ;;  %v716_v2 = vadd.f32 %v1067_v57, %v636_v62  ;;  %v639_v3 = vadd.f32 %v1018_v63, %v1324_v60 }
 0x11a   : > { %v719_v4 = vadd.f32 %v1070_v1, %v639_v3  ;;  %v1019_v5 = vpop.f32.mrb[16].mxu0  ;;  %v743_v8 = vmax.f32 %v716_v2, 0.0 }
 0x11b   : > { %v1071_v6 = vpop.f32.mrb[16].mxu1  ;;  %v1020_v7 = vpop.f32.mrb[17].mxu0 }
 0x11c   : > { %v744_v9 = vmax.f32 %v719_v4, 0.0  ;;  %v1021_v10 = vadd.f32 %v1020_v7, %v1019_v5  ;;  %v1072_v11 = vpop.f32.mrb[17].mxu1  ;;  %v1022_v12 = vpop.f32.mrb[18].mxu0 }
 0x11d   : > { %v1073_v13 = vadd.f32 %v1072_v11, %v1071_v6  ;;  %v1074_v14 = vpop.f32.mrb[18].mxu1  ;;  %v1023_v15 = vpop.f32.mrb[19].mxu0 }
 0x11e   : > { %v968_v16 = vpack.c.bf16 %v744_v9, %v743_v8  ;;  %v644_v17 = vadd.f32 %v1021_v10, %v1324_v60  ;;  %v1024_v18 = vadd.f32 %v1023_v15, %v1022_v12  ;;  %v1075_v19 = vpop.f32.mrb[19].mxu1 }
 0x11f   : > { %v1076_v20 = vadd.f32 %v1075_v19, %v1074_v14 }
 0x120   : > { %977 = vst [vmem:[%s1332_s10 + $0x18] sm:$0xff] %v968_v16   ;;  %v724_v21 = vadd.f32 %v1073_v13, %v644_v17  ;;  %v647_v22 = vadd.f32 %v1024_v18, %v1324_v60 }
 0x122   : > { %v727_v23 = vadd.f32 %v1076_v20, %v647_v22  ;;  %v1025_v24 = vpop.f32.mrb[20].mxu0  ;;  %v745_v27 = vmax.f32 %v724_v21, 0.0 }
 0x123   : > { %v1077_v25 = vpop.f32.mrb[20].mxu1  ;;  %v1026_v26 = vpop.f32.mrb[21].mxu0 }
 0x124   : > { %v746_v28 = vmax.f32 %v727_v23, 0.0  ;;  %v1027_v29 = vadd.f32 %v1026_v26, %v1025_v24  ;;  %v1078_v30 = vpop.f32.mrb[21].mxu1  ;;  %v1028_v31 = vpop.f32.mrb[22].mxu0 }
 0x125   : > { %v1079_v32 = vadd.f32 %v1078_v30, %v1077_v25  ;;  %v1080_v33 = vpop.f32.mrb[22].mxu1  ;;  %v1029_v34 = vpop.f32.mrb[23].mxu0 }
 0x126   : > { %v973_v35 = vpack.c.bf16 %v746_v28, %v745_v27  ;;  %v652_v36 = vadd.f32 %v1027_v29, %v1324_v60  ;;  %v1081_v37 = vpop.f32.mrb[23].mxu1 }
 0x128   : > { %978 = vst [vmem:[%s1332_s10 + $0x20] sm:$0xff] %v973_v35   ;;  %v732_v38 = vadd.f32 %v1079_v32, %v652_v36 }
 0x12a   : > { %v747_v39 = vmax.f32 %v732_v38, 0.0 }
 0x12c   : > { %v949_v40 = vpack.c.bf16 %v747_v39, %v747_v39 }
 0x12e   : > { %803 = vst [vmem:[%s1332_s10 + $0x28] sm:$0xf] %v949_v40 }
 0x12f PF: > { %s13_s12 = sadd.s32 1, %s1163_s12  }
 0x130   : > { %p10_p4 = scmp.ge.s32.totalorder %s13_s12, 4  }
 0x132   :  { %12 = sbr.rel (!%p10_p4) target bundleno = 1 (0x1), region = 62 }

// kernel: critic_cnn_forward.6
= control target key start
LH: loop header
LB: loop body
LE: loop exit
PB: predicated region body
PF: predicated region fallthrough
CT: control target
= control target key end

     0   :  { %v1319_v24 = vmov 0.0   ;;  %vm1320_vm0 = vmmov 0   ;;  %s1642_s1 = inlined_call_operand.vmem [shape: bf16[640,128], index: 1, kind: input, shape index: {}]   ;;  %s1643_s0 = inlined_call_operand.vmem [shape: bf16[104,640], index: 0, kind: input, shape index: {}]   ;;  %s1644_s2 = inlined_call_operand.vmem [shape: f32[1,128], index: 2, kind: input, shape index: {}]   ;;  %s1645_s3 = inlined_call_operand.vmem [shape: bf16[104,128], index: 3, kind: output, shape index: {}]  }
   0x1   :  { %v1232_v0 = vld [vmem:[%s1642_s1 + $0x40] sm:$0xff]   ;;  %v1234_v2 = vld [vmem:[%s1642_s1 + $0x48] sm:$0xff]   ;;  %v1236_v4 = vld [vmem:[%s1642_s1 + $0x50] sm:$0xff]  }
   0x2   :  { %v1233_v1 = vld [vmem:[%s1642_s1] sm:$0xff]   ;;  %1214 = vmatprep.subr.bf16.mxu1 %v1232_v0  ;;  %1039 = vmatprep.subr.bf16.mxu0 %v1232_v0  ;;  %v1235_v3 = vld [vmem:[%s1642_s1 + $0x8] sm:$0xff]   ;;  %v1237_v5 = vld [vmem:[%s1642_s1 + $0x10] sm:$0xff]  }
   0x3   :  { %1222 = vmatpush3.bf16.msra.mxu1 %v1233_v1  ;;  %1040 = vmatpush3.bf16.msra.mxu0 %v1233_v1  ;;  %v1238_v6 = vld [vmem:[%s1642_s1 + $0x58] sm:$0xff]   ;;  %v1240_v8 = vld [vmem:[%s1642_s1 + $0x60] sm:$0xff]   ;;  %v1242_v10 = vld [vmem:[%s1642_s1 + $0x68] sm:$0xff]  }
   0x4   :  { %1215 = vmatprep.subr.bf16.mxu1 %v1234_v2  ;;  %1041 = vmatprep.subr.bf16.mxu0 %v1234_v2  ;;  %v1239_v7 = vld [vmem:[%s1642_s1 + $0x18] sm:$0xff]   ;;  %v1241_v9 = vld [vmem:[%s1642_s1 + $0x20] sm:$0xff]   ;;  %v1243_v12 = vld [vmem:[%s1642_s1 + $0x28] sm:$0xff]  }
   0x5   :  { %v1250_v11 = vld [vmem:[%s1643_s0 + $0xa4] ss:$20 sps:$4 sm:$0xff]   ;;  %v1244_v14 = vld [vmem:[%s1642_s1 + $0x70] sm:$0xff]   ;;  %v1257_v23 = vld [vmem:[%s1642_s1 + $0xc8] sm:$0xff]  }
   0x6   :  { %v1254_v13 = vld [vmem:[%s1643_s0 + $0x4] ss:$20 sps:$4 sm:$0xff]   ;;  %619 = vmatprep.mubr.bf16.mxu1 %v1250_v11  ;;  %v1245_v15 = vld [vmem:[%s1642_s1 + $0x30] sm:$0xff]   ;;  %v1261_v25 = vld [vmem:[%s1643_s0 + $0x2c] ss:$20 sps:$4 sm:$0xff]  }
   0x7   :  { %1223 = vmatpush3.bf16.msra.mxu1 %v1235_v3  ;;  %1042 = vmatpush3.bf16.msra.mxu0 %v1235_v3  ;;  %v1246_v16 = vld [vmem:[%s1642_s1 + $0x78] sm:$0xff]   ;;  %v1251_v18 = vld [vmem:[%s1642_s1 + $0xc0] sm:$0xff]   ;;  %v1258_v27 = vld [vmem:[%s1642_s1 + $0x88] sm:$0xff]  }
   0x8   :  { %1216 = vmatprep.subr.bf16.mxu1 %v1236_v4  ;;  %1043 = vmatprep.subr.bf16.mxu0 %v1236_v4  ;;  %v1247_v17 = vld [vmem:[%s1642_s1 + $0x38] sm:$0xff]   ;;  %v1248_v19 = vld [vmem:[%s1643_s0 + $0xa0] ss:$20 sps:$4 sm:$0xff]   ;;  %v1259_v28 = vld [vmem:[%s1642_s1 + $0x108] sm:$0xff]  }
   0x9   :  { %587 = vmatprep.mubr.bf16.mxu0 %v1254_v13  ;;  %v1252_v20 = vld [vmem:[%s1643_s0] ss:$20 sps:$4 sm:$0xff]   ;;  %v1264_v31 = vld [vmem:[%s1643_s0 + $0x28] ss:$20 sps:$4 sm:$0xff]   ;;  %v1276_v42 = vld [vmem:[%s1643_s0 + $0x50] ss:$20 sps:$4 sm:$0xff]  }
   0xa   :  { %v1255_v21 = vld [vmem:[%s1642_s1 + $0x80] sm:$0xff]   ;;  %v1260_v29 = vld [vmem:[%s1642_s1 + $0xd0] sm:$0xff]   ;;  %v1269_v32 = vld [vmem:[%s1643_s0 + $0xc8] ss:$20 sps:$4 sm:$0xff]  }
   0xb   :  { %1224 = vmatpush3.bf16.msra.mxu1 %v1237_v5  ;;  %1044 = vmatpush3.bf16.msra.mxu0 %v1237_v5  ;;  %v1256_v22 = vld [vmem:[%s1642_s1 + $0x100] sm:$0xff]   ;;  %v1263_v30 = vld [vmem:[%s1642_s1 + $0x90] sm:$0xff]   ;;  %v1268_v35 = vld [vmem:[%s1642_s1 + $0xd8] sm:$0xff]  }
   0xc   :  { %1217 = vmatprep.subr.bf16.mxu1 %v1238_v6  ;;  %1045 = vmatprep.subr.bf16.mxu0 %v1238_v6  ;;  %v1266_v26 = vld [vmem:[%s1643_s0 + $0xcc] ss:$20 sps:$4 sm:$0xff]   ;;  %v51_v33 = vld [vmem:[%s1643_s0 + $0xf0] sm:$0xff]  ;;  %v1270_v38 = vld [vmem:[%s1642_s1 + $0x98] sm:$0xff]  }
   0xd   :  { %v1265_v34 = vld [vmem:[%s1642_s1 + $0x110] sm:$0xff]   ;;  %v934_v37 = vcombine.high %v51_v33, %v51_v33  ;;  %v1271_v39 = vld [vmem:[%s1642_s1 + $0x118] sm:$0xff]   ;;  %v1272_v40 = vld [vmem:[%s1642_s1 + $0xe0] sm:$0xff]   ;;  %v933_v43 = vcombine.low %v51_v33, %v51_v33 }
   0xe   :  { %v1273_v36 = vld [vmem:[%s1643_s0 + $0x54] ss:$20 sps:$4 sm:$0xff]   ;;  %v1275_v41 = vld [vmem:[%s1642_s1 + $0xa0] sm:$0xff]   ;;  %v1284_v46 = vld [vmem:[%s1643_s0 + $0x7c] ss:$20 sps:$4 sm:$0xff]  }
   0xf   :  { %1225 = vmatpush3.bf16.msra.mxu1 %v1239_v7  ;;  %1046 = vmatpush3.bf16.msra.mxu0 %v1239_v7  ;;  %v1277_v44 = vld [vmem:[%s1642_s1 + $0x120] sm:$0xff]   ;;  %v1279_v45 = vld [vmem:[%s1642_s1 + $0xe8] sm:$0xff]   ;;  %v1283_v50 = vld [vmem:[%s1642_s1 + $0xf0] sm:$0xff]  }
  0x10   :  { %1218 = vmatprep.subr.bf16.mxu1 %v1240_v8  ;;  %1047 = vmatprep.subr.bf16.mxu0 %v1240_v8  ;;  %v1293_v47 = vld [vmem:[%s1643_s0 + $0xc] ss:$20 sps:$4 sm:$0xff]   ;;  %v1286_v51 = vld [vmem:[%s1642_s1 + $0xb0] sm:$0xff]   ;;  %v1289_v54 = vld [vmem:[%s1642_s1 + $0xf8] sm:$0xff]  }
  0x11   :  { %v1281_v48 = vld [vmem:[%s1642_s1 + $0xa8] sm:$0xff]   ;;  %v1288_v53 = vld [vmem:[%s1642_s1 + $0x130] sm:$0xff]   ;;  %v1290_v55 = vld [vmem:[%s1642_s1 + $0xb8] sm:$0xff]  }
  0x12   :  { %v1282_v49 = vld [vmem:[%s1642_s1 + $0x128] sm:$0xff]   ;;  %v1294_v56 = vld [vmem:[%s1642_s1 + $0x138] sm:$0xff]   ;;  %v1295_v58 = vld [vmem:[%s1643_s0 + $0x10] ss:$20 sps:$4 sm:$0xff]  }
  0x13   :  { %1226 = vmatpush3.bf16.msra.mxu1 %v1241_v9  ;;  %1048 = vmatpush3.bf16.msra.mxu0 %v1241_v9  ;;  %v1287_v52 = vld [vmem:[%s1643_s0 + $0x78] ss:$20 sps:$4 sm:$0xff]   ;;  %v1291_v57 = vld [vmem:[%s1643_s0 + $0x8] ss:$20 sps:$4 sm:$0xff]   ;;  %v1298_v60 = vld [vmem:[%s1643_s0 + $0x30] ss:$20 sps:$4 sm:$0xff]  }
  0x14   :  { %1219 = vmatprep.subr.bf16.mxu1 %v1242_v10  ;;  %1049 = vmatprep.subr.bf16.mxu0 %v1242_v10  ;;  %v1296_v59 = vld [vmem:[%s1643_s0 + $0x34] ss:$20 sps:$4 sm:$0xff]   ;;  %v1299_v61 = vld [vmem:[%s1643_s0 + $0x38] ss:$20 sps:$4 sm:$0xff]   ;;  %v1300_v62 = vld [vmem:[%s1643_s0 + $0x5c] ss:$20 sps:$4 sm:$0xff]  }
  0x15   :  { %v1302_v63 = vld [vmem:[%s1643_s0 + $0x58] ss:$20 sps:$4 sm:$0xff]   ;;  %v1303_v0 = vld [vmem:[%s1643_s0 + $0x60] ss:$20 sps:$4 sm:$0xff]   ;;  %v1307_v3 = vld [vmem:[%s1643_s0 + $0x88] ss:$20 sps:$4 sm:$0xff]  }
  0x16   :  { %v1304_v1 = vld [vmem:[%s1643_s0 + $0x84] ss:$20 sps:$4 sm:$0xff]   ;;  %v1306_v2 = vld [vmem:[%s1643_s0 + $0x80] ss:$20 sps:$4 sm:$0xff]   ;;  %v1310_v5 = vld [vmem:[%s1643_s0 + $0xa8] ss:$20 sps:$4 sm:$0xff]  }
  0x17   :  { %1227 = vmatpush3.bf16.msra.mxu1 %v1243_v12  ;;  %1050 = vmatpush3.bf16.msra.mxu0 %v1243_v12  ;;  %v1308_v4 = vld [vmem:[%s1643_s0 + $0xac] ss:$20 sps:$4 sm:$0xff]   ;;  %v1311_v6 = vld [vmem:[%s1643_s0 + $0xb0] ss:$20 sps:$4 sm:$0xff]   ;;  %v1312_v7 = vld [vmem:[%s1643_s0 + $0xd4] ss:$20 sps:$4 sm:$0xff]  }
  0x18   :  { %1220 = vmatprep.subr.bf16.mxu1 %v1244_v14  ;;  %1051 = vmatprep.subr.bf16.mxu0 %v1244_v14  ;;  %v52_v8 = vld [vmem:[%s1643_s0 + $0xf8] sm:$0xff]  ;;  %v1314_v9 = vld [vmem:[%s1643_s0 + $0xd0] ss:$20 sps:$4 sm:$0xff]   ;;  %v1318_v13 = vld [vmem:[%s1643_s0 + $0x100] ss:$0 sps:$4 sm:$0xff]  }
  0x19   :  { %v1315_v10 = vld [vmem:[%s1643_s0 + $0xd8] ss:$20 sps:$4 sm:$0xff]   ;;  %v936_v11 = vcombine.high %v52_v8, %v52_v8  ;;  %v935_v12 = vcombine.low %v52_v8, %v52_v8 }
  0x1b   :  { %1228 = vmatpush3.bf16.msra.mxu1 %v1245_v15  ;;  %1052 = vmatpush3.bf16.msra.mxu0 %v1245_v15 }
  0x1c   :  { %1221 = vmatprep.subr.bf16.mxu1 %v1246_v16  ;;  %1053 = vmatprep.subr.bf16.mxu0 %v1246_v16 }
  0x1f   :  { %1229 = vmatpush3.bf16.msra.mxu1 %v1247_v17  ;;  %1054 = vmatpush3.bf16.msra.mxu0 %v1247_v17 }
  0x20   :  { %1097 = vmatprep.subr.bf16.mxu1 %v1251_v18  ;;  %1170 = vmatprep.subr.bf16.mxu0 %v1319_v24 }
  0x22   :  { %620 = vmatmul.mubr.bf16.vlgmr.msra.gmra.mrb[0].mxu1 %v1248_v19  ;;  %588 = vmatmul.mubr.bf16.vlgmr.msra.gmra.mrb[0].mxu0 %v1252_v20 }
  0x23   :  { %1098 = vmatpush3.bf16.msra.mxu1 %v1255_v21  ;;  %1171 = vmatpush3.bf16.msra.mxu0 %v1256_v22 }
  0x24   :  { %1099 = vmatprep.subr.bf16.mxu1 %v1257_v23  ;;  %1172 = vmatprep.subr.bf16.mxu0 %v1319_v24 }
  0x25   :  { %595 = vmatprep.mubr.bf16.mxu0 %v1261_v25  ;;  %627 = vmatprep.mubr.bf16.mxu1 %v1266_v26 }
  0x27   :  { %1100 = vmatpush3.bf16.msra.mxu1 %v1258_v27  ;;  %1173 = vmatpush3.bf16.msra.mxu0 %v1259_v28 }
  0x28   :  { %1101 = vmatprep.subr.bf16.mxu1 %v1260_v29  ;;  %1174 = vmatprep.subr.bf16.mxu0 %v1319_v24 }
  0x2a   :  { %596 = vmatmul.mubr.bf16.gmra.mrb[4].mxu0 %v1264_v31  ;;  %628 = vmatmul.mubr.bf16.gmra.mrb[4].mxu1 %v1269_v32 }
  0x2b   :  { %1102 = vmatpush3.bf16.msra.mxu1 %v1263_v30  ;;  %1175 = vmatpush3.bf16.msra.mxu0 %v1265_v34 }
  0x2c   :  { %1103 = vmatprep.subr.bf16.mxu1 %v1268_v35  ;;  %1176 = vmatprep.subr.bf16.mxu0 %v1319_v24 }
  0x2d   :  { %603 = vmatprep.mubr.bf16.mxu0 %v1273_v36  ;;  %635 = vmatprep.mubr.bf16.mxu1 %v934_v37 }
  0x2f   :  { %1104 = vmatpush3.bf16.msra.mxu1 %v1270_v38  ;;  %1177 = vmatpush3.bf16.msra.mxu0 %v1271_v39 }
  0x30   :  { %1105 = vmatprep.subr.bf16.mxu1 %v1272_v40  ;;  %1178 = vmatprep.subr.bf16.mxu0 %v1319_v24 }
  0x32   :  { %604 = vmatmul.mubr.bf16.gmra.mrb[8].mxu0 %v1276_v42  ;;  %636 = vmatmul.mubr.bf16.gmra.mrb[8].mxu1 %v933_v43 }
  0x33   :  { %1106 = vmatpush3.bf16.msra.mxu1 %v1275_v41  ;;  %1179 = vmatpush3.bf16.msra.mxu0 %v1277_v44 }
  0x34   :  { %1107 = vmatprep.subr.bf16.mxu1 %v1279_v45  ;;  %1180 = vmatprep.subr.bf16.mxu0 %v1319_v24 }
  0x35   :  { %611 = vmatprep.mubr.bf16.mxu0 %v1284_v46  ;;  %675 = vmatprep.mubr.bf16.mxu1 %v1293_v47 }
  0x37   :  { %1108 = vmatpush3.bf16.msra.mxu1 %v1281_v48  ;;  %1181 = vmatpush3.bf16.msra.mxu0 %v1282_v49 }
  0x38   :  { %1109 = vmatprep.subr.bf16.mxu1 %v1283_v50  ;;  %1182 = vmatprep.subr.bf16.mxu0 %v1319_v24 }
  0x3a   :  { %612 = vmatmul.mubr.bf16.gmra.mrb[12].mxu0 %v1287_v52 }
  0x3b   :  { %1110 = vmatpush3.bf16.msra.mxu1 %v1286_v51  ;;  %1183 = vmatpush3.bf16.msra.mxu0 %v1288_v53 }
  0x3c   :  { %1111 = vmatprep.subr.bf16.mxu1 %v1289_v54  ;;  %1184 = vmatprep.subr.bf16.mxu0 %v1319_v24 }
  0x3d   :  { %1186 = vmatprep.mubr.msk.bf16.mxu0 %vm1320_vm0, %v1319_v24 }
  0x3f   :  { %1112 = vmatpush3.bf16.msra.mxu1 %v1290_v55  ;;  %1185 = vmatpush3.bf16.msra.mxu0 %v1294_v56 }
  0x42   :  { %676 = vmatmul.mubr.bf16.vlgmr.msra.gmra.mrb[12].mxu1 %v1291_v57  ;;  %1187 = vmatmul.mubr.bf16.vlgmr.msra.gmra.mrb[16].mxu0 %v1295_v58  ;;  %v1599_v57 = vld [vmem:[%s1644_s2] ss:$0 sm:$0xff] }
  0x43   :  { %683 = vmatprep.mubr.bf16.mxu1 %v1296_v59  ;;  %1190 = vmatprep.mubr.msk.bf16.mxu0 %vm1320_vm0, %v1319_v24 }
  0x4a   :  { %684 = vmatmul.mubr.bf16.gmra.mrb[16].mxu1 %v1298_v60  ;;  %1191 = vmatmul.mubr.bf16.gmra.mrb[20].mxu0 %v1299_v61 }
  0x4b   :  { %691 = vmatprep.mubr.bf16.mxu1 %v1300_v62  ;;  %1194 = vmatprep.mubr.msk.bf16.mxu0 %vm1320_vm0, %v1319_v24 }
  0x52   :  { %692 = vmatmul.mubr.bf16.gmra.mrb[20].mxu1 %v1302_v63  ;;  %1195 = vmatmul.mubr.bf16.gmra.mrb[24].mxu0 %v1303_v0 }
  0x53   :  { %699 = vmatprep.mubr.bf16.mxu1 %v1304_v1  ;;  %1198 = vmatprep.mubr.msk.bf16.mxu0 %vm1320_vm0, %v1319_v24 }
  0x5a   :  { %700 = vmatmul.mubr.bf16.gmra.mrb[24].mxu1 %v1306_v2  ;;  %1199 = vmatmul.mubr.bf16.gmra.mrb[28].mxu0 %v1307_v3 }
  0x5b   :  { %707 = vmatprep.mubr.bf16.mxu1 %v1308_v4  ;;  %1202 = vmatprep.mubr.msk.bf16.mxu0 %vm1320_vm0, %v1319_v24 }
  0x62   :  { %708 = vmatmul.mubr.bf16.gmra.mrb[28].mxu1 %v1310_v5  ;;  %1203 = vmatmul.mubr.bf16.gmra.mrb[32].mxu0 %v1311_v6 }
  0x63   :  { %715 = vmatprep.mubr.bf16.mxu1 %v1312_v7  ;;  %1206 = vmatprep.mubr.msk.bf16.mxu0 %vm1320_vm0, %v1319_v24 }
  0x6a   :  { %716 = vmatmul.mubr.bf16.gmra.mrb[32].mxu1 %v1314_v9  ;;  %1207 = vmatmul.mubr.bf16.gmra.mrb[36].mxu0 %v1315_v10 }
  0x6b   :  { %723 = vmatprep.mubr.bf16.mxu1 %v936_v11  ;;  %1210 = vmatprep.mubr.msk.bf16.mxu0 %vm1320_vm0, %v1319_v24 }
  0x72   :  { %724 = vmatmul.mubr.bf16.gmra.mrb[36].mxu1 %v935_v12  ;;  %1211 = vmatmul.mubr.bf16.gmra.mrb[40].mxu0 %v1318_v13 }
  0xf5   :  { %v1079_v14 = vpop.f32.mrb[0].mxu1  ;;  %v1055_v15 = vpop.f32.mrb[0].mxu0 }
  0xf6   :  { %v1080_v16 = vpop.f32.mrb[1].mxu1  ;;  %v1056_v17 = vpop.f32.mrb[1].mxu0 }
  0xf7   :  { %v1582_v18 = vadd.f32 %v1080_v16, %v1079_v14  ;;  %v1082_v19 = vpop.f32.mrb[2].mxu1  ;;  %v1057_v20 = vadd.f32 %v1056_v17, %v1055_v15  ;;  %v1058_v21 = vpop.f32.mrb[2].mxu0 }
  0xf8   :  { %v1083_v22 = vpop.f32.mrb[3].mxu1  ;;  %v1059_v23 = vpop.f32.mrb[3].mxu0 }
  0xf9   :  { %v1584_v25 = vadd.f32 %v1083_v22, %v1082_v19  ;;  %v1060_v24 = vadd.f32 %v1059_v23, %v1058_v21  ;;  %v590_v60 = vadd.f32 %v1057_v20, %v1599_v57 }
  0xfb   :  { %v593_v2 = vadd.f32 %v1060_v24, %v1599_v57 }
  0xfd   :  { %v1061_v26 = vpop.f32.mrb[4].mxu0  ;;  %v1085_v27 = vpop.f32.mrb[4].mxu1 }
  0xfe   :  { %v1062_v28 = vpop.f32.mrb[5].mxu0  ;;  %v1086_v29 = vpop.f32.mrb[5].mxu1 }
  0xff   :  { %v1063_v30 = vadd.f32 %v1062_v28, %v1061_v26  ;;  %v1064_v31 = vpop.f32.mrb[6].mxu0  ;;  %v1586_v32 = vadd.f32 %v1086_v29, %v1085_v27  ;;  %v1088_v33 = vpop.f32.mrb[6].mxu1 }
 0x100   :  { %v1065_v34 = vpop.f32.mrb[7].mxu0  ;;  %v1089_v35 = vpop.f32.mrb[7].mxu1 }
 0x101   :  { %v1066_v36 = vadd.f32 %v1065_v34, %v1064_v31  ;;  %v1588_v37 = vadd.f32 %v1089_v35, %v1088_v33  ;;  %v598_v12 = vadd.f32 %v1063_v30, %v1599_v57 }
 0x103   :  { %v601_v21 = vadd.f32 %v1066_v36, %v1599_v57 }
 0x105   :  { %v1067_v38 = vpop.f32.mrb[8].mxu0  ;;  %v1091_v39 = vpop.f32.mrb[8].mxu1 }
 0x106   :  { %v1068_v40 = vpop.f32.mrb[9].mxu0  ;;  %v1092_v41 = vpop.f32.mrb[9].mxu1 }
 0x107   :  { %v1069_v42 = vadd.f32 %v1068_v40, %v1067_v38  ;;  %v1070_v43 = vpop.f32.mrb[10].mxu0  ;;  %v1590_v44 = vadd.f32 %v1092_v41, %v1091_v39  ;;  %v1094_v45 = vpop.f32.mrb[10].mxu1 }
 0x108   :  { %v1071_v46 = vpop.f32.mrb[11].mxu0  ;;  %v1095_v47 = vpop.f32.mrb[11].mxu1 }
 0x109   :  { %v1072_v48 = vadd.f32 %v1071_v46, %v1070_v43  ;;  %v606_v34 = vadd.f32 %v1069_v42, %v1599_v57 }
 0x10b   :  { %v609_v45 = vadd.f32 %v1072_v48, %v1599_v57 }
 0x10d   :  { %v1073_v49 = vpop.f32.mrb[12].mxu0 }
 0x10e   :  { %v1074_v50 = vpop.f32.mrb[13].mxu0 }
 0x10f   :  { %v1592_v51 = vadd.f32 %v1074_v50, %v1073_v49  ;;  %v1076_v52 = vpop.f32.mrb[14].mxu0 }
 0x110   :  { %v1077_v53 = vpop.f32.mrb[15].mxu0 }
 0x111   :  { %v1594_v54 = vadd.f32 %v1077_v53, %v1076_v52 }
 0x115   :  { %v1113_v55 = vpop.f32.mrb[12].mxu1  ;;  %v765_v56 = vpop.f32.mrb[16].mxu0 }
 0x116   :  { %v1114_v58 = vpop.f32.mrb[13].mxu1  ;;  %v1188_v59 = vpop.f32.mrb[17].mxu0 }
 0x117   :  { %v1115_v61 = vadd.f32 %v1114_v58, %v1113_v55  ;;  %v1116_v62 = vpop.f32.mrb[14].mxu1  ;;  %v768_v63 = vpop.f32.mrb[18].mxu0  ;;  %v614_v59 = vadd.f32 %v1592_v51, %v1599_v57 }
 0x118   :  { %v1117_v0 = vpop.f32.mrb[15].mxu1  ;;  %v1189_v1 = vpop.f32.mrb[19].mxu0 }
 0x119   :  { %v678_v3 = vadd.f32 %v1115_v61, %v590_v60  ;;  %v1118_v4 = vadd.f32 %v1117_v0, %v1116_v62 }
 0x11b   :  { %v766_v5 = vadd.f32 %v765_v56, %v678_v3  ;;  %v681_v6 = vadd.f32 %v1118_v4, %v593_v2  ;;  %v617_v2 = vadd.f32 %v1594_v54, %v1599_v57 }
 0x11d   :  { %v769_v7 = vadd.f32 %v768_v63, %v681_v6  ;;  %v1119_v8 = vpop.f32.mrb[16].mxu1  ;;  %v773_v9 = vpop.f32.mrb[20].mxu0  ;;  %v819_v13 = vmax.f32 %v766_v5, 0.0 }
 0x11e   :  { %v1120_v10 = vpop.f32.mrb[17].mxu1  ;;  %v1192_v11 = vpop.f32.mrb[21].mxu0 }
 0x11f   :  { %v820_v14 = vmax.f32 %v769_v7, 0.0  ;;  %v1121_v15 = vadd.f32 %v1120_v10, %v1119_v8  ;;  %v1122_v16 = vpop.f32.mrb[18].mxu1  ;;  %v776_v17 = vpop.f32.mrb[22].mxu0 }
 0x120   :  { %v1123_v19 = vpop.f32.mrb[19].mxu1  ;;  %v1193_v20 = vpop.f32.mrb[23].mxu0 }
 0x121   :  { %v1007_v22 = vpack.c.bf16 %v820_v14, %v819_v13  ;;  %v686_v23 = vadd.f32 %v1121_v15, %v598_v12  ;;  %v1124_v24 = vadd.f32 %v1123_v19, %v1122_v16  ;;  %v622_v12 = vadd.f32 %v1582_v18, %v1599_v57 }
 0x122   :  { %v625_v20 = vadd.f32 %v1584_v25, %v1599_v57 }
 0x123   :  { %1008 = vst [vmem:[%s1645_s3] sm:$0xff] %v1007_v22   ;;  %v774_v26 = vadd.f32 %v773_v9, %v686_v23  ;;  %v689_v27 = vadd.f32 %v1124_v24, %v601_v21 }
 0x125   :  { %v777_v28 = vadd.f32 %v776_v17, %v689_v27  ;;  %v1125_v29 = vpop.f32.mrb[20].mxu1  ;;  %v781_v30 = vpop.f32.mrb[24].mxu0  ;;  %v821_v35 = vmax.f32 %v774_v26, 0.0 }
 0x126   :  { %v1126_v31 = vpop.f32.mrb[21].mxu1  ;;  %v1196_v33 = vpop.f32.mrb[25].mxu0 }
 0x127   :  { %v822_v38 = vmax.f32 %v777_v28, 0.0  ;;  %v1127_v39 = vadd.f32 %v1126_v31, %v1125_v29  ;;  %v1128_v36 = vpop.f32.mrb[22].mxu1  ;;  %v784_v40 = vpop.f32.mrb[26].mxu0  ;;  %v630_v31 = vadd.f32 %v1586_v32, %v1599_v57 }
 0x128   :  { %v1129_v41 = vpop.f32.mrb[23].mxu1  ;;  %v1197_v43 = vpop.f32.mrb[27].mxu0 }
 0x129   :  { %v1012_v46 = vpack.c.bf16 %v822_v38, %v821_v35  ;;  %v694_v47 = vadd.f32 %v1127_v39, %v606_v34  ;;  %v1130_v49 = vadd.f32 %v1129_v41, %v1128_v36 }
 0x12b   :  { %1034 = vst [vmem:[%s1645_s3 + $0x8] sm:$0xff] %v1012_v46   ;;  %v782_v50 = vadd.f32 %v781_v30, %v694_v47  ;;  %v697_v52 = vadd.f32 %v1130_v49, %v609_v45 }
 0x12d   :  { %v785_v53 = vadd.f32 %v784_v40, %v697_v52  ;;  %v1131_v42 = vpop.f32.mrb[24].mxu1  ;;  %v789_v55 = vpop.f32.mrb[28].mxu0  ;;  %v823_v60 = vmax.f32 %v782_v50, 0.0  ;;  %v633_v40 = vadd.f32 %v1588_v37, %v1599_v57 }
 0x12e   :  { %v1132_v56 = vpop.f32.mrb[25].mxu1  ;;  %v1200_v58 = vpop.f32.mrb[29].mxu0 }
 0x12f   :  { %v824_v61 = vmax.f32 %v785_v53, 0.0  ;;  %v1133_v48 = vadd.f32 %v1132_v56, %v1131_v42  ;;  %v1134_v62 = vpop.f32.mrb[26].mxu1  ;;  %v792_v63 = vpop.f32.mrb[30].mxu0  ;;  %v638_v42 = vadd.f32 %v1590_v44, %v1599_v57 }
 0x130   :  { %v1135_v0 = vpop.f32.mrb[27].mxu1  ;;  %v1201_v1 = vpop.f32.mrb[31].mxu0 }
 0x131   :  { %v1017_v3 = vpack.c.bf16 %v824_v61, %v823_v60  ;;  %v702_v4 = vadd.f32 %v1133_v48, %v614_v59  ;;  %v1136_v5 = vadd.f32 %v1135_v0, %v1134_v62 }
 0x133   :  { %1035 = vst [vmem:[%s1645_s3 + $0x10] sm:$0xff] %v1017_v3   ;;  %v790_v6 = vadd.f32 %v789_v55, %v702_v4  ;;  %v705_v7 = vadd.f32 %v1136_v5, %v617_v2 }
 0x135   :  { %v793_v51 = vadd.f32 %v792_v63, %v705_v7  ;;  %v1137_v8 = vpop.f32.mrb[28].mxu1  ;;  %v797_v9 = vpop.f32.mrb[32].mxu0  ;;  %v825_v13 = vmax.f32 %v790_v6, 0.0 }
 0x136   :  { %v1138_v10 = vpop.f32.mrb[29].mxu1  ;;  %v1204_v11 = vpop.f32.mrb[33].mxu0 }
 0x137   :  { %v826_v14 = vmax.f32 %v793_v51, 0.0  ;;  %v1139_v54 = vadd.f32 %v1138_v10, %v1137_v8  ;;  %v1140_v15 = vpop.f32.mrb[30].mxu1  ;;  %v800_v16 = vpop.f32.mrb[34].mxu0 }
 0x138   :  { %v1141_v17 = vpop.f32.mrb[31].mxu1  ;;  %v1205_v19 = vpop.f32.mrb[35].mxu0 }
 0x139   :  { %v1022_v21 = vpack.c.bf16 %v826_v14, %v825_v13  ;;  %v710_v22 = vadd.f32 %v1139_v54, %v622_v12  ;;  %v1142_v23 = vadd.f32 %v1141_v17, %v1140_v15 }
 0x13b   :  { %1036 = vst [vmem:[%s1645_s3 + $0x18] sm:$0xff] %v1022_v21   ;;  %v798_v24 = vadd.f32 %v797_v9, %v710_v22  ;;  %v713_v26 = vadd.f32 %v1142_v23, %v625_v20 }
 0x13d   :  { %v801_v18 = vadd.f32 %v800_v16, %v713_v26  ;;  %v1143_v27 = vpop.f32.mrb[32].mxu1  ;;  %v805_v28 = vpop.f32.mrb[36].mxu0  ;;  %v827_v33 = vmax.f32 %v798_v24, 0.0 }
 0x13e   :  { %v1144_v29 = vpop.f32.mrb[33].mxu1  ;;  %v1208_v30 = vpop.f32.mrb[37].mxu0 }
 0x13f   :  { %v828_v34 = vmax.f32 %v801_v18, 0.0  ;;  %v1145_v25 = vadd.f32 %v1144_v29, %v1143_v27  ;;  %v1146_v35 = vpop.f32.mrb[34].mxu1  ;;  %v808_v38 = vpop.f32.mrb[38].mxu0 }
 0x140   :  { %v1147_v39 = vpop.f32.mrb[35].mxu1  ;;  %v1209_v36 = vpop.f32.mrb[39].mxu0 }
 0x141   :  { %v1027_v41 = vpack.c.bf16 %v828_v34, %v827_v33  ;;  %v718_v43 = vadd.f32 %v1145_v25, %v630_v31  ;;  %v1148_v45 = vadd.f32 %v1147_v39, %v1146_v35 }
 0x143   :  { %1037 = vst [vmem:[%s1645_s3 + $0x20] sm:$0xff] %v1027_v41   ;;  %v806_v46 = vadd.f32 %v805_v28, %v718_v43  ;;  %v721_v47 = vadd.f32 %v1148_v45, %v633_v40 }
 0x145   :  { %v809_v32 = vadd.f32 %v808_v38, %v721_v47  ;;  %v1149_v49 = vpop.f32.mrb[36].mxu1  ;;  %v813_v50 = vpop.f32.mrb[40].mxu0  ;;  %v829_v55 = vmax.f32 %v806_v46, 0.0 }
 0x146   :  { %v1150_v52 = vpop.f32.mrb[37].mxu1  ;;  %v1212_v53 = vpop.f32.mrb[41].mxu0 }
 0x147   :  { %v830_v56 = vmax.f32 %v809_v32, 0.0  ;;  %v1151_v37 = vadd.f32 %v1150_v52, %v1149_v49  ;;  %v1152_v58 = vpop.f32.mrb[38].mxu1  ;;  %v816_v59 = vpop.f32.mrb[42].mxu0 }
 0x148   :  { %v1153_v60 = vpop.f32.mrb[39].mxu1  ;;  %v1213_v61 = vpop.f32.mrb[43].mxu0 }
 0x149   :  { %v1032_v48 = vpack.c.bf16 %v830_v56, %v829_v55  ;;  %v726_v62 = vadd.f32 %v1151_v37, %v638_v42 }
 0x14b   :  { %1038 = vst [vmem:[%s1645_s3 + $0x28] sm:$0xff] %v1032_v48   ;;  %v814_v63 = vadd.f32 %v813_v50, %v726_v62 }
 0x14d   :  { %v831_v0 = vmax.f32 %v814_v63, 0.0 }
 0x14f   :  { %v1003_v1 = vpack.c.bf16 %v831_v0, %v831_v0 }
 0x151   :  { %897 = vst [vmem:[%s1645_s3 + $0x30] sm:$0xf] %v1003_v1 }

// kernel: critic_cnn_forward.7
= control target key start
LH: loop header
LB: loop body
LE: loop exit
PB: predicated region body
PF: predicated region fallthrough
CT: control target
= control target key end

     0   :  { %s11267_s1 = inlined_call_operand.vmem [shape: bf16[3200,512], index: 1, kind: input, shape index: {}]   ;;  %s11268_s0 = inlined_call_operand.vmem [shape: bf16[8,3200], index: 0, kind: input, shape index: {}]   ;;  %s11269_s3 = inlined_call_operand.vmem [shape: bf16[512,128], index: 3, kind: input, shape index: {}]   ;;  %s11270_s2 = inlined_call_operand.vmem [shape: f32[1,512], index: 2, kind: input, shape index: {}]   ;;  %s11271_s4 = inlined_call_operand.vmem [shape: f32[1,128], index: 4, kind: input, shape index: {}]   ;;  %s11272_s5 = inlined_call_operand.vmem [shape: f32[8,128], index: 5, kind: output, shape index: {}]  }
   0x1   :  { %v7369_v0 = vld [vmem:[%s11267_s1 + $0x4] ss:$16 sps:$4 sm:$0xff]   ;;  %v7371_v1 = vld [vmem:[%s11267_s1 + $0xc] ss:$16 sps:$4 sm:$0xff]   ;;  %v7373_v2 = vld [vmem:[%s11267_s1] ss:$16 sps:$4 sm:$0xff]  }
   0x2   :  { %4944 = vmatprep.subr.bf16.mxu0 %v7369_v0  ;;  %v7374_v3 = vld [vmem:[%s11267_s1 + $0x8] ss:$16 sps:$4 sm:$0xff]   ;;  %5477 = vmatprep.subr.bf16.mxu1 %v7371_v1  ;;  %v7375_v4 = vld [vmem:[%s11267_s1 + $0x24] ss:$16 sps:$4 sm:$0xff]   ;;  %v7377_v5 = vld [vmem:[%s11267_s1 + $0x2c] ss:$16 sps:$4 sm:$0xff]  }
   0x3   :  { %4945 = vmatpush1.bf16.msra.mxu0 %v7373_v2  ;;  %5478 = vmatpush1.bf16.msra.mxu1 %v7374_v3  ;;  %v7379_v6 = vld [vmem:[%s11267_s1 + $0x20] ss:$16 sps:$4 sm:$0xff]   ;;  %v7380_v7 = vld [vmem:[%s11267_s1 + $0x28] ss:$16 sps:$4 sm:$0xff]   ;;  %v7381_v8 = vld [vmem:[%s11267_s1 + $0x44] ss:$16 sps:$4 sm:$0xff]  }
   0x4   :  { %4946 = vmatprep.subr.bf16.mxu0 %v7375_v4  ;;  %5479 = vmatprep.subr.bf16.mxu1 %v7377_v5  ;;  %v7383_v9 = vld [vmem:[%s11267_s1 + $0x4c] ss:$16 sps:$4 sm:$0xff]   ;;  %v7385_v10 = vld [vmem:[%s11267_s1 + $0x40] ss:$16 sps:$4 sm:$0xff]   ;;  %v7386_v11 = vld [vmem:[%s11267_s1 + $0x48] ss:$16 sps:$4 sm:$0xff]  }
   0x5   :  { %v7387_v12 = vld [vmem:[%s11267_s1 + $0x64] ss:$16 sps:$4 sm:$0xff]   ;;  %v7389_v13 = vld [vmem:[%s11267_s1 + $0x6c] ss:$16 sps:$4 sm:$0xff]   ;;  %v7391_v14 = vld [vmem:[%s11267_s1 + $0x60] ss:$16 sps:$4 sm:$0xff]  }
   0x6   :  { %v7392_v15 = vld [vmem:[%s11267_s1 + $0x68] ss:$16 sps:$4 sm:$0xff]   ;;  %v7393_v16 = vld [vmem:[%s11267_s1 + $0x84] ss:$16 sps:$4 sm:$0xff]   ;;  %v7395_v17 = vld [vmem:[%s11267_s1 + $0x8c] ss:$16 sps:$4 sm:$0xff]  }
   0x7   :  { %4947 = vmatpush1.bf16.msra.mxu0 %v7379_v6  ;;  %5480 = vmatpush1.bf16.msra.mxu1 %v7380_v7  ;;  %v7397_v18 = vld [vmem:[%s11267_s1 + $0x80] ss:$16 sps:$4 sm:$0xff]   ;;  %v7398_v19 = vld [vmem:[%s11267_s1 + $0x88] ss:$16 sps:$4 sm:$0xff]   ;;  %v7399_v20 = vld [vmem:[%s11267_s1 + $0xa4] ss:$16 sps:$4 sm:$0xff]  }
   0x8   :  { %4948 = vmatprep.subr.bf16.mxu0 %v7381_v8  ;;  %5481 = vmatprep.subr.bf16.mxu1 %v7383_v9  ;;  %v7401_v21 = vld [vmem:[%s11267_s1 + $0xac] ss:$16 sps:$4 sm:$0xff]   ;;  %v7403_v22 = vld [vmem:[%s11267_s1 + $0xa0] ss:$16 sps:$4 sm:$0xff]   ;;  %v7404_v23 = vld [vmem:[%s11267_s1 + $0xa8] ss:$16 sps:$4 sm:$0xff]  }
   0x9   :  { %v7405_v24 = vld [vmem:[%s11267_s1 + $0xc4] ss:$16 sps:$4 sm:$0xff]   ;;  %v7407_v25 = vld [vmem:[%s11267_s1 + $0xcc] ss:$16 sps:$4 sm:$0xff]   ;;  %v7409_v26 = vld [vmem:[%s11267_s1 + $0xc0] ss:$16 sps:$4 sm:$0xff]  }
   0xa   :  { %v7410_v27 = vld [vmem:[%s11267_s1 + $0xc8] ss:$16 sps:$4 sm:$0xff]   ;;  %v7411_v28 = vld [vmem:[%s11267_s1 + $0xe4] ss:$16 sps:$4 sm:$0xff]   ;;  %v7413_v29 = vld [vmem:[%s11267_s1 + $0xec] ss:$16 sps:$4 sm:$0xff]  }
   0xb   :  { %4949 = vmatpush1.bf16.msra.mxu0 %v7385_v10  ;;  %5482 = vmatpush1.bf16.msra.mxu1 %v7386_v11  ;;  %v7415_v30 = vld [vmem:[%s11267_s1 + $0xe0] ss:$16 sps:$4 sm:$0xff]   ;;  %v7416_v31 = vld [vmem:[%s11267_s1 + $0xe8] ss:$16 sps:$4 sm:$0xff]   ;;  %v7417_v32 = vld [vmem:[%s11267_s1 + $0x104] ss:$16 sps:$4 sm:$0xff]  }
   0xc   :  { %4950 = vmatprep.subr.bf16.mxu0 %v7387_v12  ;;  %5483 = vmatprep.subr.bf16.mxu1 %v7389_v13  ;;  %v7419_v33 = vld [vmem:[%s11267_s1 + $0x10c] ss:$16 sps:$4 sm:$0xff]   ;;  %v7421_v34 = vld [vmem:[%s11267_s1 + $0x100] ss:$16 sps:$4 sm:$0xff]   ;;  %v7422_v35 = vld [vmem:[%s11267_s1 + $0x108] ss:$16 sps:$4 sm:$0xff]  }
   0xd   :  { %v7423_v36 = vld [vmem:[%s11267_s1 + $0x124] ss:$16 sps:$4 sm:$0xff]   ;;  %v7425_v37 = vld [vmem:[%s11267_s1 + $0x12c] ss:$16 sps:$4 sm:$0xff]   ;;  %v7427_v38 = vld [vmem:[%s11267_s1 + $0x120] ss:$16 sps:$4 sm:$0xff]  }
   0xe   :  { %v7428_v39 = vld [vmem:[%s11267_s1 + $0x128] ss:$16 sps:$4 sm:$0xff]   ;;  %v7429_v40 = vld [vmem:[%s11267_s1 + $0x144] ss:$16 sps:$4 sm:$0xff]   ;;  %v7431_v41 = vld [vmem:[%s11267_s1 + $0x14c] ss:$16 sps:$4 sm:$0xff]  }
   0xf   :  { %4951 = vmatpush1.bf16.msra.mxu0 %v7391_v14  ;;  %5484 = vmatpush1.bf16.msra.mxu1 %v7392_v15  ;;  %v7433_v42 = vld [vmem:[%s11267_s1 + $0x140] ss:$16 sps:$4 sm:$0xff]   ;;  %v7434_v43 = vld [vmem:[%s11267_s1 + $0x148] ss:$16 sps:$4 sm:$0xff]   ;;  %v7435_v44 = vld [vmem:[%s11267_s1 + $0x164] ss:$16 sps:$4 sm:$0xff]  }
  0x10   :  { %4952 = vmatprep.subr.bf16.mxu0 %v7393_v16  ;;  %5485 = vmatprep.subr.bf16.mxu1 %v7395_v17  ;;  %v7437_v45 = vld [vmem:[%s11267_s1 + $0x16c] ss:$16 sps:$4 sm:$0xff]   ;;  %v21_v46 = vld [vmem:[%s11268_s0] sm:$0xff]  ;;  %v7440_v49 = vld [vmem:[%s11267_s1 + $0x168] ss:$16 sps:$4 sm:$0xff]  }
  0x11   :  { %v7439_v47 = vld [vmem:[%s11267_s1 + $0x160] ss:$16 sps:$4 sm:$0xff]   ;;  %v6367_v48 = vcombine.high %v21_v46, %v21_v46  ;;  %v7441_v50 = vld [vmem:[%s11267_s1 + $0x184] ss:$16 sps:$4 sm:$0xff]   ;;  %v7443_v51 = vld [vmem:[%s11267_s1 + $0x18c] ss:$16 sps:$4 sm:$0xff]   ;;  %v6366_v4 = vcombine.low %v21_v46, %v21_v46 }
  0x12   :  { %v7445_v52 = vld [vmem:[%s11267_s1 + $0x180] ss:$16 sps:$4 sm:$0xff]   ;;  %v7446_v53 = vld [vmem:[%s11267_s1 + $0x188] ss:$16 sps:$4 sm:$0xff]   ;;  %v7447_v54 = vld [vmem:[%s11267_s1 + $0x1a4] ss:$16 sps:$4 sm:$0xff]  }
  0x13   :  { %4953 = vmatpush1.bf16.msra.mxu0 %v7397_v18  ;;  %5486 = vmatpush1.bf16.msra.mxu1 %v7398_v19  ;;  %v7449_v55 = vld [vmem:[%s11267_s1 + $0x1ac] ss:$16 sps:$4 sm:$0xff]   ;;  %v7451_v56 = vld [vmem:[%s11267_s1 + $0x1a0] ss:$16 sps:$4 sm:$0xff]   ;;  %v7452_v57 = vld [vmem:[%s11267_s1 + $0x1a8] ss:$16 sps:$4 sm:$0xff]  }
  0x14   :  { %4954 = vmatprep.subr.bf16.mxu0 %v7399_v20  ;;  %5487 = vmatprep.subr.bf16.mxu1 %v7401_v21  ;;  %v7453_v58 = vld [vmem:[%s11267_s1 + $0x1c4] ss:$16 sps:$4 sm:$0xff]   ;;  %v7455_v59 = vld [vmem:[%s11267_s1 + $0x1cc] ss:$16 sps:$4 sm:$0xff]   ;;  %v7457_v60 = vld [vmem:[%s11267_s1 + $0x1c0] ss:$16 sps:$4 sm:$0xff]  }
  0x15   :  { %4976 = vmatprep.mubr.bf16.mxu0 %v6367_v48  ;;  %5509 = vmatprep.mubr.bf16.mxu1 %v6367_v48  ;;  %v7458_v61 = vld [vmem:[%s11267_s1 + $0x1c8] ss:$16 sps:$4 sm:$0xff]   ;;  %v7459_v62 = vld [vmem:[%s11267_s1 + $0x1e4] ss:$16 sps:$4 sm:$0xff]   ;;  %v7461_v63 = vld [vmem:[%s11267_s1 + $0x1ec] ss:$16 sps:$4 sm:$0xff]  }
  0x16   :  { %v7463_v0 = vld [vmem:[%s11267_s1 + $0x1e0] ss:$16 sps:$4 sm:$0xff]   ;;  %v7464_v1 = vld [vmem:[%s11267_s1 + $0x1e8] ss:$16 sps:$4 sm:$0xff]   ;;  %v7469_v2 = vld [vmem:[%s11267_s1 + $0x204] ss:$16 sps:$4 sm:$0xff]  }
  0x17   :  { %4955 = vmatpush1.bf16.msra.mxu0 %v7403_v22  ;;  %5488 = vmatpush1.bf16.msra.mxu1 %v7404_v23  ;;  %v7472_v3 = vld [vmem:[%s11267_s1 + $0x20c] ss:$16 sps:$4 sm:$0xff]   ;;  %v7467_v5 = vld [vmem:[%s11267_s1 + $0x200] ss:$16 sps:$4 sm:$0xff]   ;;  %v7470_v6 = vld [vmem:[%s11267_s1 + $0x208] ss:$16 sps:$4 sm:$0xff]  }
  0x18   :  { %4956 = vmatprep.subr.bf16.mxu0 %v7405_v24  ;;  %5489 = vmatprep.subr.bf16.mxu1 %v7407_v25  ;;  %v7475_v7 = vld [vmem:[%s11267_s1 + $0x224] ss:$16 sps:$4 sm:$0xff]   ;;  %v7478_v8 = vld [vmem:[%s11267_s1 + $0x22c] ss:$16 sps:$4 sm:$0xff]   ;;  %v7473_v9 = vld [vmem:[%s11267_s1 + $0x220] ss:$16 sps:$4 sm:$0xff]  }
  0x19   :  { %v7476_v10 = vld [vmem:[%s11267_s1 + $0x228] ss:$16 sps:$4 sm:$0xff]   ;;  %v7481_v11 = vld [vmem:[%s11267_s1 + $0x244] ss:$16 sps:$4 sm:$0xff]   ;;  %v7484_v12 = vld [vmem:[%s11267_s1 + $0x24c] ss:$16 sps:$4 sm:$0xff]  }
  0x1a   :  { %v7479_v13 = vld [vmem:[%s11267_s1 + $0x240] ss:$16 sps:$4 sm:$0xff]   ;;  %v7482_v14 = vld [vmem:[%s11267_s1 + $0x248] ss:$16 sps:$4 sm:$0xff]   ;;  %v7487_v15 = vld [vmem:[%s11267_s1 + $0x264] ss:$16 sps:$4 sm:$0xff]  }
  0x1b   :  { %4957 = vmatpush1.bf16.msra.mxu0 %v7409_v26  ;;  %5490 = vmatpush1.bf16.msra.mxu1 %v7410_v27  ;;  %v7490_v16 = vld [vmem:[%s11267_s1 + $0x26c] ss:$16 sps:$4 sm:$0xff]   ;;  %v7485_v17 = vld [vmem:[%s11267_s1 + $0x260] ss:$16 sps:$4 sm:$0xff]   ;;  %v7488_v18 = vld [vmem:[%s11267_s1 + $0x268] ss:$16 sps:$4 sm:$0xff]  }
  0x1c   :  { %4958 = vmatprep.subr.bf16.mxu0 %v7411_v28  ;;  %5491 = vmatprep.subr.bf16.mxu1 %v7413_v29  ;;  %v7493_v19 = vld [vmem:[%s11267_s1 + $0x284] ss:$16 sps:$4 sm:$0xff]   ;;  %v7496_v20 = vld [vmem:[%s11267_s1 + $0x28c] ss:$16 sps:$4 sm:$0xff]   ;;  %v7491_v21 = vld [vmem:[%s11267_s1 + $0x280] ss:$16 sps:$4 sm:$0xff]  }
  0x1d   :  { %v7494_v22 = vld [vmem:[%s11267_s1 + $0x288] ss:$16 sps:$4 sm:$0xff]   ;;  %v7499_v23 = vld [vmem:[%s11267_s1 + $0x2a4] ss:$16 sps:$4 sm:$0xff]   ;;  %v7502_v24 = vld [vmem:[%s11267_s1 + $0x2ac] ss:$16 sps:$4 sm:$0xff]  }
  0x1e   :  { %v7497_v25 = vld [vmem:[%s11267_s1 + $0x2a0] ss:$16 sps:$4 sm:$0xff]   ;;  %v7500_v26 = vld [vmem:[%s11267_s1 + $0x2a8] ss:$16 sps:$4 sm:$0xff]   ;;  %v7505_v27 = vld [vmem:[%s11267_s1 + $0x2c4] ss:$16 sps:$4 sm:$0xff]  }
  0x1f   :  { %4959 = vmatpush1.bf16.msra.mxu0 %v7415_v30  ;;  %5492 = vmatpush1.bf16.msra.mxu1 %v7416_v31  ;;  %v7508_v28 = vld [vmem:[%s11267_s1 + $0x2cc] ss:$16 sps:$4 sm:$0xff]   ;;  %v7503_v31 = vld [vmem:[%s11267_s1 + $0x2c0] ss:$16 sps:$4 sm:$0xff]   ;;  %v7530_v48 = vld [vmem:[%s11267_s1 + $0x348] ss:$16 sps:$4 sm:$0xff]  }
  0x20   :  { %4960 = vmatprep.subr.bf16.mxu0 %v7417_v32  ;;  %5493 = vmatprep.subr.bf16.mxu1 %v7419_v33  ;;  %v8933_v29 = vld [vmem:[%s11268_s0 + $0x8] sm:$0xff]  ;;  %v7511_v33 = vld [vmem:[%s11267_s1 + $0x2e4] ss:$16 sps:$4 sm:$0xff]  }
  0x21   :  { %v6369_v30 = vcombine.high %v8933_v29, %v8933_v29  ;;  %v7506_v32 = vld [vmem:[%s11267_s1 + $0x2c8] ss:$16 sps:$4 sm:$0xff]   ;;  %v7532_v46 = vld [vmem:[%s11267_s1 + $0x34c] ss:$16 sps:$4 sm:$0xff]  }
  0x23   :  { %4961 = vmatpush1.bf16.msra.mxu0 %v7421_v34  ;;  %5494 = vmatpush1.bf16.msra.mxu1 %v7422_v35  ;;  %v7514_v34 = vld [vmem:[%s11267_s1 + $0x2ec] ss:$16 sps:$4 sm:$0xff]   ;;  %v7509_v35 = vld [vmem:[%s11267_s1 + $0x2e0] ss:$16 sps:$4 sm:$0xff]  }
  0x24   :  { %4962 = vmatprep.subr.bf16.mxu0 %v7423_v36  ;;  %5495 = vmatprep.subr.bf16.mxu1 %v7425_v37  ;;  %v7512_v36 = vld [vmem:[%s11267_s1 + $0x2e8] ss:$16 sps:$4 sm:$0xff]   ;;  %v7517_v37 = vld [vmem:[%s11267_s1 + $0x304] ss:$16 sps:$4 sm:$0xff]  }
  0x27   :  { %4963 = vmatpush1.bf16.msra.mxu0 %v7427_v38  ;;  %5496 = vmatpush1.bf16.msra.mxu1 %v7428_v39  ;;  %v7520_v38 = vld [vmem:[%s11267_s1 + $0x30c] ss:$16 sps:$4 sm:$0xff]   ;;  %v7515_v39 = vld [vmem:[%s11267_s1 + $0x300] ss:$16 sps:$4 sm:$0xff]  }
  0x28   :  { %4964 = vmatprep.subr.bf16.mxu0 %v7429_v40  ;;  %5497 = vmatprep.subr.bf16.mxu1 %v7431_v41  ;;  %v7518_v40 = vld [vmem:[%s11267_s1 + $0x308] ss:$16 sps:$4 sm:$0xff]   ;;  %v7523_v41 = vld [vmem:[%s11267_s1 + $0x324] ss:$16 sps:$4 sm:$0xff]  }
  0x2b   :  { %4965 = vmatpush1.bf16.msra.mxu0 %v7433_v42  ;;  %5498 = vmatpush1.bf16.msra.mxu1 %v7434_v43  ;;  %v7526_v42 = vld [vmem:[%s11267_s1 + $0x32c] ss:$16 sps:$4 sm:$0xff]   ;;  %v7521_v43 = vld [vmem:[%s11267_s1 + $0x320] ss:$16 sps:$4 sm:$0xff]  }
  0x2c   :  { %4966 = vmatprep.subr.bf16.mxu0 %v7435_v44  ;;  %5499 = vmatprep.subr.bf16.mxu1 %v7437_v45  ;;  %v7524_v44 = vld [vmem:[%s11267_s1 + $0x328] ss:$16 sps:$4 sm:$0xff]   ;;  %v7529_v45 = vld [vmem:[%s11267_s1 + $0x344] ss:$16 sps:$4 sm:$0xff]  }
  0x2f   :  { %4967 = vmatpush1.bf16.msra.mxu0 %v7439_v47  ;;  %5500 = vmatpush1.bf16.msra.mxu1 %v7440_v49  ;;  %v7527_v47 = vld [vmem:[%s11267_s1 + $0x340] ss:$16 sps:$4 sm:$0xff]   ;;  %v7535_v49 = vld [vmem:[%s11267_s1 + $0x364] ss:$16 sps:$4 sm:$0xff]  }
  0x30   :  { %4968 = vmatprep.subr.bf16.mxu0 %v7441_v50  ;;  %5501 = vmatprep.subr.bf16.mxu1 %v7443_v51  ;;  %v7538_v50 = vld [vmem:[%s11267_s1 + $0x36c] ss:$16 sps:$4 sm:$0xff]   ;;  %v7533_v51 = vld [vmem:[%s11267_s1 + $0x360] ss:$16 sps:$4 sm:$0xff]  }
  0x33   :  { %4969 = vmatpush1.bf16.msra.mxu0 %v7445_v52  ;;  %5502 = vmatpush1.bf16.msra.mxu1 %v7446_v53  ;;  %v7536_v52 = vld [vmem:[%s11267_s1 + $0x368] ss:$16 sps:$4 sm:$0xff]   ;;  %v7541_v53 = vld [vmem:[%s11267_s1 + $0x384] ss:$16 sps:$4 sm:$0xff]  }
  0x34   :  { %4970 = vmatprep.subr.bf16.mxu0 %v7447_v54  ;;  %5503 = vmatprep.subr.bf16.mxu1 %v7449_v55  ;;  %v7544_v54 = vld [vmem:[%s11267_s1 + $0x38c] ss:$16 sps:$4 sm:$0xff]   ;;  %v7539_v55 = vld [vmem:[%s11267_s1 + $0x380] ss:$16 sps:$4 sm:$0xff]  }
  0x37   :  { %4971 = vmatpush1.bf16.msra.mxu0 %v7451_v56  ;;  %5504 = vmatpush1.bf16.msra.mxu1 %v7452_v57  ;;  %v7542_v56 = vld [vmem:[%s11267_s1 + $0x388] ss:$16 sps:$4 sm:$0xff]   ;;  %v7547_v57 = vld [vmem:[%s11267_s1 + $0x3a4] ss:$16 sps:$4 sm:$0xff]  }
  0x38   :  { %4972 = vmatprep.subr.bf16.mxu0 %v7453_v58  ;;  %5505 = vmatprep.subr.bf16.mxu1 %v7455_v59  ;;  %v7550_v58 = vld [vmem:[%s11267_s1 + $0x3ac] ss:$16 sps:$4 sm:$0xff]   ;;  %v7545_v59 = vld [vmem:[%s11267_s1 + $0x3a0] ss:$16 sps:$4 sm:$0xff]  }
  0x3b   :  { %4973 = vmatpush1.bf16.msra.mxu0 %v7457_v60  ;;  %5506 = vmatpush1.bf16.msra.mxu1 %v7458_v61  ;;  %v7548_v60 = vld [vmem:[%s11267_s1 + $0x3a8] ss:$16 sps:$4 sm:$0xff]   ;;  %v7553_v61 = vld [vmem:[%s11267_s1 + $0x3c4] ss:$16 sps:$4 sm:$0xff]  }
  0x3c   :  { %4974 = vmatprep.subr.bf16.mxu0 %v7459_v62  ;;  %5507 = vmatprep.subr.bf16.mxu1 %v7461_v63  ;;  %v7556_v62 = vld [vmem:[%s11267_s1 + $0x3cc] ss:$16 sps:$4 sm:$0xff]   ;;  %v7551_v63 = vld [vmem:[%s11267_s1 + $0x3c0] ss:$16 sps:$4 sm:$0xff]  }
  0x3f   :  { %4975 = vmatpush1.bf16.msra.mxu0 %v7463_v0  ;;  %5508 = vmatpush1.bf16.msra.mxu1 %v7464_v1  ;;  %v7554_v0 = vld [vmem:[%s11267_s1 + $0x3c8] ss:$16 sps:$4 sm:$0xff]   ;;  %v7559_v1 = vld [vmem:[%s11267_s1 + $0x3e4] ss:$16 sps:$4 sm:$0xff]  }
  0x40   :  { %4985 = vmatprep.subr.bf16.mxu0 %v7469_v2  ;;  %5518 = vmatprep.subr.bf16.mxu1 %v7472_v3  ;;  %v7562_v2 = vld [vmem:[%s11267_s1 + $0x3ec] ss:$16 sps:$4 sm:$0xff]   ;;  %v7557_v3 = vld [vmem:[%s11267_s1 + $0x3e0] ss:$16 sps:$4 sm:$0xff]  }
  0x42   :  { %4977 = vmatmul.mubr.bf16.vlgmr.msra.gmra.mrb[0].mxu0 %v6366_v4  ;;  %5510 = vmatmul.mubr.bf16.vlgmr.msra.gmra.mrb[0].mxu1 %v6366_v4  ;;  %v7560_v4 = vld [vmem:[%s11267_s1 + $0x3e8] ss:$16 sps:$4 sm:$0xff]  }
  0x43   :  { %4986 = vmatpush1.bf16.msra.mxu0 %v7467_v5  ;;  %5519 = vmatpush1.bf16.msra.mxu1 %v7470_v6  ;;  %v7567_v5 = vld [vmem:[%s11267_s1 + $0x404] ss:$16 sps:$4 sm:$0xff]   ;;  %v7570_v6 = vld [vmem:[%s11267_s1 + $0x40c] ss:$16 sps:$4 sm:$0xff]  }
  0x44   :  { %4987 = vmatprep.subr.bf16.mxu0 %v7475_v7  ;;  %5520 = vmatprep.subr.bf16.mxu1 %v7478_v8  ;;  %v6368_v7 = vcombine.low %v8933_v29, %v8933_v29  ;;  %v7565_v8 = vld [vmem:[%s11267_s1 + $0x400] ss:$16 sps:$4 sm:$0xff]   ;;  %v7600_v29 = vld [vmem:[%s11267_s1 + $0x4ac] ss:$16 sps:$4 sm:$0xff]  }
  0x45   :  { %5017 = vmatprep.mubr.bf16.mxu0 %v6369_v30  ;;  %5550 = vmatprep.mubr.bf16.mxu1 %v6369_v30  ;;  %v7595_v30 = vld [vmem:[%s11267_s1 + $0x4a0] ss:$16 sps:$4 sm:$0xff]  }
  0x47   :  { %4988 = vmatpush1.bf16.msra.mxu0 %v7473_v9  ;;  %5521 = vmatpush1.bf16.msra.mxu1 %v7476_v10  ;;  %v7568_v9 = vld [vmem:[%s11267_s1 + $0x408] ss:$16 sps:$4 sm:$0xff]   ;;  %v7573_v10 = vld [vmem:[%s11267_s1 + $0x424] ss:$16 sps:$4 sm:$0xff]  }
  0x48   :  { %4989 = vmatprep.subr.bf16.mxu0 %v7481_v11  ;;  %5522 = vmatprep.subr.bf16.mxu1 %v7484_v12  ;;  %v9071_v11 = vld [vmem:[%s11268_s0 + $0x10] sm:$0xff]  ;;  %v7576_v12 = vld [vmem:[%s11267_s1 + $0x42c] ss:$16 sps:$4 sm:$0xff]  }
  0x4b   :  { %4990 = vmatpush1.bf16.msra.mxu0 %v7479_v13  ;;  %5523 = vmatpush1.bf16.msra.mxu1 %v7482_v14  ;;  %v6371_v13 = vcombine.high %v9071_v11, %v9071_v11  ;;  %v7571_v14 = vld [vmem:[%s11267_s1 + $0x420] ss:$16 sps:$4 sm:$0xff]  }
  0x4c   :  { %4991 = vmatprep.subr.bf16.mxu0 %v7487_v15  ;;  %5524 = vmatprep.subr.bf16.mxu1 %v7490_v16  ;;  %v7574_v15 = vld [vmem:[%s11267_s1 + $0x428] ss:$16 sps:$4 sm:$0xff]   ;;  %v7579_v16 = vld [vmem:[%s11267_s1 + $0x444] ss:$16 sps:$4 sm:$0xff]  }
  0x4f   :  { %4992 = vmatpush1.bf16.msra.mxu0 %v7485_v17  ;;  %5525 = vmatpush1.bf16.msra.mxu1 %v7488_v18  ;;  %v7582_v17 = vld [vmem:[%s11267_s1 + $0x44c] ss:$16 sps:$4 sm:$0xff]   ;;  %v7577_v18 = vld [vmem:[%s11267_s1 + $0x440] ss:$16 sps:$4 sm:$0xff]  }
  0x50   :  { %4993 = vmatprep.subr.bf16.mxu0 %v7493_v19  ;;  %5526 = vmatprep.subr.bf16.mxu1 %v7496_v20  ;;  %v7580_v19 = vld [vmem:[%s11267_s1 + $0x448] ss:$16 sps:$4 sm:$0xff]   ;;  %v7585_v20 = vld [vmem:[%s11267_s1 + $0x464] ss:$16 sps:$4 sm:$0xff]  }
  0x53   :  { %4994 = vmatpush1.bf16.msra.mxu0 %v7491_v21  ;;  %5527 = vmatpush1.bf16.msra.mxu1 %v7494_v22  ;;  %v7588_v21 = vld [vmem:[%s11267_s1 + $0x46c] ss:$16 sps:$4 sm:$0xff]   ;;  %v7583_v22 = vld [vmem:[%s11267_s1 + $0x460] ss:$16 sps:$4 sm:$0xff]  }
  0x54   :  { %4995 = vmatprep.subr.bf16.mxu0 %v7499_v23  ;;  %5528 = vmatprep.subr.bf16.mxu1 %v7502_v24  ;;  %v7586_v23 = vld [vmem:[%s11267_s1 + $0x468] ss:$16 sps:$4 sm:$0xff]   ;;  %v7591_v24 = vld [vmem:[%s11267_s1 + $0x484] ss:$16 sps:$4 sm:$0xff]  }
  0x57   :  { %4996 = vmatpush1.bf16.msra.mxu0 %v7497_v25  ;;  %5529 = vmatpush1.bf16.msra.mxu1 %v7500_v26  ;;  %v7594_v25 = vld [vmem:[%s11267_s1 + $0x48c] ss:$16 sps:$4 sm:$0xff]   ;;  %v7589_v26 = vld [vmem:[%s11267_s1 + $0x480] ss:$16 sps:$4 sm:$0xff]  }
  0x58   :  { %4997 = vmatprep.subr.bf16.mxu0 %v7505_v27  ;;  %5530 = vmatprep.subr.bf16.mxu1 %v7508_v28  ;;  %v7592_v27 = vld [vmem:[%s11267_s1 + $0x488] ss:$16 sps:$4 sm:$0xff]   ;;  %v7597_v28 = vld [vmem:[%s11267_s1 + $0x4a4] ss:$16 sps:$4 sm:$0xff]  }
  0x5b   :  { %4998 = vmatpush1.bf16.msra.mxu0 %v7503_v31  ;;  %5531 = vmatpush1.bf16.msra.mxu1 %v7506_v32  ;;  %v7598_v31 = vld [vmem:[%s11267_s1 + $0x4a8] ss:$16 sps:$4 sm:$0xff]   ;;  %v7603_v32 = vld [vmem:[%s11267_s1 + $0x4c4] ss:$16 sps:$4 sm:$0xff]  }
  0x5c   :  { %4999 = vmatprep.subr.bf16.mxu0 %v7511_v33  ;;  %5532 = vmatprep.subr.bf16.mxu1 %v7514_v34  ;;  %v7606_v33 = vld [vmem:[%s11267_s1 + $0x4cc] ss:$16 sps:$4 sm:$0xff]   ;;  %v7601_v34 = vld [vmem:[%s11267_s1 + $0x4c0] ss:$16 sps:$4 sm:$0xff]  }
  0x5f   :  { %5000 = vmatpush1.bf16.msra.mxu0 %v7509_v35  ;;  %5533 = vmatpush1.bf16.msra.mxu1 %v7512_v36  ;;  %v7604_v35 = vld [vmem:[%s11267_s1 + $0x4c8] ss:$16 sps:$4 sm:$0xff]   ;;  %v7609_v36 = vld [vmem:[%s11267_s1 + $0x4e4] ss:$16 sps:$4 sm:$0xff]  }
  0x60   :  { %5001 = vmatprep.subr.bf16.mxu0 %v7517_v37  ;;  %5534 = vmatprep.subr.bf16.mxu1 %v7520_v38  ;;  %v7612_v37 = vld [vmem:[%s11267_s1 + $0x4ec] ss:$16 sps:$4 sm:$0xff]   ;;  %v7607_v38 = vld [vmem:[%s11267_s1 + $0x4e0] ss:$16 sps:$4 sm:$0xff]  }
  0x63   :  { %5002 = vmatpush1.bf16.msra.mxu0 %v7515_v39  ;;  %5535 = vmatpush1.bf16.msra.mxu1 %v7518_v40  ;;  %v7610_v39 = vld [vmem:[%s11267_s1 + $0x4e8] ss:$16 sps:$4 sm:$0xff]   ;;  %v7615_v40 = vld [vmem:[%s11267_s1 + $0x504] ss:$16 sps:$4 sm:$0xff]  }
  0x64   :  { %5003 = vmatprep.subr.bf16.mxu0 %v7523_v41  ;;  %5536 = vmatprep.subr.bf16.mxu1 %v7526_v42  ;;  %v7618_v41 = vld [vmem:[%s11267_s1 + $0x50c] ss:$16 sps:$4 sm:$0xff]   ;;  %v7613_v42 = vld [vmem:[%s11267_s1 + $0x500] ss:$16 sps:$4 sm:$0xff]  }
  0x67   :  { %5004 = vmatpush1.bf16.msra.mxu0 %v7521_v43  ;;  %5537 = vmatpush1.bf16.msra.mxu1 %v7524_v44  ;;  %v7616_v43 = vld [vmem:[%s11267_s1 + $0x508] ss:$16 sps:$4 sm:$0xff]   ;;  %v7621_v44 = vld [vmem:[%s11267_s1 + $0x524] ss:$16 sps:$4 sm:$0xff]  }
  0x68   :  { %5005 = vmatprep.subr.bf16.mxu0 %v7529_v45  ;;  %5538 = vmatprep.subr.bf16.mxu1 %v7532_v46  ;;  %v7624_v45 = vld [vmem:[%s11267_s1 + $0x52c] ss:$16 sps:$4 sm:$0xff]   ;;  %v7619_v46 = vld [vmem:[%s11267_s1 + $0x520] ss:$16 sps:$4 sm:$0xff]  }
  0x6b   :  { %5006 = vmatpush1.bf16.msra.mxu0 %v7527_v47  ;;  %5539 = vmatpush1.bf16.msra.mxu1 %v7530_v48  ;;  %v7622_v47 = vld [vmem:[%s11267_s1 + $0x528] ss:$16 sps:$4 sm:$0xff]   ;;  %v7627_v48 = vld [vmem:[%s11267_s1 + $0x544] ss:$16 sps:$4 sm:$0xff]  }
  0x6c   :  { %5007 = vmatprep.subr.bf16.mxu0 %v7535_v49  ;;  %5540 = vmatprep.subr.bf16.mxu1 %v7538_v50  ;;  %v7630_v49 = vld [vmem:[%s11267_s1 + $0x54c] ss:$16 sps:$4 sm:$0xff]   ;;  %v7625_v50 = vld [vmem:[%s11267_s1 + $0x540] ss:$16 sps:$4 sm:$0xff]  }
  0x6f   :  { %5008 = vmatpush1.bf16.msra.mxu0 %v7533_v51  ;;  %5541 = vmatpush1.bf16.msra.mxu1 %v7536_v52  ;;  %v7628_v51 = vld [vmem:[%s11267_s1 + $0x548] ss:$16 sps:$4 sm:$0xff]   ;;  %v7633_v52 = vld [vmem:[%s11267_s1 + $0x564] ss:$16 sps:$4 sm:$0xff]  }
  0x70   :  { %5009 = vmatprep.subr.bf16.mxu0 %v7541_v53  ;;  %5542 = vmatprep.subr.bf16.mxu1 %v7544_v54  ;;  %v7636_v53 = vld [vmem:[%s11267_s1 + $0x56c] ss:$16 sps:$4 sm:$0xff]   ;;  %v7631_v54 = vld [vmem:[%s11267_s1 + $0x560] ss:$16 sps:$4 sm:$0xff]  }
  0x73   :  { %5010 = vmatpush1.bf16.msra.mxu0 %v7539_v55  ;;  %5543 = vmatpush1.bf16.msra.mxu1 %v7542_v56  ;;  %v7634_v55 = vld [vmem:[%s11267_s1 + $0x568] ss:$16 sps:$4 sm:$0xff]   ;;  %v7639_v56 = vld [vmem:[%s11267_s1 + $0x584] ss:$16 sps:$4 sm:$0xff]  }
  0x74   :  { %5011 = vmatprep.subr.bf16.mxu0 %v7547_v57  ;;  %5544 = vmatprep.subr.bf16.mxu1 %v7550_v58  ;;  %v7642_v57 = vld [vmem:[%s11267_s1 + $0x58c] ss:$16 sps:$4 sm:$0xff]   ;;  %v7637_v58 = vld [vmem:[%s11267_s1 + $0x580] ss:$16 sps:$4 sm:$0xff]  }
  0x77   :  { %5012 = vmatpush1.bf16.msra.mxu0 %v7545_v59  ;;  %5545 = vmatpush1.bf16.msra.mxu1 %v7548_v60  ;;  %v7640_v59 = vld [vmem:[%s11267_s1 + $0x588] ss:$16 sps:$4 sm:$0xff]   ;;  %v7645_v60 = vld [vmem:[%s11267_s1 + $0x5a4] ss:$16 sps:$4 sm:$0xff]  }
  0x78   :  { %5013 = vmatprep.subr.bf16.mxu0 %v7553_v61  ;;  %5546 = vmatprep.subr.bf16.mxu1 %v7556_v62  ;;  %v7648_v61 = vld [vmem:[%s11267_s1 + $0x5ac] ss:$16 sps:$4 sm:$0xff]   ;;  %v7643_v62 = vld [vmem:[%s11267_s1 + $0x5a0] ss:$16 sps:$4 sm:$0xff]  }
  0x7b   :  { %5014 = vmatpush1.bf16.msra.mxu0 %v7551_v63  ;;  %5547 = vmatpush1.bf16.msra.mxu1 %v7554_v0  ;;  %v7646_v63 = vld [vmem:[%s11267_s1 + $0x5a8] ss:$16 sps:$4 sm:$0xff]   ;;  %v7651_v0 = vld [vmem:[%s11267_s1 + $0x5c4] ss:$16 sps:$4 sm:$0xff]  }
  0x7c   :  { %5015 = vmatprep.subr.bf16.mxu0 %v7559_v1  ;;  %5548 = vmatprep.subr.bf16.mxu1 %v7562_v2  ;;  %v7654_v1 = vld [vmem:[%s11267_s1 + $0x5cc] ss:$16 sps:$4 sm:$0xff]   ;;  %v7649_v2 = vld [vmem:[%s11267_s1 + $0x5c0] ss:$16 sps:$4 sm:$0xff]  }
  0x7f   :  { %5016 = vmatpush1.bf16.msra.mxu0 %v7557_v3  ;;  %5549 = vmatpush1.bf16.msra.mxu1 %v7560_v4  ;;  %v7652_v3 = vld [vmem:[%s11267_s1 + $0x5c8] ss:$16 sps:$4 sm:$0xff]   ;;  %v7657_v4 = vld [vmem:[%s11267_s1 + $0x5e4] ss:$16 sps:$4 sm:$0xff]  }
  0x80   :  { %5026 = vmatprep.subr.bf16.mxu0 %v7567_v5  ;;  %5559 = vmatprep.subr.bf16.mxu1 %v7570_v6  ;;  %v7660_v5 = vld [vmem:[%s11267_s1 + $0x5ec] ss:$16 sps:$4 sm:$0xff]   ;;  %v7655_v6 = vld [vmem:[%s11267_s1 + $0x5e0] ss:$16 sps:$4 sm:$0xff]  }
  0x82   :  { %5018 = vmatmul.mubr.bf16.vlgmr.msra.gmra.mrb[0].mxu0 %v6368_v7  ;;  %5551 = vmatmul.mubr.bf16.vlgmr.msra.gmra.mrb[0].mxu1 %v6368_v7  ;;  %v7658_v7 = vld [vmem:[%s11267_s1 + $0x5e8] ss:$16 sps:$4 sm:$0xff]  }
  0x83   :  { %5027 = vmatpush1.bf16.msra.mxu0 %v7565_v8  ;;  %5560 = vmatpush1.bf16.msra.mxu1 %v7568_v9  ;;  %v7665_v8 = vld [vmem:[%s11267_s1 + $0x604] ss:$16 sps:$4 sm:$0xff]   ;;  %v7668_v9 = vld [vmem:[%s11267_s1 + $0x60c] ss:$16 sps:$4 sm:$0xff]  }
  0x84   :  { %5028 = vmatprep.subr.bf16.mxu0 %v7573_v10  ;;  %5561 = vmatprep.subr.bf16.mxu1 %v7576_v12  ;;  %v7663_v10 = vld [vmem:[%s11267_s1 + $0x600] ss:$16 sps:$4 sm:$0xff]   ;;  %v6370_v12 = vcombine.low %v9071_v11, %v9071_v11  ;;  %v7674_v11 = vld [vmem:[%s11267_s1 + $0x62c] ss:$16 sps:$4 sm:$0xff]  }
  0x85   :  { %5058 = vmatprep.mubr.bf16.mxu0 %v6371_v13  ;;  %5591 = vmatprep.mubr.bf16.mxu1 %v6371_v13  ;;  %v7666_v13 = vld [vmem:[%s11267_s1 + $0x608] ss:$16 sps:$4 sm:$0xff]  }
  0x87   :  { %5029 = vmatpush1.bf16.msra.mxu0 %v7571_v14  ;;  %5562 = vmatpush1.bf16.msra.mxu1 %v7574_v15  ;;  %v9269_v14 = vld [vmem:[%s11268_s0 + $0x18] sm:$0xff]  ;;  %v7671_v15 = vld [vmem:[%s11267_s1 + $0x624] ss:$16 sps:$4 sm:$0xff]  }
  0x88   :  { %5030 = vmatprep.subr.bf16.mxu0 %v7579_v16  ;;  %5563 = vmatprep.subr.bf16.mxu1 %v7582_v17  ;;  %v6373_v16 = vcombine.high %v9269_v14, %v9269_v14  ;;  %v7669_v17 = vld [vmem:[%s11267_s1 + $0x620] ss:$16 sps:$4 sm:$0xff]  }
  0x8b   :  { %5031 = vmatpush1.bf16.msra.mxu0 %v7577_v18  ;;  %5564 = vmatpush1.bf16.msra.mxu1 %v7580_v19  ;;  %v7672_v18 = vld [vmem:[%s11267_s1 + $0x628] ss:$16 sps:$4 sm:$0xff]   ;;  %v7677_v19 = vld [vmem:[%s11267_s1 + $0x644] ss:$16 sps:$4 sm:$0xff]  }
  0x8c   :  { %5032 = vmatprep.subr.bf16.mxu0 %v7585_v20  ;;  %5565 = vmatprep.subr.bf16.mxu1 %v7588_v21  ;;  %v7680_v20 = vld [vmem:[%s11267_s1 + $0x64c] ss:$16 sps:$4 sm:$0xff]   ;;  %v7675_v21 = vld [vmem:[%s11267_s1 + $0x640] ss:$16 sps:$4 sm:$0xff]  }
  0x8f   :  { %5033 = vmatpush1.bf16.msra.mxu0 %v7583_v22  ;;  %5566 = vmatpush1.bf16.msra.mxu1 %v7586_v23  ;;  %v7678_v22 = vld [vmem:[%s11267_s1 + $0x648] ss:$16 sps:$4 sm:$0xff]   ;;  %v7683_v23 = vld [vmem:[%s11267_s1 + $0x664] ss:$16 sps:$4 sm:$0xff]  }
  0x90   :  { %5034 = vmatprep.subr.bf16.mxu0 %v7591_v24  ;;  %5567 = vmatprep.subr.bf16.mxu1 %v7594_v25  ;;  %v7686_v24 = vld [vmem:[%s11267_s1 + $0x66c] ss:$16 sps:$4 sm:$0xff]   ;;  %v7681_v25 = vld [vmem:[%s11267_s1 + $0x660] ss:$16 sps:$4 sm:$0xff]  }
  0x93   :  { %5035 = vmatpush1.bf16.msra.mxu0 %v7589_v26  ;;  %5568 = vmatpush1.bf16.msra.mxu1 %v7592_v27  ;;  %v7684_v26 = vld [vmem:[%s11267_s1 + $0x668] ss:$16 sps:$4 sm:$0xff]   ;;  %v7689_v27 = vld [vmem:[%s11267_s1 + $0x684] ss:$16 sps:$4 sm:$0xff]  }
  0x94   :  { %5036 = vmatprep.subr.bf16.mxu0 %v7597_v28  ;;  %5569 = vmatprep.subr.bf16.mxu1 %v7600_v29  ;;  %v7692_v28 = vld [vmem:[%s11267_s1 + $0x68c] ss:$16 sps:$4 sm:$0xff]   ;;  %v7687_v29 = vld [vmem:[%s11267_s1 + $0x680] ss:$16 sps:$4 sm:$0xff]  }
  0x97   :  { %5037 = vmatpush1.bf16.msra.mxu0 %v7595_v30  ;;  %5570 = vmatpush1.bf16.msra.mxu1 %v7598_v31  ;;  %v7690_v30 = vld [vmem:[%s11267_s1 + $0x688] ss:$16 sps:$4 sm:$0xff]   ;;  %v7695_v31 = vld [vmem:[%s11267_s1 + $0x6a4] ss:$16 sps:$4 sm:$0xff]  }
  0x98   :  { %5038 = vmatprep.subr.bf16.mxu0 %v7603_v32  ;;  %5571 = vmatprep.subr.bf16.mxu1 %v7606_v33  ;;  %v7698_v32 = vld [vmem:[%s11267_s1 + $0x6ac] ss:$16 sps:$4 sm:$0xff]   ;;  %v7693_v33 = vld [vmem:[%s11267_s1 + $0x6a0] ss:$16 sps:$4 sm:$0xff]  }
  0x9b   :  { %5039 = vmatpush1.bf16.msra.mxu0 %v7601_v34  ;;  %5572 = vmatpush1.bf16.msra.mxu1 %v7604_v35  ;;  %v7696_v34 = vld [vmem:[%s11267_s1 + $0x6a8] ss:$16 sps:$4 sm:$0xff]   ;;  %v7701_v35 = vld [vmem:[%s11267_s1 + $0x6c4] ss:$16 sps:$4 sm:$0xff]  }
  0x9c   :  { %5040 = vmatprep.subr.bf16.mxu0 %v7609_v36  ;;  %5573 = vmatprep.subr.bf16.mxu1 %v7612_v37  ;;  %v7704_v36 = vld [vmem:[%s11267_s1 + $0x6cc] ss:$16 sps:$4 sm:$0xff]   ;;  %v7699_v37 = vld [vmem:[%s11267_s1 + $0x6c0] ss:$16 sps:$4 sm:$0xff]  }
  0x9f   :  { %5041 = vmatpush1.bf16.msra.mxu0 %v7607_v38  ;;  %5574 = vmatpush1.bf16.msra.mxu1 %v7610_v39  ;;  %v7702_v38 = vld [vmem:[%s11267_s1 + $0x6c8] ss:$16 sps:$4 sm:$0xff]   ;;  %v7707_v39 = vld [vmem:[%s11267_s1 + $0x6e4] ss:$16 sps:$4 sm:$0xff]  }
  0xa0   :  { %5042 = vmatprep.subr.bf16.mxu0 %v7615_v40  ;;  %5575 = vmatprep.subr.bf16.mxu1 %v7618_v41  ;;  %v7710_v40 = vld [vmem:[%s11267_s1 + $0x6ec] ss:$16 sps:$4 sm:$0xff]   ;;  %v7705_v41 = vld [vmem:[%s11267_s1 + $0x6e0] ss:$16 sps:$4 sm:$0xff]  }
  0xa3   :  { %5043 = vmatpush1.bf16.msra.mxu0 %v7613_v42  ;;  %5576 = vmatpush1.bf16.msra.mxu1 %v7616_v43  ;;  %v7708_v42 = vld [vmem:[%s11267_s1 + $0x6e8] ss:$16 sps:$4 sm:$0xff]   ;;  %v7713_v43 = vld [vmem:[%s11267_s1 + $0x704] ss:$16 sps:$4 sm:$0xff]  }
  0xa4   :  { %5044 = vmatprep.subr.bf16.mxu0 %v7621_v44  ;;  %5577 = vmatprep.subr.bf16.mxu1 %v7624_v45  ;;  %v7716_v44 = vld [vmem:[%s11267_s1 + $0x70c] ss:$16 sps:$4 sm:$0xff]   ;;  %v7711_v45 = vld [vmem:[%s11267_s1 + $0x700] ss:$16 sps:$4 sm:$0xff]  }
  0xa7   :  { %5045 = vmatpush1.bf16.msra.mxu0 %v7619_v46  ;;  %5578 = vmatpush1.bf16.msra.mxu1 %v7622_v47  ;;  %v7714_v46 = vld [vmem:[%s11267_s1 + $0x708] ss:$16 sps:$4 sm:$0xff]   ;;  %v7719_v47 = vld [vmem:[%s11267_s1 + $0x724] ss:$16 sps:$4 sm:$0xff]  }
  0xa8   :  { %5046 = vmatprep.subr.bf16.mxu0 %v7627_v48  ;;  %5579 = vmatprep.subr.bf16.mxu1 %v7630_v49  ;;  %v7722_v48 = vld [vmem:[%s11267_s1 + $0x72c] ss:$16 sps:$4 sm:$0xff]   ;;  %v7717_v49 = vld [vmem:[%s11267_s1 + $0x720] ss:$16 sps:$4 sm:$0xff]  }
  0xab   :  { %5047 = vmatpush1.bf16.msra.mxu0 %v7625_v50  ;;  %5580 = vmatpush1.bf16.msra.mxu1 %v7628_v51  ;;  %v7720_v50 = vld [vmem:[%s11267_s1 + $0x728] ss:$16 sps:$4 sm:$0xff]   ;;  %v7725_v51 = vld [vmem:[%s11267_s1 + $0x744] ss:$16 sps:$4 sm:$0xff]  }
  0xac   :  { %5048 = vmatprep.subr.bf16.mxu0 %v7633_v52  ;;  %5581 = vmatprep.subr.bf16.mxu1 %v7636_v53  ;;  %v7728_v52 = vld [vmem:[%s11267_s1 + $0x74c] ss:$16 sps:$4 sm:$0xff]   ;;  %v7723_v53 = vld [vmem:[%s11267_s1 + $0x740] ss:$16 sps:$4 sm:$0xff]  }
  0xaf   :  { %5049 = vmatpush1.bf16.msra.mxu0 %v7631_v54  ;;  %5582 = vmatpush1.bf16.msra.mxu1 %v7634_v55  ;;  %v7726_v54 = vld [vmem:[%s11267_s1 + $0x748] ss:$16 sps:$4 sm:$0xff]   ;;  %v7731_v55 = vld [vmem:[%s11267_s1 + $0x764] ss:$16 sps:$4 sm:$0xff]  }
  0xb0   :  { %5050 = vmatprep.subr.bf16.mxu0 %v7639_v56  ;;  %5583 = vmatprep.subr.bf16.mxu1 %v7642_v57  ;;  %v7734_v56 = vld [vmem:[%s11267_s1 + $0x76c] ss:$16 sps:$4 sm:$0xff]   ;;  %v7729_v57 = vld [vmem:[%s11267_s1 + $0x760] ss:$16 sps:$4 sm:$0xff]  }
  0xb3   :  { %5051 = vmatpush1.bf16.msra.mxu0 %v7637_v58  ;;  %5584 = vmatpush1.bf16.msra.mxu1 %v7640_v59  ;;  %v7732_v58 = vld [vmem:[%s11267_s1 + $0x768] ss:$16 sps:$4 sm:$0xff]   ;;  %v7737_v59 = vld [vmem:[%s11267_s1 + $0x784] ss:$16 sps:$4 sm:$0xff]  }
  0xb4   :  { %5052 = vmatprep.subr.bf16.mxu0 %v7645_v60  ;;  %5585 = vmatprep.subr.bf16.mxu1 %v7648_v61  ;;  %v7740_v60 = vld [vmem:[%s11267_s1 + $0x78c] ss:$16 sps:$4 sm:$0xff]   ;;  %v7735_v61 = vld [vmem:[%s11267_s1 + $0x780] ss:$16 sps:$4 sm:$0xff]  }
  0xb7   :  { %5053 = vmatpush1.bf16.msra.mxu0 %v7643_v62  ;;  %5586 = vmatpush1.bf16.msra.mxu1 %v7646_v63  ;;  %v7738_v62 = vld [vmem:[%s11267_s1 + $0x788] ss:$16 sps:$4 sm:$0xff]   ;;  %v7743_v63 = vld [vmem:[%s11267_s1 + $0x7a4] ss:$16 sps:$4 sm:$0xff]  }
  0xb8   :  { %5054 = vmatprep.subr.bf16.mxu0 %v7651_v0  ;;  %5587 = vmatprep.subr.bf16.mxu1 %v7654_v1  ;;  %v7746_v0 = vld [vmem:[%s11267_s1 + $0x7ac] ss:$16 sps:$4 sm:$0xff]   ;;  %v7741_v1 = vld [vmem:[%s11267_s1 + $0x7a0] ss:$16 sps:$4 sm:$0xff]  }
  0xbb   :  { %5055 = vmatpush1.bf16.msra.mxu0 %v7649_v2  ;;  %5588 = vmatpush1.bf16.msra.mxu1 %v7652_v3  ;;  %v7744_v2 = vld [vmem:[%s11267_s1 + $0x7a8] ss:$16 sps:$4 sm:$0xff]   ;;  %v7749_v3 = vld [vmem:[%s11267_s1 + $0x7c4] ss:$16 sps:$4 sm:$0xff]  }
  0xbc   :  { %5056 = vmatprep.subr.bf16.mxu0 %v7657_v4  ;;  %5589 = vmatprep.subr.bf16.mxu1 %v7660_v5  ;;  %v7752_v4 = vld [vmem:[%s11267_s1 + $0x7cc] ss:$16 sps:$4 sm:$0xff]   ;;  %v7747_v5 = vld [vmem:[%s11267_s1 + $0x7c0] ss:$16 sps:$4 sm:$0xff]  }
  0xbf   :  { %5057 = vmatpush1.bf16.msra.mxu0 %v7655_v6  ;;  %5590 = vmatpush1.bf16.msra.mxu1 %v7658_v7  ;;  %v7750_v6 = vld [vmem:[%s11267_s1 + $0x7c8] ss:$16 sps:$4 sm:$0xff]   ;;  %v7755_v7 = vld [vmem:[%s11267_s1 + $0x7e4] ss:$16 sps:$4 sm:$0xff]  }
  0xc0   :  { %5067 = vmatprep.subr.bf16.mxu0 %v7665_v8  ;;  %5600 = vmatprep.subr.bf16.mxu1 %v7668_v9  ;;  %v7758_v8 = vld [vmem:[%s11267_s1 + $0x7ec] ss:$16 sps:$4 sm:$0xff]   ;;  %v7753_v9 = vld [vmem:[%s11267_s1 + $0x7e0] ss:$16 sps:$4 sm:$0xff]  }
  0xc2   :  { %5059 = vmatmul.mubr.bf16.vlgmr.msra.gmra.mrb[0].mxu0 %v6370_v12  ;;  %5592 = vmatmul.mubr.bf16.vlgmr.msra.gmra.mrb[0].mxu1 %v6370_v12  ;;  %v7763_v12 = vld [vmem:[%s11267_s1 + $0x804] ss:$16 sps:$4 sm:$0xff]  }
  0xc3   :  { %5068 = vmatpush1.bf16.msra.mxu0 %v7663_v10  ;;  %5601 = vmatpush1.bf16.msra.mxu1 %v7666_v13  ;;  %v7756_v10 = vld [vmem:[%s11267_s1 + $0x7e8] ss:$16 sps:$4 sm:$0xff]   ;;  %v7766_v13 = vld [vmem:[%s11267_s1 + $0x80c] ss:$16 sps:$4 sm:$0xff]  }
  0xc4   :  { %5069 = vmatprep.subr.bf16.mxu0 %v7671_v15  ;;  %5602 = vmatprep.subr.bf16.mxu1 %v7674_v11  ;;  %v7761_v15 = vld [vmem:[%s11267_s1 + $0x800] ss:$16 sps:$4 sm:$0xff]   ;;  %v6372_v11 = vcombine.low %v9269_v14, %v9269_v14  ;;  %v7772_v14 = vld [vmem:[%s11267_s1 + $0x82c] ss:$16 sps:$4 sm:$0xff]  }
  0xc5   :  { %5099 = vmatprep.mubr.bf16.mxu0 %v6373_v16  ;;  %5632 = vmatprep.mubr.bf16.mxu1 %v6373_v16  ;;  %v9467_v16 = vld [vmem:[%s11268_s0 + $0x20] sm:$0xff] }
  0xc7   :  { %5070 = vmatpush1.bf16.msra.mxu0 %v7669_v17  ;;  %5603 = vmatpush1.bf16.msra.mxu1 %v7672_v18  ;;  %v7764_v17 = vld [vmem:[%s11267_s1 + $0x808] ss:$16 sps:$4 sm:$0xff]   ;;  %v7769_v18 = vld [vmem:[%s11267_s1 + $0x824] ss:$16 sps:$4 sm:$0xff]  }
  0xc8   :  { %5071 = vmatprep.subr.bf16.mxu0 %v7677_v19  ;;  %5604 = vmatprep.subr.bf16.mxu1 %v7680_v20  ;;  %v6375_v19 = vcombine.high %v9467_v16, %v9467_v16  ;;  %v7767_v20 = vld [vmem:[%s11267_s1 + $0x820] ss:$16 sps:$4 sm:$0xff]  }
  0xcb   :  { %5072 = vmatpush1.bf16.msra.mxu0 %v7675_v21  ;;  %5605 = vmatpush1.bf16.msra.mxu1 %v7678_v22  ;;  %v7770_v21 = vld [vmem:[%s11267_s1 + $0x828] ss:$16 sps:$4 sm:$0xff]   ;;  %v7775_v22 = vld [vmem:[%s11267_s1 + $0x844] ss:$16 sps:$4 sm:$0xff]  }
  0xcc   :  { %5073 = vmatprep.subr.bf16.mxu0 %v7683_v23  ;;  %5606 = vmatprep.subr.bf16.mxu1 %v7686_v24  ;;  %v7778_v23 = vld [vmem:[%s11267_s1 + $0x84c] ss:$16 sps:$4 sm:$0xff]   ;;  %v7773_v24 = vld [vmem:[%s11267_s1 + $0x840] ss:$16 sps:$4 sm:$0xff]  }
  0xcf   :  { %5074 = vmatpush1.bf16.msra.mxu0 %v7681_v25  ;;  %5607 = vmatpush1.bf16.msra.mxu1 %v7684_v26  ;;  %v7776_v25 = vld [vmem:[%s11267_s1 + $0x848] ss:$16 sps:$4 sm:$0xff]   ;;  %v7781_v26 = vld [vmem:[%s11267_s1 + $0x864] ss:$16 sps:$4 sm:$0xff]  }
  0xd0   :  { %5075 = vmatprep.subr.bf16.mxu0 %v7689_v27  ;;  %5608 = vmatprep.subr.bf16.mxu1 %v7692_v28  ;;  %v7784_v27 = vld [vmem:[%s11267_s1 + $0x86c] ss:$16 sps:$4 sm:$0xff]   ;;  %v7779_v28 = vld [vmem:[%s11267_s1 + $0x860] ss:$16 sps:$4 sm:$0xff]  }
  0xd3   :  { %5076 = vmatpush1.bf16.msra.mxu0 %v7687_v29  ;;  %5609 = vmatpush1.bf16.msra.mxu1 %v7690_v30  ;;  %v7782_v29 = vld [vmem:[%s11267_s1 + $0x868] ss:$16 sps:$4 sm:$0xff]   ;;  %v7787_v30 = vld [vmem:[%s11267_s1 + $0x884] ss:$16 sps:$4 sm:$0xff]  }
  0xd4   :  { %5077 = vmatprep.subr.bf16.mxu0 %v7695_v31  ;;  %5610 = vmatprep.subr.bf16.mxu1 %v7698_v32  ;;  %v7790_v31 = vld [vmem:[%s11267_s1 + $0x88c] ss:$16 sps:$4 sm:$0xff]   ;;  %v7785_v32 = vld [vmem:[%s11267_s1 + $0x880] ss:$16 sps:$4 sm:$0xff]  }
  0xd7   :  { %5078 = vmatpush1.bf16.msra.mxu0 %v7693_v33  ;;  %5611 = vmatpush1.bf16.msra.mxu1 %v7696_v34  ;;  %v7788_v33 = vld [vmem:[%s11267_s1 + $0x888] ss:$16 sps:$4 sm:$0xff]   ;;  %v7793_v34 = vld [vmem:[%s11267_s1 + $0x8a4] ss:$16 sps:$4 sm:$0xff]  }
  0xd8   :  { %5079 = vmatprep.subr.bf16.mxu0 %v7701_v35  ;;  %5612 = vmatprep.subr.bf16.mxu1 %v7704_v36  ;;  %v7796_v35 = vld [vmem:[%s11267_s1 + $0x8ac] ss:$16 sps:$4 sm:$0xff]   ;;  %v7791_v36 = vld [vmem:[%s11267_s1 + $0x8a0] ss:$16 sps:$4 sm:$0xff]  }
  0xdb   :  { %5080 = vmatpush1.bf16.msra.mxu0 %v7699_v37  ;;  %5613 = vmatpush1.bf16.msra.mxu1 %v7702_v38  ;;  %v7794_v37 = vld [vmem:[%s11267_s1 + $0x8a8] ss:$16 sps:$4 sm:$0xff]   ;;  %v7799_v38 = vld [vmem:[%s11267_s1 + $0x8c4] ss:$16 sps:$4 sm:$0xff]  }
  0xdc   :  { %5081 = vmatprep.subr.bf16.mxu0 %v7707_v39  ;;  %5614 = vmatprep.subr.bf16.mxu1 %v7710_v40  ;;  %v7802_v39 = vld [vmem:[%s11267_s1 + $0x8cc] ss:$16 sps:$4 sm:$0xff]   ;;  %v7797_v40 = vld [vmem:[%s11267_s1 + $0x8c0] ss:$16 sps:$4 sm:$0xff]  }
  0xdf   :  { %5082 = vmatpush1.bf16.msra.mxu0 %v7705_v41  ;;  %5615 = vmatpush1.bf16.msra.mxu1 %v7708_v42  ;;  %v7800_v41 = vld [vmem:[%s11267_s1 + $0x8c8] ss:$16 sps:$4 sm:$0xff]   ;;  %v7805_v42 = vld [vmem:[%s11267_s1 + $0x8e4] ss:$16 sps:$4 sm:$0xff]  }
  0xe0   :  { %5083 = vmatprep.subr.bf16.mxu0 %v7713_v43  ;;  %5616 = vmatprep.subr.bf16.mxu1 %v7716_v44  ;;  %v7808_v43 = vld [vmem:[%s11267_s1 + $0x8ec] ss:$16 sps:$4 sm:$0xff]   ;;  %v7803_v44 = vld [vmem:[%s11267_s1 + $0x8e0] ss:$16 sps:$4 sm:$0xff]  }
  0xe3   :  { %5084 = vmatpush1.bf16.msra.mxu0 %v7711_v45  ;;  %5617 = vmatpush1.bf16.msra.mxu1 %v7714_v46  ;;  %v7806_v45 = vld [vmem:[%s11267_s1 + $0x8e8] ss:$16 sps:$4 sm:$0xff]   ;;  %v7811_v46 = vld [vmem:[%s11267_s1 + $0x904] ss:$16 sps:$4 sm:$0xff]  }
  0xe4   :  { %5085 = vmatprep.subr.bf16.mxu0 %v7719_v47  ;;  %5618 = vmatprep.subr.bf16.mxu1 %v7722_v48  ;;  %v7814_v47 = vld [vmem:[%s11267_s1 + $0x90c] ss:$16 sps:$4 sm:$0xff]   ;;  %v7809_v48 = vld [vmem:[%s11267_s1 + $0x900] ss:$16 sps:$4 sm:$0xff]  }
  0xe7   :  { %5086 = vmatpush1.bf16.msra.mxu0 %v7717_v49  ;;  %5619 = vmatpush1.bf16.msra.mxu1 %v7720_v50  ;;  %v7812_v49 = vld [vmem:[%s11267_s1 + $0x908] ss:$16 sps:$4 sm:$0xff]   ;;  %v7817_v50 = vld [vmem:[%s11267_s1 + $0x924] ss:$16 sps:$4 sm:$0xff]  }
  0xe8   :  { %5087 = vmatprep.subr.bf16.mxu0 %v7725_v51  ;;  %5620 = vmatprep.subr.bf16.mxu1 %v7728_v52  ;;  %v7820_v51 = vld [vmem:[%s11267_s1 + $0x92c] ss:$16 sps:$4 sm:$0xff]   ;;  %v7815_v52 = vld [vmem:[%s11267_s1 + $0x920] ss:$16 sps:$4 sm:$0xff]  }
  0xeb   :  { %5088 = vmatpush1.bf16.msra.mxu0 %v7723_v53  ;;  %5621 = vmatpush1.bf16.msra.mxu1 %v7726_v54  ;;  %v7818_v53 = vld [vmem:[%s11267_s1 + $0x928] ss:$16 sps:$4 sm:$0xff]   ;;  %v7823_v54 = vld [vmem:[%s11267_s1 + $0x944] ss:$16 sps:$4 sm:$0xff]  }
  0xec   :  { %5089 = vmatprep.subr.bf16.mxu0 %v7731_v55  ;;  %5622 = vmatprep.subr.bf16.mxu1 %v7734_v56  ;;  %v7826_v55 = vld [vmem:[%s11267_s1 + $0x94c] ss:$16 sps:$4 sm:$0xff]   ;;  %v7821_v56 = vld [vmem:[%s11267_s1 + $0x940] ss:$16 sps:$4 sm:$0xff]  }
  0xef   :  { %5090 = vmatpush1.bf16.msra.mxu0 %v7729_v57  ;;  %5623 = vmatpush1.bf16.msra.mxu1 %v7732_v58  ;;  %v7824_v57 = vld [vmem:[%s11267_s1 + $0x948] ss:$16 sps:$4 sm:$0xff]   ;;  %v7829_v58 = vld [vmem:[%s11267_s1 + $0x964] ss:$16 sps:$4 sm:$0xff]  }
  0xf0   :  { %5091 = vmatprep.subr.bf16.mxu0 %v7737_v59  ;;  %5624 = vmatprep.subr.bf16.mxu1 %v7740_v60  ;;  %v7832_v59 = vld [vmem:[%s11267_s1 + $0x96c] ss:$16 sps:$4 sm:$0xff]   ;;  %v7827_v60 = vld [vmem:[%s11267_s1 + $0x960] ss:$16 sps:$4 sm:$0xff]  }
  0xf3   :  { %5092 = vmatpush1.bf16.msra.mxu0 %v7735_v61  ;;  %5625 = vmatpush1.bf16.msra.mxu1 %v7738_v62  ;;  %v7830_v61 = vld [vmem:[%s11267_s1 + $0x968] ss:$16 sps:$4 sm:$0xff]   ;;  %v7835_v62 = vld [vmem:[%s11267_s1 + $0x984] ss:$16 sps:$4 sm:$0xff]  }
  0xf4   :  { %5093 = vmatprep.subr.bf16.mxu0 %v7743_v63  ;;  %5626 = vmatprep.subr.bf16.mxu1 %v7746_v0  ;;  %v7838_v63 = vld [vmem:[%s11267_s1 + $0x98c] ss:$16 sps:$4 sm:$0xff]   ;;  %v7833_v0 = vld [vmem:[%s11267_s1 + $0x980] ss:$16 sps:$4 sm:$0xff]  }
  0xf7   :  { %5094 = vmatpush1.bf16.msra.mxu0 %v7741_v1  ;;  %5627 = vmatpush1.bf16.msra.mxu1 %v7744_v2  ;;  %v7836_v1 = vld [vmem:[%s11267_s1 + $0x988] ss:$16 sps:$4 sm:$0xff]   ;;  %v7841_v2 = vld [vmem:[%s11267_s1 + $0x9a4] ss:$16 sps:$4 sm:$0xff]  }
  0xf8   :  { %5095 = vmatprep.subr.bf16.mxu0 %v7749_v3  ;;  %5628 = vmatprep.subr.bf16.mxu1 %v7752_v4  ;;  %v7844_v3 = vld [vmem:[%s11267_s1 + $0x9ac] ss:$16 sps:$4 sm:$0xff]   ;;  %v7839_v4 = vld [vmem:[%s11267_s1 + $0x9a0] ss:$16 sps:$4 sm:$0xff]  }
  0xfb   :  { %5096 = vmatpush1.bf16.msra.mxu0 %v7747_v5  ;;  %5629 = vmatpush1.bf16.msra.mxu1 %v7750_v6  ;;  %v7842_v5 = vld [vmem:[%s11267_s1 + $0x9a8] ss:$16 sps:$4 sm:$0xff]   ;;  %v7847_v6 = vld [vmem:[%s11267_s1 + $0x9c4] ss:$16 sps:$4 sm:$0xff]  }
  0xfc   :  { %5097 = vmatprep.subr.bf16.mxu0 %v7755_v7  ;;  %5630 = vmatprep.subr.bf16.mxu1 %v7758_v8  ;;  %v7850_v7 = vld [vmem:[%s11267_s1 + $0x9cc] ss:$16 sps:$4 sm:$0xff]   ;;  %v7845_v8 = vld [vmem:[%s11267_s1 + $0x9c0] ss:$16 sps:$4 sm:$0xff]  }
  0xff   :  { %5098 = vmatpush1.bf16.msra.mxu0 %v7753_v9  ;;  %5631 = vmatpush1.bf16.msra.mxu1 %v7756_v10  ;;  %v7848_v9 = vld [vmem:[%s11267_s1 + $0x9c8] ss:$16 sps:$4 sm:$0xff]   ;;  %v7853_v10 = vld [vmem:[%s11267_s1 + $0x9e4] ss:$16 sps:$4 sm:$0xff]  }
 0x100   :  { %5108 = vmatprep.subr.bf16.mxu0 %v7763_v12  ;;  %5641 = vmatprep.subr.bf16.mxu1 %v7766_v13  ;;  %v7856_v12 = vld [vmem:[%s11267_s1 + $0x9ec] ss:$16 sps:$4 sm:$0xff]   ;;  %v7851_v13 = vld [vmem:[%s11267_s1 + $0x9e0] ss:$16 sps:$4 sm:$0xff]  }
 0x102   :  { %5100 = vmatmul.mubr.bf16.vlgmr.msra.gmra.mrb[0].mxu0 %v6372_v11  ;;  %5633 = vmatmul.mubr.bf16.vlgmr.msra.gmra.mrb[0].mxu1 %v6372_v11  ;;  %v7861_v11 = vld [vmem:[%s11267_s1 + $0xa04] ss:$16 sps:$4 sm:$0xff]  }
 0x103   :  { %5109 = vmatpush1.bf16.msra.mxu0 %v7761_v15  ;;  %5642 = vmatpush1.bf16.msra.mxu1 %v7764_v17  ;;  %v7854_v15 = vld [vmem:[%s11267_s1 + $0x9e8] ss:$16 sps:$4 sm:$0xff]   ;;  %v7864_v17 = vld [vmem:[%s11267_s1 + $0xa0c] ss:$16 sps:$4 sm:$0xff]  }
 0x104   :  { %5110 = vmatprep.subr.bf16.mxu0 %v7769_v18  ;;  %5643 = vmatprep.subr.bf16.mxu1 %v7772_v14  ;;  %v9663_v18 = vld [vmem:[%s11268_s0 + $0x28] sm:$0xff]  ;;  %v6374_v14 = vcombine.low %v9467_v16, %v9467_v16 }
 0x105   :  { %5140 = vmatprep.mubr.bf16.mxu0 %v6375_v19  ;;  %5673 = vmatprep.mubr.bf16.mxu1 %v6375_v19  ;;  %v7859_v19 = vld [vmem:[%s11267_s1 + $0xa00] ss:$16 sps:$4 sm:$0xff]   ;;  %v7870_v16 = vld [vmem:[%s11267_s1 + $0xa2c] ss:$16 sps:$4 sm:$0xff]  }
 0x107   :  { %5111 = vmatpush1.bf16.msra.mxu0 %v7767_v20  ;;  %5644 = vmatpush1.bf16.msra.mxu1 %v7770_v21  ;;  %v7862_v20 = vld [vmem:[%s11267_s1 + $0xa08] ss:$16 sps:$4 sm:$0xff]   ;;  %v7867_v21 = vld [vmem:[%s11267_s1 + $0xa24] ss:$16 sps:$4 sm:$0xff]  }
 0x108   :  { %5112 = vmatprep.subr.bf16.mxu0 %v7775_v22  ;;  %5645 = vmatprep.subr.bf16.mxu1 %v7778_v23  ;;  %v6377_v22 = vcombine.high %v9663_v18, %v9663_v18  ;;  %v7865_v23 = vld [vmem:[%s11267_s1 + $0xa20] ss:$16 sps:$4 sm:$0xff]  }
 0x10b   :  { %5113 = vmatpush1.bf16.msra.mxu0 %v7773_v24  ;;  %5646 = vmatpush1.bf16.msra.mxu1 %v7776_v25  ;;  %v7868_v24 = vld [vmem:[%s11267_s1 + $0xa28] ss:$16 sps:$4 sm:$0xff]   ;;  %v7873_v25 = vld [vmem:[%s11267_s1 + $0xa44] ss:$16 sps:$4 sm:$0xff]  }
 0x10c   :  { %5114 = vmatprep.subr.bf16.mxu0 %v7781_v26  ;;  %5647 = vmatprep.subr.bf16.mxu1 %v7784_v27  ;;  %v7876_v26 = vld [vmem:[%s11267_s1 + $0xa4c] ss:$16 sps:$4 sm:$0xff]   ;;  %v7871_v27 = vld [vmem:[%s11267_s1 + $0xa40] ss:$16 sps:$4 sm:$0xff]  }
 0x10f   :  { %5115 = vmatpush1.bf16.msra.mxu0 %v7779_v28  ;;  %5648 = vmatpush1.bf16.msra.mxu1 %v7782_v29  ;;  %v7874_v28 = vld [vmem:[%s11267_s1 + $0xa48] ss:$16 sps:$4 sm:$0xff]   ;;  %v7879_v29 = vld [vmem:[%s11267_s1 + $0xa64] ss:$16 sps:$4 sm:$0xff]  }
 0x110   :  { %5116 = vmatprep.subr.bf16.mxu0 %v7787_v30  ;;  %5649 = vmatprep.subr.bf16.mxu1 %v7790_v31  ;;  %v7882_v30 = vld [vmem:[%s11267_s1 + $0xa6c] ss:$16 sps:$4 sm:$0xff]   ;;  %v7877_v31 = vld [vmem:[%s11267_s1 + $0xa60] ss:$16 sps:$4 sm:$0xff]  }
 0x113   :  { %5117 = vmatpush1.bf16.msra.mxu0 %v7785_v32  ;;  %5650 = vmatpush1.bf16.msra.mxu1 %v7788_v33  ;;  %v7880_v32 = vld [vmem:[%s11267_s1 + $0xa68] ss:$16 sps:$4 sm:$0xff]   ;;  %v7885_v33 = vld [vmem:[%s11267_s1 + $0xa84] ss:$16 sps:$4 sm:$0xff]  }
 0x114   :  { %5118 = vmatprep.subr.bf16.mxu0 %v7793_v34  ;;  %5651 = vmatprep.subr.bf16.mxu1 %v7796_v35  ;;  %v7888_v34 = vld [vmem:[%s11267_s1 + $0xa8c] ss:$16 sps:$4 sm:$0xff]   ;;  %v7883_v35 = vld [vmem:[%s11267_s1 + $0xa80] ss:$16 sps:$4 sm:$0xff]  }
 0x117   :  { %5119 = vmatpush1.bf16.msra.mxu0 %v7791_v36  ;;  %5652 = vmatpush1.bf16.msra.mxu1 %v7794_v37  ;;  %v7886_v36 = vld [vmem:[%s11267_s1 + $0xa88] ss:$16 sps:$4 sm:$0xff]   ;;  %v7891_v37 = vld [vmem:[%s11267_s1 + $0xaa4] ss:$16 sps:$4 sm:$0xff]  }
 0x118   :  { %5120 = vmatprep.subr.bf16.mxu0 %v7799_v38  ;;  %5653 = vmatprep.subr.bf16.mxu1 %v7802_v39  ;;  %v7894_v38 = vld [vmem:[%s11267_s1 + $0xaac] ss:$16 sps:$4 sm:$0xff]   ;;  %v7889_v39 = vld [vmem:[%s11267_s1 + $0xaa0] ss:$16 sps:$4 sm:$0xff]  }
 0x11b   :  { %5121 = vmatpush1.bf16.msra.mxu0 %v7797_v40  ;;  %5654 = vmatpush1.bf16.msra.mxu1 %v7800_v41  ;;  %v7892_v40 = vld [vmem:[%s11267_s1 + $0xaa8] ss:$16 sps:$4 sm:$0xff]   ;;  %v7897_v41 = vld [vmem:[%s11267_s1 + $0xac4] ss:$16 sps:$4 sm:$0xff]  }
 0x11c   :  { %5122 = vmatprep.subr.bf16.mxu0 %v7805_v42  ;;  %5655 = vmatprep.subr.bf16.mxu1 %v7808_v43  ;;  %v7900_v42 = vld [vmem:[%s11267_s1 + $0xacc] ss:$16 sps:$4 sm:$0xff]   ;;  %v7895_v43 = vld [vmem:[%s11267_s1 + $0xac0] ss:$16 sps:$4 sm:$0xff]  }
 0x11f   :  { %5123 = vmatpush1.bf16.msra.mxu0 %v7803_v44  ;;  %5656 = vmatpush1.bf16.msra.mxu1 %v7806_v45  ;;  %v7898_v44 = vld [vmem:[%s11267_s1 + $0xac8] ss:$16 sps:$4 sm:$0xff]   ;;  %v7903_v45 = vld [vmem:[%s11267_s1 + $0xae4] ss:$16 sps:$4 sm:$0xff]  }
 0x120   :  { %5124 = vmatprep.subr.bf16.mxu0 %v7811_v46  ;;  %5657 = vmatprep.subr.bf16.mxu1 %v7814_v47  ;;  %v7906_v46 = vld [vmem:[%s11267_s1 + $0xaec] ss:$16 sps:$4 sm:$0xff]   ;;  %v7901_v47 = vld [vmem:[%s11267_s1 + $0xae0] ss:$16 sps:$4 sm:$0xff]  }
 0x123   :  { %5125 = vmatpush1.bf16.msra.mxu0 %v7809_v48  ;;  %5658 = vmatpush1.bf16.msra.mxu1 %v7812_v49  ;;  %v7904_v48 = vld [vmem:[%s11267_s1 + $0xae8] ss:$16 sps:$4 sm:$0xff]   ;;  %v7909_v49 = vld [vmem:[%s11267_s1 + $0xb04] ss:$16 sps:$4 sm:$0xff]  }
 0x124   :  { %5126 = vmatprep.subr.bf16.mxu0 %v7817_v50  ;;  %5659 = vmatprep.subr.bf16.mxu1 %v7820_v51  ;;  %v7912_v50 = vld [vmem:[%s11267_s1 + $0xb0c] ss:$16 sps:$4 sm:$0xff]   ;;  %v7907_v51 = vld [vmem:[%s11267_s1 + $0xb00] ss:$16 sps:$4 sm:$0xff]  }
 0x127   :  { %5127 = vmatpush1.bf16.msra.mxu0 %v7815_v52  ;;  %5660 = vmatpush1.bf16.msra.mxu1 %v7818_v53  ;;  %v7910_v52 = vld [vmem:[%s11267_s1 + $0xb08] ss:$16 sps:$4 sm:$0xff]   ;;  %v7915_v53 = vld [vmem:[%s11267_s1 + $0xb24] ss:$16 sps:$4 sm:$0xff]  }
 0x128   :  { %5128 = vmatprep.subr.bf16.mxu0 %v7823_v54  ;;  %5661 = vmatprep.subr.bf16.mxu1 %v7826_v55  ;;  %v7918_v54 = vld [vmem:[%s11267_s1 + $0xb2c] ss:$16 sps:$4 sm:$0xff]   ;;  %v7913_v55 = vld [vmem:[%s11267_s1 + $0xb20] ss:$16 sps:$4 sm:$0xff]  }
 0x12b   :  { %5129 = vmatpush1.bf16.msra.mxu0 %v7821_v56  ;;  %5662 = vmatpush1.bf16.msra.mxu1 %v7824_v57  ;;  %v7916_v56 = vld [vmem:[%s11267_s1 + $0xb28] ss:$16 sps:$4 sm:$0xff]   ;;  %v7921_v57 = vld [vmem:[%s11267_s1 + $0xb44] ss:$16 sps:$4 sm:$0xff]  }
 0x12c   :  { %5130 = vmatprep.subr.bf16.mxu0 %v7829_v58  ;;  %5663 = vmatprep.subr.bf16.mxu1 %v7832_v59  ;;  %v7924_v58 = vld [vmem:[%s11267_s1 + $0xb4c] ss:$16 sps:$4 sm:$0xff]   ;;  %v7919_v59 = vld [vmem:[%s11267_s1 + $0xb40] ss:$16 sps:$4 sm:$0xff]  }
 0x12f   :  { %5131 = vmatpush1.bf16.msra.mxu0 %v7827_v60  ;;  %5664 = vmatpush1.bf16.msra.mxu1 %v7830_v61  ;;  %v7922_v60 = vld [vmem:[%s11267_s1 + $0xb48] ss:$16 sps:$4 sm:$0xff]   ;;  %v7927_v61 = vld [vmem:[%s11267_s1 + $0xb64] ss:$16 sps:$4 sm:$0xff]  }
 0x130   :  { %5132 = vmatprep.subr.bf16.mxu0 %v7835_v62  ;;  %5665 = vmatprep.subr.bf16.mxu1 %v7838_v63  ;;  %v7930_v62 = vld [vmem:[%s11267_s1 + $0xb6c] ss:$16 sps:$4 sm:$0xff]   ;;  %v7925_v63 = vld [vmem:[%s11267_s1 + $0xb60] ss:$16 sps:$4 sm:$0xff]  }
 0x133   :  { %5133 = vmatpush1.bf16.msra.mxu0 %v7833_v0  ;;  %5666 = vmatpush1.bf16.msra.mxu1 %v7836_v1  ;;  %v7928_v0 = vld [vmem:[%s11267_s1 + $0xb68] ss:$16 sps:$4 sm:$0xff]   ;;  %v7933_v1 = vld [vmem:[%s11267_s1 + $0xb84] ss:$16 sps:$4 sm:$0xff]  }
 0x134   :  { %5134 = vmatprep.subr.bf16.mxu0 %v7841_v2  ;;  %5667 = vmatprep.subr.bf16.mxu1 %v7844_v3  ;;  %v7936_v2 = vld [vmem:[%s11267_s1 + $0xb8c] ss:$16 sps:$4 sm:$0xff]   ;;  %v7931_v3 = vld [vmem:[%s11267_s1 + $0xb80] ss:$16 sps:$4 sm:$0xff]  }
 0x137   :  { %5135 = vmatpush1.bf16.msra.mxu0 %v7839_v4  ;;  %5668 = vmatpush1.bf16.msra.mxu1 %v7842_v5  ;;  %v7934_v4 = vld [vmem:[%s11267_s1 + $0xb88] ss:$16 sps:$4 sm:$0xff]   ;;  %v7939_v5 = vld [vmem:[%s11267_s1 + $0xba4] ss:$16 sps:$4 sm:$0xff]  }
 0x138   :  { %5136 = vmatprep.subr.bf16.mxu0 %v7847_v6  ;;  %5669 = vmatprep.subr.bf16.mxu1 %v7850_v7  ;;  %v7942_v6 = vld [vmem:[%s11267_s1 + $0xbac] ss:$16 sps:$4 sm:$0xff]   ;;  %v7937_v7 = vld [vmem:[%s11267_s1 + $0xba0] ss:$16 sps:$4 sm:$0xff]  }
 0x13b   :  { %5137 = vmatpush1.bf16.msra.mxu0 %v7845_v8  ;;  %5670 = vmatpush1.bf16.msra.mxu1 %v7848_v9  ;;  %v7940_v8 = vld [vmem:[%s11267_s1 + $0xba8] ss:$16 sps:$4 sm:$0xff]   ;;  %v7945_v9 = vld [vmem:[%s11267_s1 + $0xbc4] ss:$16 sps:$4 sm:$0xff]  }
 0x13c   :  { %5138 = vmatprep.subr.bf16.mxu0 %v7853_v10  ;;  %5671 = vmatprep.subr.bf16.mxu1 %v7856_v12  ;;  %v7948_v10 = vld [vmem:[%s11267_s1 + $0xbcc] ss:$16 sps:$4 sm:$0xff]   ;;  %v7943_v12 = vld [vmem:[%s11267_s1 + $0xbc0] ss:$16 sps:$4 sm:$0xff]  }
 0x13f   :  { %5139 = vmatpush1.bf16.msra.mxu0 %v7851_v13  ;;  %5672 = vmatpush1.bf16.msra.mxu1 %v7854_v15  ;;  %v7946_v13 = vld [vmem:[%s11267_s1 + $0xbc8] ss:$16 sps:$4 sm:$0xff]   ;;  %v7951_v15 = vld [vmem:[%s11267_s1 + $0xbe4] ss:$16 sps:$4 sm:$0xff]  }
 0x140   :  { %5149 = vmatprep.subr.bf16.mxu0 %v7861_v11  ;;  %5682 = vmatprep.subr.bf16.mxu1 %v7864_v17  ;;  %v7954_v11 = vld [vmem:[%s11267_s1 + $0xbec] ss:$16 sps:$4 sm:$0xff]   ;;  %v7949_v17 = vld [vmem:[%s11267_s1 + $0xbe0] ss:$16 sps:$4 sm:$0xff]  }
 0x142   :  { %5141 = vmatmul.mubr.bf16.vlgmr.msra.gmra.mrb[0].mxu0 %v6374_v14  ;;  %5674 = vmatmul.mubr.bf16.vlgmr.msra.gmra.mrb[0].mxu1 %v6374_v14  ;;  %v7952_v14 = vld [vmem:[%s11267_s1 + $0xbe8] ss:$16 sps:$4 sm:$0xff]  }
 0x143   :  { %5150 = vmatpush1.bf16.msra.mxu0 %v7859_v19  ;;  %5683 = vmatpush1.bf16.msra.mxu1 %v7862_v20  ;;  %v7959_v19 = vld [vmem:[%s11267_s1 + $0xc04] ss:$16 sps:$4 sm:$0xff]   ;;  %v7962_v20 = vld [vmem:[%s11267_s1 + $0xc0c] ss:$16 sps:$4 sm:$0xff]  }
 0x144   :  { %5151 = vmatprep.subr.bf16.mxu0 %v7867_v21  ;;  %5684 = vmatprep.subr.bf16.mxu1 %v7870_v16  ;;  %v9864_v21 = vld [vmem:[%s11268_s0 + $0x30] sm:$0xff]  ;;  %v6376_v16 = vcombine.low %v9663_v18, %v9663_v18  ;;  %v7968_v18 = vld [vmem:[%s11267_s1 + $0xc2c] ss:$16 sps:$4 sm:$0xff]  }
 0x145   :  { %5181 = vmatprep.mubr.bf16.mxu0 %v6377_v22  ;;  %5714 = vmatprep.mubr.bf16.mxu1 %v6377_v22  ;;  %v7957_v22 = vld [vmem:[%s11267_s1 + $0xc00] ss:$16 sps:$4 sm:$0xff]  }
 0x147   :  { %5152 = vmatpush1.bf16.msra.mxu0 %v7865_v23  ;;  %5685 = vmatpush1.bf16.msra.mxu1 %v7868_v24  ;;  %v7960_v23 = vld [vmem:[%s11267_s1 + $0xc08] ss:$16 sps:$4 sm:$0xff]   ;;  %v7965_v24 = vld [vmem:[%s11267_s1 + $0xc24] ss:$16 sps:$4 sm:$0xff]  }
 0x148   :  { %5153 = vmatprep.subr.bf16.mxu0 %v7873_v25  ;;  %5686 = vmatprep.subr.bf16.mxu1 %v7876_v26  ;;  %v6379_v25 = vcombine.high %v9864_v21, %v9864_v21  ;;  %v7963_v26 = vld [vmem:[%s11267_s1 + $0xc20] ss:$16 sps:$4 sm:$0xff]  }
 0x14b   :  { %5154 = vmatpush1.bf16.msra.mxu0 %v7871_v27  ;;  %5687 = vmatpush1.bf16.msra.mxu1 %v7874_v28  ;;  %v7966_v27 = vld [vmem:[%s11267_s1 + $0xc28] ss:$16 sps:$4 sm:$0xff]   ;;  %v7971_v28 = vld [vmem:[%s11267_s1 + $0xc44] ss:$16 sps:$4 sm:$0xff]  }
 0x14c   :  { %5155 = vmatprep.subr.bf16.mxu0 %v7879_v29  ;;  %5688 = vmatprep.subr.bf16.mxu1 %v7882_v30  ;;  %v7974_v29 = vld [vmem:[%s11267_s1 + $0xc4c] ss:$16 sps:$4 sm:$0xff]   ;;  %v7969_v30 = vld [vmem:[%s11267_s1 + $0xc40] ss:$16 sps:$4 sm:$0xff]  }
 0x14f   :  { %5156 = vmatpush1.bf16.msra.mxu0 %v7877_v31  ;;  %5689 = vmatpush1.bf16.msra.mxu1 %v7880_v32  ;;  %v7972_v31 = vld [vmem:[%s11267_s1 + $0xc48] ss:$16 sps:$4 sm:$0xff]   ;;  %v7977_v32 = vld [vmem:[%s11267_s1 + $0xc64] ss:$16 sps:$4 sm:$0xff]  }
 0x150   :  { %5157 = vmatprep.subr.bf16.mxu0 %v7885_v33  ;;  %5690 = vmatprep.subr.bf16.mxu1 %v7888_v34  ;;  %v7980_v33 = vld [vmem:[%s11267_s1 + $0xc6c] ss:$16 sps:$4 sm:$0xff]   ;;  %v7975_v34 = vld [vmem:[%s11267_s1 + $0xc60] ss:$16 sps:$4 sm:$0xff]  }
 0x153   :  { %5158 = vmatpush1.bf16.msra.mxu0 %v7883_v35  ;;  %5691 = vmatpush1.bf16.msra.mxu1 %v7886_v36  ;;  %v7978_v35 = vld [vmem:[%s11267_s1 + $0xc68] ss:$16 sps:$4 sm:$0xff]   ;;  %v7983_v36 = vld [vmem:[%s11267_s1 + $0xc84] ss:$16 sps:$4 sm:$0xff]  }
 0x154   :  { %5159 = vmatprep.subr.bf16.mxu0 %v7891_v37  ;;  %5692 = vmatprep.subr.bf16.mxu1 %v7894_v38  ;;  %v7986_v37 = vld [vmem:[%s11267_s1 + $0xc8c] ss:$16 sps:$4 sm:$0xff]   ;;  %v7981_v38 = vld [vmem:[%s11267_s1 + $0xc80] ss:$16 sps:$4 sm:$0xff]  }
 0x157   :  { %5160 = vmatpush1.bf16.msra.mxu0 %v7889_v39  ;;  %5693 = vmatpush1.bf16.msra.mxu1 %v7892_v40  ;;  %v7984_v39 = vld [vmem:[%s11267_s1 + $0xc88] ss:$16 sps:$4 sm:$0xff]   ;;  %v7989_v40 = vld [vmem:[%s11267_s1 + $0xca4] ss:$16 sps:$4 sm:$0xff]  }
 0x158   :  { %5161 = vmatprep.subr.bf16.mxu0 %v7897_v41  ;;  %5694 = vmatprep.subr.bf16.mxu1 %v7900_v42  ;;  %v7992_v41 = vld [vmem:[%s11267_s1 + $0xcac] ss:$16 sps:$4 sm:$0xff]   ;;  %v7987_v42 = vld [vmem:[%s11267_s1 + $0xca0] ss:$16 sps:$4 sm:$0xff]  }
 0x15b   :  { %5162 = vmatpush1.bf16.msra.mxu0 %v7895_v43  ;;  %5695 = vmatpush1.bf16.msra.mxu1 %v7898_v44  ;;  %v7990_v43 = vld [vmem:[%s11267_s1 + $0xca8] ss:$16 sps:$4 sm:$0xff]   ;;  %v7995_v44 = vld [vmem:[%s11267_s1 + $0xcc4] ss:$16 sps:$4 sm:$0xff]  }
 0x15c   :  { %5163 = vmatprep.subr.bf16.mxu0 %v7903_v45  ;;  %5696 = vmatprep.subr.bf16.mxu1 %v7906_v46  ;;  %v7998_v45 = vld [vmem:[%s11267_s1 + $0xccc] ss:$16 sps:$4 sm:$0xff]   ;;  %v7993_v46 = vld [vmem:[%s11267_s1 + $0xcc0] ss:$16 sps:$4 sm:$0xff]  }
 0x15f   :  { %5164 = vmatpush1.bf16.msra.mxu0 %v7901_v47  ;;  %5697 = vmatpush1.bf16.msra.mxu1 %v7904_v48  ;;  %v7996_v47 = vld [vmem:[%s11267_s1 + $0xcc8] ss:$16 sps:$4 sm:$0xff]   ;;  %v8001_v48 = vld [vmem:[%s11267_s1 + $0xce4] ss:$16 sps:$4 sm:$0xff]  }
 0x160   :  { %5165 = vmatprep.subr.bf16.mxu0 %v7909_v49  ;;  %5698 = vmatprep.subr.bf16.mxu1 %v7912_v50  ;;  %v8004_v49 = vld [vmem:[%s11267_s1 + $0xcec] ss:$16 sps:$4 sm:$0xff]   ;;  %v7999_v50 = vld [vmem:[%s11267_s1 + $0xce0] ss:$16 sps:$4 sm:$0xff]  }
 0x163   :  { %5166 = vmatpush1.bf16.msra.mxu0 %v7907_v51  ;;  %5699 = vmatpush1.bf16.msra.mxu1 %v7910_v52  ;;  %v8002_v51 = vld [vmem:[%s11267_s1 + $0xce8] ss:$16 sps:$4 sm:$0xff]   ;;  %v8007_v52 = vld [vmem:[%s11267_s1 + $0xd04] ss:$16 sps:$4 sm:$0xff]  }
 0x164   :  { %5167 = vmatprep.subr.bf16.mxu0 %v7915_v53  ;;  %5700 = vmatprep.subr.bf16.mxu1 %v7918_v54  ;;  %v8010_v53 = vld [vmem:[%s11267_s1 + $0xd0c] ss:$16 sps:$4 sm:$0xff]   ;;  %v8005_v54 = vld [vmem:[%s11267_s1 + $0xd00] ss:$16 sps:$4 sm:$0xff]  }
 0x167   :  { %5168 = vmatpush1.bf16.msra.mxu0 %v7913_v55  ;;  %5701 = vmatpush1.bf16.msra.mxu1 %v7916_v56  ;;  %v8008_v55 = vld [vmem:[%s11267_s1 + $0xd08] ss:$16 sps:$4 sm:$0xff]   ;;  %v8013_v56 = vld [vmem:[%s11267_s1 + $0xd24] ss:$16 sps:$4 sm:$0xff]  }
 0x168   :  { %5169 = vmatprep.subr.bf16.mxu0 %v7921_v57  ;;  %5702 = vmatprep.subr.bf16.mxu1 %v7924_v58  ;;  %v8016_v57 = vld [vmem:[%s11267_s1 + $0xd2c] ss:$16 sps:$4 sm:$0xff]   ;;  %v8011_v58 = vld [vmem:[%s11267_s1 + $0xd20] ss:$16 sps:$4 sm:$0xff]  }
 0x16b   :  { %5170 = vmatpush1.bf16.msra.mxu0 %v7919_v59  ;;  %5703 = vmatpush1.bf16.msra.mxu1 %v7922_v60  ;;  %v8014_v59 = vld [vmem:[%s11267_s1 + $0xd28] ss:$16 sps:$4 sm:$0xff]   ;;  %v8019_v60 = vld [vmem:[%s11267_s1 + $0xd44] ss:$16 sps:$4 sm:$0xff]  }
 0x16c   :  { %5171 = vmatprep.subr.bf16.mxu0 %v7927_v61  ;;  %5704 = vmatprep.subr.bf16.mxu1 %v7930_v62  ;;  %v8022_v61 = vld [vmem:[%s11267_s1 + $0xd4c] ss:$16 sps:$4 sm:$0xff]   ;;  %v8017_v62 = vld [vmem:[%s11267_s1 + $0xd40] ss:$16 sps:$4 sm:$0xff]  }
 0x16f   :  { %5172 = vmatpush1.bf16.msra.mxu0 %v7925_v63  ;;  %5705 = vmatpush1.bf16.msra.mxu1 %v7928_v0  ;;  %v8020_v63 = vld [vmem:[%s11267_s1 + $0xd48] ss:$16 sps:$4 sm:$0xff]   ;;  %v8025_v0 = vld [vmem:[%s11267_s1 + $0xd64] ss:$16 sps:$4 sm:$0xff]  }
 0x170   :  { %5173 = vmatprep.subr.bf16.mxu0 %v7933_v1  ;;  %5706 = vmatprep.subr.bf16.mxu1 %v7936_v2  ;;  %v8028_v1 = vld [vmem:[%s11267_s1 + $0xd6c] ss:$16 sps:$4 sm:$0xff]   ;;  %v8023_v2 = vld [vmem:[%s11267_s1 + $0xd60] ss:$16 sps:$4 sm:$0xff]  }
 0x173   :  { %5174 = vmatpush1.bf16.msra.mxu0 %v7931_v3  ;;  %5707 = vmatpush1.bf16.msra.mxu1 %v7934_v4  ;;  %v8026_v3 = vld [vmem:[%s11267_s1 + $0xd68] ss:$16 sps:$4 sm:$0xff]   ;;  %v8031_v4 = vld [vmem:[%s11267_s1 + $0xd84] ss:$16 sps:$4 sm:$0xff]  }
 0x174   :  { %5175 = vmatprep.subr.bf16.mxu0 %v7939_v5  ;;  %5708 = vmatprep.subr.bf16.mxu1 %v7942_v6  ;;  %v8034_v5 = vld [vmem:[%s11267_s1 + $0xd8c] ss:$16 sps:$4 sm:$0xff]   ;;  %v8029_v6 = vld [vmem:[%s11267_s1 + $0xd80] ss:$16 sps:$4 sm:$0xff]  }
 0x177   :  { %5176 = vmatpush1.bf16.msra.mxu0 %v7937_v7  ;;  %5709 = vmatpush1.bf16.msra.mxu1 %v7940_v8  ;;  %v8032_v7 = vld [vmem:[%s11267_s1 + $0xd88] ss:$16 sps:$4 sm:$0xff]   ;;  %v8037_v8 = vld [vmem:[%s11267_s1 + $0xda4] ss:$16 sps:$4 sm:$0xff]  }
 0x178   :  { %5177 = vmatprep.subr.bf16.mxu0 %v7945_v9  ;;  %5710 = vmatprep.subr.bf16.mxu1 %v7948_v10  ;;  %v8040_v9 = vld [vmem:[%s11267_s1 + $0xdac] ss:$16 sps:$4 sm:$0xff]   ;;  %v8035_v10 = vld [vmem:[%s11267_s1 + $0xda0] ss:$16 sps:$4 sm:$0xff]  }
 0x17b   :  { %5178 = vmatpush1.bf16.msra.mxu0 %v7943_v12  ;;  %5711 = vmatpush1.bf16.msra.mxu1 %v7946_v13  ;;  %v8038_v12 = vld [vmem:[%s11267_s1 + $0xda8] ss:$16 sps:$4 sm:$0xff]   ;;  %v8043_v13 = vld [vmem:[%s11267_s1 + $0xdc4] ss:$16 sps:$4 sm:$0xff]  }
 0x17c   :  { %5179 = vmatprep.subr.bf16.mxu0 %v7951_v15  ;;  %5712 = vmatprep.subr.bf16.mxu1 %v7954_v11  ;;  %v8046_v15 = vld [vmem:[%s11267_s1 + $0xdcc] ss:$16 sps:$4 sm:$0xff]   ;;  %v8041_v11 = vld [vmem:[%s11267_s1 + $0xdc0] ss:$16 sps:$4 sm:$0xff]  }
 0x17f   :  { %5180 = vmatpush1.bf16.msra.mxu0 %v7949_v17  ;;  %5713 = vmatpush1.bf16.msra.mxu1 %v7952_v14  ;;  %v8044_v17 = vld [vmem:[%s11267_s1 + $0xdc8] ss:$16 sps:$4 sm:$0xff]   ;;  %v8049_v14 = vld [vmem:[%s11267_s1 + $0xde4] ss:$16 sps:$4 sm:$0xff]  }
 0x180   :  { %5190 = vmatprep.subr.bf16.mxu0 %v7959_v19  ;;  %5723 = vmatprep.subr.bf16.mxu1 %v7962_v20  ;;  %v8052_v19 = vld [vmem:[%s11267_s1 + $0xdec] ss:$16 sps:$4 sm:$0xff]   ;;  %v8047_v20 = vld [vmem:[%s11267_s1 + $0xde0] ss:$16 sps:$4 sm:$0xff]  }
 0x182   :  { %5182 = vmatmul.mubr.bf16.vlgmr.msra.gmra.mrb[0].mxu0 %v6376_v16  ;;  %5715 = vmatmul.mubr.bf16.vlgmr.msra.gmra.mrb[0].mxu1 %v6376_v16  ;;  %v8050_v16 = vld [vmem:[%s11267_s1 + $0xde8] ss:$16 sps:$4 sm:$0xff]  }
 0x183   :  { %5191 = vmatpush1.bf16.msra.mxu0 %v7957_v22  ;;  %5724 = vmatpush1.bf16.msra.mxu1 %v7960_v23  ;;  %v8057_v22 = vld [vmem:[%s11267_s1 + $0xe04] ss:$16 sps:$4 sm:$0xff]   ;;  %v8060_v23 = vld [vmem:[%s11267_s1 + $0xe0c] ss:$16 sps:$4 sm:$0xff]  }
 0x184   :  { %5192 = vmatprep.subr.bf16.mxu0 %v7965_v24  ;;  %5725 = vmatprep.subr.bf16.mxu1 %v7968_v18  ;;  %v10065_v24 = vld [vmem:[%s11268_s0 + $0x38] sm:$0xff]  ;;  %v6378_v18 = vcombine.low %v9864_v21, %v9864_v21 }
 0x185   :  { %5222 = vmatprep.mubr.bf16.mxu0 %v6379_v25  ;;  %5755 = vmatprep.mubr.bf16.mxu1 %v6379_v25  ;;  %v8055_v25 = vld [vmem:[%s11267_s1 + $0xe00] ss:$16 sps:$4 sm:$0xff]   ;;  %v8066_v21 = vld [vmem:[%s11267_s1 + $0xe2c] ss:$16 sps:$4 sm:$0xff]  }
 0x187   :  { %5193 = vmatpush1.bf16.msra.mxu0 %v7963_v26  ;;  %5726 = vmatpush1.bf16.msra.mxu1 %v7966_v27  ;;  %v8058_v26 = vld [vmem:[%s11267_s1 + $0xe08] ss:$16 sps:$4 sm:$0xff]   ;;  %v8063_v27 = vld [vmem:[%s11267_s1 + $0xe24] ss:$16 sps:$4 sm:$0xff]  }
 0x188   :  { %5194 = vmatprep.subr.bf16.mxu0 %v7971_v28  ;;  %5727 = vmatprep.subr.bf16.mxu1 %v7974_v29  ;;  %v6381_v28 = vcombine.high %v10065_v24, %v10065_v24  ;;  %v8061_v29 = vld [vmem:[%s11267_s1 + $0xe20] ss:$16 sps:$4 sm:$0xff]  }
 0x18b   :  { %5195 = vmatpush1.bf16.msra.mxu0 %v7969_v30  ;;  %5728 = vmatpush1.bf16.msra.mxu1 %v7972_v31  ;;  %v8064_v30 = vld [vmem:[%s11267_s1 + $0xe28] ss:$16 sps:$4 sm:$0xff]   ;;  %v8069_v31 = vld [vmem:[%s11267_s1 + $0xe44] ss:$16 sps:$4 sm:$0xff]  }
 0x18c   :  { %5196 = vmatprep.subr.bf16.mxu0 %v7977_v32  ;;  %5729 = vmatprep.subr.bf16.mxu1 %v7980_v33  ;;  %v8072_v32 = vld [vmem:[%s11267_s1 + $0xe4c] ss:$16 sps:$4 sm:$0xff]   ;;  %v8067_v33 = vld [vmem:[%s11267_s1 + $0xe40] ss:$16 sps:$4 sm:$0xff]  }
 0x18f   :  { %5197 = vmatpush1.bf16.msra.mxu0 %v7975_v34  ;;  %5730 = vmatpush1.bf16.msra.mxu1 %v7978_v35  ;;  %v8070_v34 = vld [vmem:[%s11267_s1 + $0xe48] ss:$16 sps:$4 sm:$0xff]   ;;  %v8075_v35 = vld [vmem:[%s11267_s1 + $0xe64] ss:$16 sps:$4 sm:$0xff]  }
 0x190   :  { %5198 = vmatprep.subr.bf16.mxu0 %v7983_v36  ;;  %5731 = vmatprep.subr.bf16.mxu1 %v7986_v37  ;;  %v8078_v36 = vld [vmem:[%s11267_s1 + $0xe6c] ss:$16 sps:$4 sm:$0xff]   ;;  %v8073_v37 = vld [vmem:[%s11267_s1 + $0xe60] ss:$16 sps:$4 sm:$0xff]  }
 0x193   :  { %5199 = vmatpush1.bf16.msra.mxu0 %v7981_v38  ;;  %5732 = vmatpush1.bf16.msra.mxu1 %v7984_v39  ;;  %v8076_v38 = vld [vmem:[%s11267_s1 + $0xe68] ss:$16 sps:$4 sm:$0xff]   ;;  %v8081_v39 = vld [vmem:[%s11267_s1 + $0xe84] ss:$16 sps:$4 sm:$0xff]  }
 0x194   :  { %5200 = vmatprep.subr.bf16.mxu0 %v7989_v40  ;;  %5733 = vmatprep.subr.bf16.mxu1 %v7992_v41  ;;  %v8084_v40 = vld [vmem:[%s11267_s1 + $0xe8c] ss:$16 sps:$4 sm:$0xff]   ;;  %v8079_v41 = vld [vmem:[%s11267_s1 + $0xe80] ss:$16 sps:$4 sm:$0xff]  }
 0x197   :  { %5201 = vmatpush1.bf16.msra.mxu0 %v7987_v42  ;;  %5734 = vmatpush1.bf16.msra.mxu1 %v7990_v43  ;;  %v8082_v42 = vld [vmem:[%s11267_s1 + $0xe88] ss:$16 sps:$4 sm:$0xff]   ;;  %v8087_v43 = vld [vmem:[%s11267_s1 + $0xea4] ss:$16 sps:$4 sm:$0xff]  }
 0x198   :  { %5202 = vmatprep.subr.bf16.mxu0 %v7995_v44  ;;  %5735 = vmatprep.subr.bf16.mxu1 %v7998_v45  ;;  %v8090_v44 = vld [vmem:[%s11267_s1 + $0xeac] ss:$16 sps:$4 sm:$0xff]   ;;  %v8085_v45 = vld [vmem:[%s11267_s1 + $0xea0] ss:$16 sps:$4 sm:$0xff]  }
 0x19b   :  { %5203 = vmatpush1.bf16.msra.mxu0 %v7993_v46  ;;  %5736 = vmatpush1.bf16.msra.mxu1 %v7996_v47  ;;  %v8088_v46 = vld [vmem:[%s11267_s1 + $0xea8] ss:$16 sps:$4 sm:$0xff]   ;;  %v8093_v47 = vld [vmem:[%s11267_s1 + $0xec4] ss:$16 sps:$4 sm:$0xff]  }
 0x19c   :  { %5204 = vmatprep.subr.bf16.mxu0 %v8001_v48  ;;  %5737 = vmatprep.subr.bf16.mxu1 %v8004_v49  ;;  %v8096_v48 = vld [vmem:[%s11267_s1 + $0xecc] ss:$16 sps:$4 sm:$0xff]   ;;  %v8091_v49 = vld [vmem:[%s11267_s1 + $0xec0] ss:$16 sps:$4 sm:$0xff]  }
 0x19f   :  { %5205 = vmatpush1.bf16.msra.mxu0 %v7999_v50  ;;  %5738 = vmatpush1.bf16.msra.mxu1 %v8002_v51  ;;  %v8094_v50 = vld [vmem:[%s11267_s1 + $0xec8] ss:$16 sps:$4 sm:$0xff]   ;;  %v8099_v51 = vld [vmem:[%s11267_s1 + $0xee4] ss:$16 sps:$4 sm:$0xff]  }
 0x1a0   :  { %5206 = vmatprep.subr.bf16.mxu0 %v8007_v52  ;;  %5739 = vmatprep.subr.bf16.mxu1 %v8010_v53  ;;  %v8102_v52 = vld [vmem:[%s11267_s1 + $0xeec] ss:$16 sps:$4 sm:$0xff]   ;;  %v8097_v53 = vld [vmem:[%s11267_s1 + $0xee0] ss:$16 sps:$4 sm:$0xff]  }
 0x1a3   :  { %5207 = vmatpush1.bf16.msra.mxu0 %v8005_v54  ;;  %5740 = vmatpush1.bf16.msra.mxu1 %v8008_v55  ;;  %v8100_v54 = vld [vmem:[%s11267_s1 + $0xee8] ss:$16 sps:$4 sm:$0xff]   ;;  %v8105_v55 = vld [vmem:[%s11267_s1 + $0xf04] ss:$16 sps:$4 sm:$0xff]  }
 0x1a4   :  { %5208 = vmatprep.subr.bf16.mxu0 %v8013_v56  ;;  %5741 = vmatprep.subr.bf16.mxu1 %v8016_v57  ;;  %v8108_v56 = vld [vmem:[%s11267_s1 + $0xf0c] ss:$16 sps:$4 sm:$0xff]   ;;  %v8103_v57 = vld [vmem:[%s11267_s1 + $0xf00] ss:$16 sps:$4 sm:$0xff]  }
 0x1a7   :  { %5209 = vmatpush1.bf16.msra.mxu0 %v8011_v58  ;;  %5742 = vmatpush1.bf16.msra.mxu1 %v8014_v59  ;;  %v8106_v58 = vld [vmem:[%s11267_s1 + $0xf08] ss:$16 sps:$4 sm:$0xff]   ;;  %v8111_v59 = vld [vmem:[%s11267_s1 + $0xf24] ss:$16 sps:$4 sm:$0xff]  }
 0x1a8   :  { %5210 = vmatprep.subr.bf16.mxu0 %v8019_v60  ;;  %5743 = vmatprep.subr.bf16.mxu1 %v8022_v61  ;;  %v8114_v60 = vld [vmem:[%s11267_s1 + $0xf2c] ss:$16 sps:$4 sm:$0xff]   ;;  %v8109_v61 = vld [vmem:[%s11267_s1 + $0xf20] ss:$16 sps:$4 sm:$0xff]  }
 0x1ab   :  { %5211 = vmatpush1.bf16.msra.mxu0 %v8017_v62  ;;  %5744 = vmatpush1.bf16.msra.mxu1 %v8020_v63  ;;  %v8112_v62 = vld [vmem:[%s11267_s1 + $0xf28] ss:$16 sps:$4 sm:$0xff]   ;;  %v8117_v63 = vld [vmem:[%s11267_s1 + $0xf44] ss:$16 sps:$4 sm:$0xff]  }
 0x1ac   :  { %5212 = vmatprep.subr.bf16.mxu0 %v8025_v0  ;;  %5745 = vmatprep.subr.bf16.mxu1 %v8028_v1  ;;  %v8120_v0 = vld [vmem:[%s11267_s1 + $0xf4c] ss:$16 sps:$4 sm:$0xff]   ;;  %v8115_v1 = vld [vmem:[%s11267_s1 + $0xf40] ss:$16 sps:$4 sm:$0xff]  }
 0x1af   :  { %5213 = vmatpush1.bf16.msra.mxu0 %v8023_v2  ;;  %5746 = vmatpush1.bf16.msra.mxu1 %v8026_v3  ;;  %v8118_v2 = vld [vmem:[%s11267_s1 + $0xf48] ss:$16 sps:$4 sm:$0xff]   ;;  %v8123_v3 = vld [vmem:[%s11267_s1 + $0xf64] ss:$16 sps:$4 sm:$0xff]  }
 0x1b0   :  { %5214 = vmatprep.subr.bf16.mxu0 %v8031_v4  ;;  %5747 = vmatprep.subr.bf16.mxu1 %v8034_v5  ;;  %v8126_v4 = vld [vmem:[%s11267_s1 + $0xf6c] ss:$16 sps:$4 sm:$0xff]   ;;  %v8121_v5 = vld [vmem:[%s11267_s1 + $0xf60] ss:$16 sps:$4 sm:$0xff]  }
 0x1b3   :  { %5215 = vmatpush1.bf16.msra.mxu0 %v8029_v6  ;;  %5748 = vmatpush1.bf16.msra.mxu1 %v8032_v7  ;;  %v8124_v6 = vld [vmem:[%s11267_s1 + $0xf68] ss:$16 sps:$4 sm:$0xff]   ;;  %v8129_v7 = vld [vmem:[%s11267_s1 + $0xf84] ss:$16 sps:$4 sm:$0xff]  }
 0x1b4   :  { %5216 = vmatprep.subr.bf16.mxu0 %v8037_v8  ;;  %5749 = vmatprep.subr.bf16.mxu1 %v8040_v9  ;;  %v8132_v8 = vld [vmem:[%s11267_s1 + $0xf8c] ss:$16 sps:$4 sm:$0xff]   ;;  %v8127_v9 = vld [vmem:[%s11267_s1 + $0xf80] ss:$16 sps:$4 sm:$0xff]  }
 0x1b7   :  { %5217 = vmatpush1.bf16.msra.mxu0 %v8035_v10  ;;  %5750 = vmatpush1.bf16.msra.mxu1 %v8038_v12  ;;  %v8130_v10 = vld [vmem:[%s11267_s1 + $0xf88] ss:$16 sps:$4 sm:$0xff]   ;;  %v8135_v12 = vld [vmem:[%s11267_s1 + $0xfa4] ss:$16 sps:$4 sm:$0xff]  }
 0x1b8   :  { %5218 = vmatprep.subr.bf16.mxu0 %v8043_v13  ;;  %5751 = vmatprep.subr.bf16.mxu1 %v8046_v15  ;;  %v8138_v13 = vld [vmem:[%s11267_s1 + $0xfac] ss:$16 sps:$4 sm:$0xff]   ;;  %v8133_v15 = vld [vmem:[%s11267_s1 + $0xfa0] ss:$16 sps:$4 sm:$0xff]  }
 0x1bb   :  { %5219 = vmatpush1.bf16.msra.mxu0 %v8041_v11  ;;  %5752 = vmatpush1.bf16.msra.mxu1 %v8044_v17  ;;  %v8136_v11 = vld [vmem:[%s11267_s1 + $0xfa8] ss:$16 sps:$4 sm:$0xff]   ;;  %v8141_v17 = vld [vmem:[%s11267_s1 + $0xfc4] ss:$16 sps:$4 sm:$0xff]  }
 0x1bc   :  { %5220 = vmatprep.subr.bf16.mxu0 %v8049_v14  ;;  %5753 = vmatprep.subr.bf16.mxu1 %v8052_v19  ;;  %v8144_v14 = vld [vmem:[%s11267_s1 + $0xfcc] ss:$16 sps:$4 sm:$0xff]   ;;  %v8139_v19 = vld [vmem:[%s11267_s1 + $0xfc0] ss:$16 sps:$4 sm:$0xff]  }
 0x1bf   :  { %5221 = vmatpush1.bf16.msra.mxu0 %v8047_v20  ;;  %5754 = vmatpush1.bf16.msra.mxu1 %v8050_v16  ;;  %v8142_v20 = vld [vmem:[%s11267_s1 + $0xfc8] ss:$16 sps:$4 sm:$0xff]   ;;  %v8147_v16 = vld [vmem:[%s11267_s1 + $0xfe4] ss:$16 sps:$4 sm:$0xff]  }
 0x1c0   :  { %5231 = vmatprep.subr.bf16.mxu0 %v8057_v22  ;;  %5764 = vmatprep.subr.bf16.mxu1 %v8060_v23  ;;  %v8150_v22 = vld [vmem:[%s11267_s1 + $0xfec] ss:$16 sps:$4 sm:$0xff]   ;;  %v8145_v23 = vld [vmem:[%s11267_s1 + $0xfe0] ss:$16 sps:$4 sm:$0xff]  }
 0x1c2   :  { %5223 = vmatmul.mubr.bf16.vlgmr.msra.gmra.mrb[0].mxu0 %v6378_v18  ;;  %5756 = vmatmul.mubr.bf16.vlgmr.msra.gmra.mrb[0].mxu1 %v6378_v18  ;;  %v8148_v18 = vld [vmem:[%s11267_s1 + $0xfe8] ss:$16 sps:$4 sm:$0xff]  }
 0x1c3   :  { %5232 = vmatpush1.bf16.msra.mxu0 %v8055_v25  ;;  %5765 = vmatpush1.bf16.msra.mxu1 %v8058_v26  ;;  %v8155_v25 = vld [vmem:[%s11267_s1 + $0x1004] ss:$16 sps:$4 sm:$0xff]   ;;  %v8158_v26 = vld [vmem:[%s11267_s1 + $0x100c] ss:$16 sps:$4 sm:$0xff]  }
 0x1c4   :  { %5233 = vmatprep.subr.bf16.mxu0 %v8063_v27  ;;  %5766 = vmatprep.subr.bf16.mxu1 %v8066_v21  ;;  %v6380_v27 = vcombine.low %v10065_v24, %v10065_v24  ;;  %v10268_v21 = vld [vmem:[%s11268_s0 + $0x40] sm:$0xff] }
 0x1c5   :  { %5263 = vmatprep.mubr.bf16.mxu0 %v6381_v28  ;;  %5796 = vmatprep.mubr.bf16.mxu1 %v6381_v28  ;;  %v8153_v28 = vld [vmem:[%s11267_s1 + $0x1000] ss:$16 sps:$4 sm:$0xff]   ;;  %v8161_v24 = vld [vmem:[%s11267_s1 + $0x1024] ss:$16 sps:$4 sm:$0xff]  }
 0x1c7   :  { %5234 = vmatpush1.bf16.msra.mxu0 %v8061_v29  ;;  %5767 = vmatpush1.bf16.msra.mxu1 %v8064_v30  ;;  %v8156_v29 = vld [vmem:[%s11267_s1 + $0x1008] ss:$16 sps:$4 sm:$0xff]   ;;  %v8164_v30 = vld [vmem:[%s11267_s1 + $0x102c] ss:$16 sps:$4 sm:$0xff]  }
 0x1c8   :  { %5235 = vmatprep.subr.bf16.mxu0 %v8069_v31  ;;  %5768 = vmatprep.subr.bf16.mxu1 %v8072_v32  ;;  %v6383_v31 = vcombine.high %v10268_v21, %v10268_v21  ;;  %v8159_v32 = vld [vmem:[%s11267_s1 + $0x1020] ss:$16 sps:$4 sm:$0xff]  }
 0x1cb   :  { %5236 = vmatpush1.bf16.msra.mxu0 %v8067_v33  ;;  %5769 = vmatpush1.bf16.msra.mxu1 %v8070_v34  ;;  %v8162_v33 = vld [vmem:[%s11267_s1 + $0x1028] ss:$16 sps:$4 sm:$0xff]   ;;  %v8167_v34 = vld [vmem:[%s11267_s1 + $0x1044] ss:$16 sps:$4 sm:$0xff]  }
 0x1cc   :  { %5237 = vmatprep.subr.bf16.mxu0 %v8075_v35  ;;  %5770 = vmatprep.subr.bf16.mxu1 %v8078_v36  ;;  %v8170_v35 = vld [vmem:[%s11267_s1 + $0x104c] ss:$16 sps:$4 sm:$0xff]   ;;  %v8165_v36 = vld [vmem:[%s11267_s1 + $0x1040] ss:$16 sps:$4 sm:$0xff]  }
 0x1cf   :  { %5238 = vmatpush1.bf16.msra.mxu0 %v8073_v37  ;;  %5771 = vmatpush1.bf16.msra.mxu1 %v8076_v38  ;;  %v8168_v37 = vld [vmem:[%s11267_s1 + $0x1048] ss:$16 sps:$4 sm:$0xff]   ;;  %v8173_v38 = vld [vmem:[%s11267_s1 + $0x1064] ss:$16 sps:$4 sm:$0xff]  }
 0x1d0   :  { %5239 = vmatprep.subr.bf16.mxu0 %v8081_v39  ;;  %5772 = vmatprep.subr.bf16.mxu1 %v8084_v40  ;;  %v8176_v39 = vld [vmem:[%s11267_s1 + $0x106c] ss:$16 sps:$4 sm:$0xff]   ;;  %v8171_v40 = vld [vmem:[%s11267_s1 + $0x1060] ss:$16 sps:$4 sm:$0xff]  }
 0x1d3   :  { %5240 = vmatpush1.bf16.msra.mxu0 %v8079_v41  ;;  %5773 = vmatpush1.bf16.msra.mxu1 %v8082_v42  ;;  %v8174_v41 = vld [vmem:[%s11267_s1 + $0x1068] ss:$16 sps:$4 sm:$0xff]   ;;  %v8179_v42 = vld [vmem:[%s11267_s1 + $0x1084] ss:$16 sps:$4 sm:$0xff]  }
 0x1d4   :  { %5241 = vmatprep.subr.bf16.mxu0 %v8087_v43  ;;  %5774 = vmatprep.subr.bf16.mxu1 %v8090_v44  ;;  %v8182_v43 = vld [vmem:[%s11267_s1 + $0x108c] ss:$16 sps:$4 sm:$0xff]   ;;  %v8177_v44 = vld [vmem:[%s11267_s1 + $0x1080] ss:$16 sps:$4 sm:$0xff]  }
 0x1d7   :  { %5242 = vmatpush1.bf16.msra.mxu0 %v8085_v45  ;;  %5775 = vmatpush1.bf16.msra.mxu1 %v8088_v46  ;;  %v8180_v45 = vld [vmem:[%s11267_s1 + $0x1088] ss:$16 sps:$4 sm:$0xff]   ;;  %v8185_v46 = vld [vmem:[%s11267_s1 + $0x10a4] ss:$16 sps:$4 sm:$0xff]  }
 0x1d8   :  { %5243 = vmatprep.subr.bf16.mxu0 %v8093_v47  ;;  %5776 = vmatprep.subr.bf16.mxu1 %v8096_v48  ;;  %v8188_v47 = vld [vmem:[%s11267_s1 + $0x10ac] ss:$16 sps:$4 sm:$0xff]   ;;  %v8183_v48 = vld [vmem:[%s11267_s1 + $0x10a0] ss:$16 sps:$4 sm:$0xff]  }
 0x1db   :  { %5244 = vmatpush1.bf16.msra.mxu0 %v8091_v49  ;;  %5777 = vmatpush1.bf16.msra.mxu1 %v8094_v50  ;;  %v8186_v49 = vld [vmem:[%s11267_s1 + $0x10a8] ss:$16 sps:$4 sm:$0xff]   ;;  %v8191_v50 = vld [vmem:[%s11267_s1 + $0x10c4] ss:$16 sps:$4 sm:$0xff]  }
 0x1dc   :  { %5245 = vmatprep.subr.bf16.mxu0 %v8099_v51  ;;  %5778 = vmatprep.subr.bf16.mxu1 %v8102_v52  ;;  %v8194_v51 = vld [vmem:[%s11267_s1 + $0x10cc] ss:$16 sps:$4 sm:$0xff]   ;;  %v8189_v52 = vld [vmem:[%s11267_s1 + $0x10c0] ss:$16 sps:$4 sm:$0xff]  }
 0x1df   :  { %5246 = vmatpush1.bf16.msra.mxu0 %v8097_v53  ;;  %5779 = vmatpush1.bf16.msra.mxu1 %v8100_v54  ;;  %v8192_v53 = vld [vmem:[%s11267_s1 + $0x10c8] ss:$16 sps:$4 sm:$0xff]   ;;  %v8197_v54 = vld [vmem:[%s11267_s1 + $0x10e4] ss:$16 sps:$4 sm:$0xff]  }
 0x1e0   :  { %5247 = vmatprep.subr.bf16.mxu0 %v8105_v55  ;;  %5780 = vmatprep.subr.bf16.mxu1 %v8108_v56  ;;  %v8200_v55 = vld [vmem:[%s11267_s1 + $0x10ec] ss:$16 sps:$4 sm:$0xff]   ;;  %v8195_v56 = vld [vmem:[%s11267_s1 + $0x10e0] ss:$16 sps:$4 sm:$0xff]  }
 0x1e3   :  { %5248 = vmatpush1.bf16.msra.mxu0 %v8103_v57  ;;  %5781 = vmatpush1.bf16.msra.mxu1 %v8106_v58  ;;  %v8198_v57 = vld [vmem:[%s11267_s1 + $0x10e8] ss:$16 sps:$4 sm:$0xff]   ;;  %v8203_v58 = vld [vmem:[%s11267_s1 + $0x1104] ss:$16 sps:$4 sm:$0xff]  }
 0x1e4   :  { %5249 = vmatprep.subr.bf16.mxu0 %v8111_v59  ;;  %5782 = vmatprep.subr.bf16.mxu1 %v8114_v60  ;;  %v8206_v59 = vld [vmem:[%s11267_s1 + $0x110c] ss:$16 sps:$4 sm:$0xff]   ;;  %v8201_v60 = vld [vmem:[%s11267_s1 + $0x1100] ss:$16 sps:$4 sm:$0xff]  }
 0x1e7   :  { %5250 = vmatpush1.bf16.msra.mxu0 %v8109_v61  ;;  %5783 = vmatpush1.bf16.msra.mxu1 %v8112_v62  ;;  %v8204_v61 = vld [vmem:[%s11267_s1 + $0x1108] ss:$16 sps:$4 sm:$0xff]   ;;  %v8209_v62 = vld [vmem:[%s11267_s1 + $0x1124] ss:$16 sps:$4 sm:$0xff]  }
 0x1e8   :  { %5251 = vmatprep.subr.bf16.mxu0 %v8117_v63  ;;  %5784 = vmatprep.subr.bf16.mxu1 %v8120_v0  ;;  %v8212_v63 = vld [vmem:[%s11267_s1 + $0x112c] ss:$16 sps:$4 sm:$0xff]   ;;  %v8207_v0 = vld [vmem:[%s11267_s1 + $0x1120] ss:$16 sps:$4 sm:$0xff]  }
 0x1eb   :  { %5252 = vmatpush1.bf16.msra.mxu0 %v8115_v1  ;;  %5785 = vmatpush1.bf16.msra.mxu1 %v8118_v2  ;;  %v8210_v1 = vld [vmem:[%s11267_s1 + $0x1128] ss:$16 sps:$4 sm:$0xff]   ;;  %v8215_v2 = vld [vmem:[%s11267_s1 + $0x1144] ss:$16 sps:$4 sm:$0xff]  }
 0x1ec   :  { %5253 = vmatprep.subr.bf16.mxu0 %v8123_v3  ;;  %5786 = vmatprep.subr.bf16.mxu1 %v8126_v4  ;;  %v8218_v3 = vld [vmem:[%s11267_s1 + $0x114c] ss:$16 sps:$4 sm:$0xff]   ;;  %v8213_v4 = vld [vmem:[%s11267_s1 + $0x1140] ss:$16 sps:$4 sm:$0xff]  }
 0x1ef   :  { %5254 = vmatpush1.bf16.msra.mxu0 %v8121_v5  ;;  %5787 = vmatpush1.bf16.msra.mxu1 %v8124_v6  ;;  %v8216_v5 = vld [vmem:[%s11267_s1 + $0x1148] ss:$16 sps:$4 sm:$0xff]   ;;  %v8221_v6 = vld [vmem:[%s11267_s1 + $0x1164] ss:$16 sps:$4 sm:$0xff]  }
 0x1f0   :  { %5255 = vmatprep.subr.bf16.mxu0 %v8129_v7  ;;  %5788 = vmatprep.subr.bf16.mxu1 %v8132_v8  ;;  %v8224_v7 = vld [vmem:[%s11267_s1 + $0x116c] ss:$16 sps:$4 sm:$0xff]   ;;  %v8219_v8 = vld [vmem:[%s11267_s1 + $0x1160] ss:$16 sps:$4 sm:$0xff]  }
 0x1f3   :  { %5256 = vmatpush1.bf16.msra.mxu0 %v8127_v9  ;;  %5789 = vmatpush1.bf16.msra.mxu1 %v8130_v10  ;;  %v8222_v9 = vld [vmem:[%s11267_s1 + $0x1168] ss:$16 sps:$4 sm:$0xff]   ;;  %v8227_v10 = vld [vmem:[%s11267_s1 + $0x1184] ss:$16 sps:$4 sm:$0xff]  }
 0x1f4   :  { %5257 = vmatprep.subr.bf16.mxu0 %v8135_v12  ;;  %5790 = vmatprep.subr.bf16.mxu1 %v8138_v13  ;;  %v8230_v12 = vld [vmem:[%s11267_s1 + $0x118c] ss:$16 sps:$4 sm:$0xff]   ;;  %v8225_v13 = vld [vmem:[%s11267_s1 + $0x1180] ss:$16 sps:$4 sm:$0xff]  }
 0x1f7   :  { %5258 = vmatpush1.bf16.msra.mxu0 %v8133_v15  ;;  %5791 = vmatpush1.bf16.msra.mxu1 %v8136_v11  ;;  %v8228_v15 = vld [vmem:[%s11267_s1 + $0x1188] ss:$16 sps:$4 sm:$0xff]   ;;  %v8233_v11 = vld [vmem:[%s11267_s1 + $0x11a4] ss:$16 sps:$4 sm:$0xff]  }
 0x1f8   :  { %5259 = vmatprep.subr.bf16.mxu0 %v8141_v17  ;;  %5792 = vmatprep.subr.bf16.mxu1 %v8144_v14  ;;  %v8236_v17 = vld [vmem:[%s11267_s1 + $0x11ac] ss:$16 sps:$4 sm:$0xff]   ;;  %v8231_v14 = vld [vmem:[%s11267_s1 + $0x11a0] ss:$16 sps:$4 sm:$0xff]  }
 0x1fb   :  { %5260 = vmatpush1.bf16.msra.mxu0 %v8139_v19  ;;  %5793 = vmatpush1.bf16.msra.mxu1 %v8142_v20  ;;  %v8234_v19 = vld [vmem:[%s11267_s1 + $0x11a8] ss:$16 sps:$4 sm:$0xff]   ;;  %v8239_v20 = vld [vmem:[%s11267_s1 + $0x11c4] ss:$16 sps:$4 sm:$0xff]  }
 0x1fc   :  { %5261 = vmatprep.subr.bf16.mxu0 %v8147_v16  ;;  %5794 = vmatprep.subr.bf16.mxu1 %v8150_v22  ;;  %v8242_v16 = vld [vmem:[%s11267_s1 + $0x11cc] ss:$16 sps:$4 sm:$0xff]   ;;  %v8237_v22 = vld [vmem:[%s11267_s1 + $0x11c0] ss:$16 sps:$4 sm:$0xff]  }
 0x1ff   :  { %5262 = vmatpush1.bf16.msra.mxu0 %v8145_v23  ;;  %5795 = vmatpush1.bf16.msra.mxu1 %v8148_v18  ;;  %v8240_v23 = vld [vmem:[%s11267_s1 + $0x11c8] ss:$16 sps:$4 sm:$0xff]   ;;  %v8245_v18 = vld [vmem:[%s11267_s1 + $0x11e4] ss:$16 sps:$4 sm:$0xff]  }
 0x200   :  { %5272 = vmatprep.subr.bf16.mxu0 %v8155_v25  ;;  %5805 = vmatprep.subr.bf16.mxu1 %v8158_v26  ;;  %v8248_v25 = vld [vmem:[%s11267_s1 + $0x11ec] ss:$16 sps:$4 sm:$0xff]   ;;  %v8243_v26 = vld [vmem:[%s11267_s1 + $0x11e0] ss:$16 sps:$4 sm:$0xff]  }
 0x202   :  { %5264 = vmatmul.mubr.bf16.vlgmr.msra.gmra.mrb[0].mxu0 %v6380_v27  ;;  %5797 = vmatmul.mubr.bf16.vlgmr.msra.gmra.mrb[0].mxu1 %v6380_v27  ;;  %v8246_v27 = vld [vmem:[%s11267_s1 + $0x11e8] ss:$16 sps:$4 sm:$0xff]  }
 0x203   :  { %5273 = vmatpush1.bf16.msra.mxu0 %v8153_v28  ;;  %5806 = vmatpush1.bf16.msra.mxu1 %v8156_v29  ;;  %v8253_v28 = vld [vmem:[%s11267_s1 + $0x1204] ss:$16 sps:$4 sm:$0xff]   ;;  %v8256_v29 = vld [vmem:[%s11267_s1 + $0x120c] ss:$16 sps:$4 sm:$0xff]  }
 0x204   :  { %5274 = vmatprep.subr.bf16.mxu0 %v8161_v24  ;;  %5807 = vmatprep.subr.bf16.mxu1 %v8164_v30  ;;  %v6382_v24 = vcombine.low %v10268_v21, %v10268_v21  ;;  %v10469_v30 = vld [vmem:[%s11268_s0 + $0x48] sm:$0xff]  ;;  %v8259_v21 = vld [vmem:[%s11267_s1 + $0x1224] ss:$16 sps:$4 sm:$0xff]  }
 0x205   :  { %5304 = vmatprep.mubr.bf16.mxu0 %v6383_v31  ;;  %5837 = vmatprep.mubr.bf16.mxu1 %v6383_v31  ;;  %v8251_v31 = vld [vmem:[%s11267_s1 + $0x1200] ss:$16 sps:$4 sm:$0xff]  }
 0x207   :  { %5275 = vmatpush1.bf16.msra.mxu0 %v8159_v32  ;;  %5808 = vmatpush1.bf16.msra.mxu1 %v8162_v33  ;;  %v8254_v32 = vld [vmem:[%s11267_s1 + $0x1208] ss:$16 sps:$4 sm:$0xff]   ;;  %v8262_v33 = vld [vmem:[%s11267_s1 + $0x122c] ss:$16 sps:$4 sm:$0xff]  }
 0x208   :  { %5276 = vmatprep.subr.bf16.mxu0 %v8167_v34  ;;  %5809 = vmatprep.subr.bf16.mxu1 %v8170_v35  ;;  %v6385_v34 = vcombine.high %v10469_v30, %v10469_v30  ;;  %v8257_v35 = vld [vmem:[%s11267_s1 + $0x1220] ss:$16 sps:$4 sm:$0xff]  }
 0x20b   :  { %5277 = vmatpush1.bf16.msra.mxu0 %v8165_v36  ;;  %5810 = vmatpush1.bf16.msra.mxu1 %v8168_v37  ;;  %v8260_v36 = vld [vmem:[%s11267_s1 + $0x1228] ss:$16 sps:$4 sm:$0xff]   ;;  %v8265_v37 = vld [vmem:[%s11267_s1 + $0x1244] ss:$16 sps:$4 sm:$0xff]  }
 0x20c   :  { %5278 = vmatprep.subr.bf16.mxu0 %v8173_v38  ;;  %5811 = vmatprep.subr.bf16.mxu1 %v8176_v39  ;;  %v8268_v38 = vld [vmem:[%s11267_s1 + $0x124c] ss:$16 sps:$4 sm:$0xff]   ;;  %v8263_v39 = vld [vmem:[%s11267_s1 + $0x1240] ss:$16 sps:$4 sm:$0xff]  }
 0x20f   :  { %5279 = vmatpush1.bf16.msra.mxu0 %v8171_v40  ;;  %5812 = vmatpush1.bf16.msra.mxu1 %v8174_v41  ;;  %v8266_v40 = vld [vmem:[%s11267_s1 + $0x1248] ss:$16 sps:$4 sm:$0xff]   ;;  %v8271_v41 = vld [vmem:[%s11267_s1 + $0x1264] ss:$16 sps:$4 sm:$0xff]  }
 0x210   :  { %5280 = vmatprep.subr.bf16.mxu0 %v8179_v42  ;;  %5813 = vmatprep.subr.bf16.mxu1 %v8182_v43  ;;  %v8274_v42 = vld [vmem:[%s11267_s1 + $0x126c] ss:$16 sps:$4 sm:$0xff]   ;;  %v8269_v43 = vld [vmem:[%s11267_s1 + $0x1260] ss:$16 sps:$4 sm:$0xff]  }
 0x213   :  { %5281 = vmatpush1.bf16.msra.mxu0 %v8177_v44  ;;  %5814 = vmatpush1.bf16.msra.mxu1 %v8180_v45  ;;  %v8272_v44 = vld [vmem:[%s11267_s1 + $0x1268] ss:$16 sps:$4 sm:$0xff]   ;;  %v8277_v45 = vld [vmem:[%s11267_s1 + $0x1284] ss:$16 sps:$4 sm:$0xff]  }
 0x214   :  { %5282 = vmatprep.subr.bf16.mxu0 %v8185_v46  ;;  %5815 = vmatprep.subr.bf16.mxu1 %v8188_v47  ;;  %v8280_v46 = vld [vmem:[%s11267_s1 + $0x128c] ss:$16 sps:$4 sm:$0xff]   ;;  %v8275_v47 = vld [vmem:[%s11267_s1 + $0x1280] ss:$16 sps:$4 sm:$0xff]  }
 0x217   :  { %5283 = vmatpush1.bf16.msra.mxu0 %v8183_v48  ;;  %5816 = vmatpush1.bf16.msra.mxu1 %v8186_v49  ;;  %v8278_v48 = vld [vmem:[%s11267_s1 + $0x1288] ss:$16 sps:$4 sm:$0xff]   ;;  %v8283_v49 = vld [vmem:[%s11267_s1 + $0x12a4] ss:$16 sps:$4 sm:$0xff]  }
 0x218   :  { %5284 = vmatprep.subr.bf16.mxu0 %v8191_v50  ;;  %5817 = vmatprep.subr.bf16.mxu1 %v8194_v51  ;;  %v8286_v50 = vld [vmem:[%s11267_s1 + $0x12ac] ss:$16 sps:$4 sm:$0xff]   ;;  %v8281_v51 = vld [vmem:[%s11267_s1 + $0x12a0] ss:$16 sps:$4 sm:$0xff]  }
 0x21b   :  { %5285 = vmatpush1.bf16.msra.mxu0 %v8189_v52  ;;  %5818 = vmatpush1.bf16.msra.mxu1 %v8192_v53  ;;  %v8284_v52 = vld [vmem:[%s11267_s1 + $0x12a8] ss:$16 sps:$4 sm:$0xff]   ;;  %v8289_v53 = vld [vmem:[%s11267_s1 + $0x12c4] ss:$16 sps:$4 sm:$0xff]  }
 0x21c   :  { %5286 = vmatprep.subr.bf16.mxu0 %v8197_v54  ;;  %5819 = vmatprep.subr.bf16.mxu1 %v8200_v55  ;;  %v8292_v54 = vld [vmem:[%s11267_s1 + $0x12cc] ss:$16 sps:$4 sm:$0xff]   ;;  %v8287_v55 = vld [vmem:[%s11267_s1 + $0x12c0] ss:$16 sps:$4 sm:$0xff]  }
 0x21f   :  { %5287 = vmatpush1.bf16.msra.mxu0 %v8195_v56  ;;  %5820 = vmatpush1.bf16.msra.mxu1 %v8198_v57  ;;  %v8290_v56 = vld [vmem:[%s11267_s1 + $0x12c8] ss:$16 sps:$4 sm:$0xff]   ;;  %v8295_v57 = vld [vmem:[%s11267_s1 + $0x12e4] ss:$16 sps:$4 sm:$0xff]  }
 0x220   :  { %5288 = vmatprep.subr.bf16.mxu0 %v8203_v58  ;;  %5821 = vmatprep.subr.bf16.mxu1 %v8206_v59  ;;  %v8298_v58 = vld [vmem:[%s11267_s1 + $0x12ec] ss:$16 sps:$4 sm:$0xff]   ;;  %v8293_v59 = vld [vmem:[%s11267_s1 + $0x12e0] ss:$16 sps:$4 sm:$0xff]  }
 0x223   :  { %5289 = vmatpush1.bf16.msra.mxu0 %v8201_v60  ;;  %5822 = vmatpush1.bf16.msra.mxu1 %v8204_v61  ;;  %v8296_v60 = vld [vmem:[%s11267_s1 + $0x12e8] ss:$16 sps:$4 sm:$0xff]   ;;  %v8301_v61 = vld [vmem:[%s11267_s1 + $0x1304] ss:$16 sps:$4 sm:$0xff]  }
 0x224   :  { %5290 = vmatprep.subr.bf16.mxu0 %v8209_v62  ;;  %5823 = vmatprep.subr.bf16.mxu1 %v8212_v63  ;;  %v8304_v62 = vld [vmem:[%s11267_s1 + $0x130c] ss:$16 sps:$4 sm:$0xff]   ;;  %v8299_v63 = vld [vmem:[%s11267_s1 + $0x1300] ss:$16 sps:$4 sm:$0xff]  }
 0x227   :  { %5291 = vmatpush1.bf16.msra.mxu0 %v8207_v0  ;;  %5824 = vmatpush1.bf16.msra.mxu1 %v8210_v1  ;;  %v8302_v0 = vld [vmem:[%s11267_s1 + $0x1308] ss:$16 sps:$4 sm:$0xff]   ;;  %v8307_v1 = vld [vmem:[%s11267_s1 + $0x1324] ss:$16 sps:$4 sm:$0xff]  }
 0x228   :  { %5292 = vmatprep.subr.bf16.mxu0 %v8215_v2  ;;  %5825 = vmatprep.subr.bf16.mxu1 %v8218_v3  ;;  %v8310_v2 = vld [vmem:[%s11267_s1 + $0x132c] ss:$16 sps:$4 sm:$0xff]   ;;  %v8305_v3 = vld [vmem:[%s11267_s1 + $0x1320] ss:$16 sps:$4 sm:$0xff]  }
 0x22b   :  { %5293 = vmatpush1.bf16.msra.mxu0 %v8213_v4  ;;  %5826 = vmatpush1.bf16.msra.mxu1 %v8216_v5  ;;  %v8308_v4 = vld [vmem:[%s11267_s1 + $0x1328] ss:$16 sps:$4 sm:$0xff]   ;;  %v8313_v5 = vld [vmem:[%s11267_s1 + $0x1344] ss:$16 sps:$4 sm:$0xff]  }
 0x22c   :  { %5294 = vmatprep.subr.bf16.mxu0 %v8221_v6  ;;  %5827 = vmatprep.subr.bf16.mxu1 %v8224_v7  ;;  %v8316_v6 = vld [vmem:[%s11267_s1 + $0x134c] ss:$16 sps:$4 sm:$0xff]   ;;  %v8311_v7 = vld [vmem:[%s11267_s1 + $0x1340] ss:$16 sps:$4 sm:$0xff]  }
 0x22f   :  { %5295 = vmatpush1.bf16.msra.mxu0 %v8219_v8  ;;  %5828 = vmatpush1.bf16.msra.mxu1 %v8222_v9  ;;  %v8314_v8 = vld [vmem:[%s11267_s1 + $0x1348] ss:$16 sps:$4 sm:$0xff]   ;;  %v8319_v9 = vld [vmem:[%s11267_s1 + $0x1364] ss:$16 sps:$4 sm:$0xff]  }
 0x230   :  { %5296 = vmatprep.subr.bf16.mxu0 %v8227_v10  ;;  %5829 = vmatprep.subr.bf16.mxu1 %v8230_v12  ;;  %v8322_v10 = vld [vmem:[%s11267_s1 + $0x136c] ss:$16 sps:$4 sm:$0xff]   ;;  %v8317_v12 = vld [vmem:[%s11267_s1 + $0x1360] ss:$16 sps:$4 sm:$0xff]  }
 0x233   :  { %5297 = vmatpush1.bf16.msra.mxu0 %v8225_v13  ;;  %5830 = vmatpush1.bf16.msra.mxu1 %v8228_v15  ;;  %v8320_v13 = vld [vmem:[%s11267_s1 + $0x1368] ss:$16 sps:$4 sm:$0xff]   ;;  %v8325_v15 = vld [vmem:[%s11267_s1 + $0x1384] ss:$16 sps:$4 sm:$0xff]  }
 0x234   :  { %5298 = vmatprep.subr.bf16.mxu0 %v8233_v11  ;;  %5831 = vmatprep.subr.bf16.mxu1 %v8236_v17  ;;  %v8328_v11 = vld [vmem:[%s11267_s1 + $0x138c] ss:$16 sps:$4 sm:$0xff]   ;;  %v8323_v17 = vld [vmem:[%s11267_s1 + $0x1380] ss:$16 sps:$4 sm:$0xff]  }
 0x237   :  { %5299 = vmatpush1.bf16.msra.mxu0 %v8231_v14  ;;  %5832 = vmatpush1.bf16.msra.mxu1 %v8234_v19  ;;  %v8326_v14 = vld [vmem:[%s11267_s1 + $0x1388] ss:$16 sps:$4 sm:$0xff]   ;;  %v8331_v19 = vld [vmem:[%s11267_s1 + $0x13a4] ss:$16 sps:$4 sm:$0xff]  }
 0x238   :  { %5300 = vmatprep.subr.bf16.mxu0 %v8239_v20  ;;  %5833 = vmatprep.subr.bf16.mxu1 %v8242_v16  ;;  %v8334_v20 = vld [vmem:[%s11267_s1 + $0x13ac] ss:$16 sps:$4 sm:$0xff]   ;;  %v8329_v16 = vld [vmem:[%s11267_s1 + $0x13a0] ss:$16 sps:$4 sm:$0xff]  }
 0x23b   :  { %5301 = vmatpush1.bf16.msra.mxu0 %v8237_v22  ;;  %5834 = vmatpush1.bf16.msra.mxu1 %v8240_v23  ;;  %v8332_v22 = vld [vmem:[%s11267_s1 + $0x13a8] ss:$16 sps:$4 sm:$0xff]   ;;  %v8337_v23 = vld [vmem:[%s11267_s1 + $0x13c4] ss:$16 sps:$4 sm:$0xff]  }
 0x23c   :  { %5302 = vmatprep.subr.bf16.mxu0 %v8245_v18  ;;  %5835 = vmatprep.subr.bf16.mxu1 %v8248_v25  ;;  %v8340_v18 = vld [vmem:[%s11267_s1 + $0x13cc] ss:$16 sps:$4 sm:$0xff]   ;;  %v8335_v25 = vld [vmem:[%s11267_s1 + $0x13c0] ss:$16 sps:$4 sm:$0xff]  }
 0x23f   :  { %5303 = vmatpush1.bf16.msra.mxu0 %v8243_v26  ;;  %5836 = vmatpush1.bf16.msra.mxu1 %v8246_v27  ;;  %v8338_v26 = vld [vmem:[%s11267_s1 + $0x13c8] ss:$16 sps:$4 sm:$0xff]   ;;  %v8343_v27 = vld [vmem:[%s11267_s1 + $0x13e4] ss:$16 sps:$4 sm:$0xff]  }
 0x240   :  { %5313 = vmatprep.subr.bf16.mxu0 %v8253_v28  ;;  %5846 = vmatprep.subr.bf16.mxu1 %v8256_v29  ;;  %v8346_v28 = vld [vmem:[%s11267_s1 + $0x13ec] ss:$16 sps:$4 sm:$0xff]   ;;  %v8341_v29 = vld [vmem:[%s11267_s1 + $0x13e0] ss:$16 sps:$4 sm:$0xff]  }
 0x242   :  { %5305 = vmatmul.mubr.bf16.vlgmr.msra.gmra.mrb[0].mxu0 %v6382_v24  ;;  %5838 = vmatmul.mubr.bf16.vlgmr.msra.gmra.mrb[0].mxu1 %v6382_v24  ;;  %v8344_v24 = vld [vmem:[%s11267_s1 + $0x13e8] ss:$16 sps:$4 sm:$0xff]  }
 0x243   :  { %5314 = vmatpush1.bf16.msra.mxu0 %v8251_v31  ;;  %5847 = vmatpush1.bf16.msra.mxu1 %v8254_v32  ;;  %v8351_v31 = vld [vmem:[%s11267_s1 + $0x1404] ss:$16 sps:$4 sm:$0xff]   ;;  %v8354_v32 = vld [vmem:[%s11267_s1 + $0x140c] ss:$16 sps:$4 sm:$0xff]  }
 0x244   :  { %5315 = vmatprep.subr.bf16.mxu0 %v8259_v21  ;;  %5848 = vmatprep.subr.bf16.mxu1 %v8262_v33  ;;  %v6384_v21 = vcombine.low %v10469_v30, %v10469_v30  ;;  %v10670_v33 = vld [vmem:[%s11268_s0 + $0x50] sm:$0xff] }
 0x245   :  { %5345 = vmatprep.mubr.bf16.mxu0 %v6385_v34  ;;  %5878 = vmatprep.mubr.bf16.mxu1 %v6385_v34  ;;  %v8349_v34 = vld [vmem:[%s11267_s1 + $0x1400] ss:$16 sps:$4 sm:$0xff]   ;;  %v8357_v30 = vld [vmem:[%s11267_s1 + $0x1424] ss:$16 sps:$4 sm:$0xff]  }
 0x247   :  { %5316 = vmatpush1.bf16.msra.mxu0 %v8257_v35  ;;  %5849 = vmatpush1.bf16.msra.mxu1 %v8260_v36  ;;  %v8352_v35 = vld [vmem:[%s11267_s1 + $0x1408] ss:$16 sps:$4 sm:$0xff]   ;;  %v8360_v36 = vld [vmem:[%s11267_s1 + $0x142c] ss:$16 sps:$4 sm:$0xff]  }
 0x248   :  { %5317 = vmatprep.subr.bf16.mxu0 %v8265_v37  ;;  %5850 = vmatprep.subr.bf16.mxu1 %v8268_v38  ;;  %v6387_v37 = vcombine.high %v10670_v33, %v10670_v33  ;;  %v8355_v38 = vld [vmem:[%s11267_s1 + $0x1420] ss:$16 sps:$4 sm:$0xff]  }
 0x24b   :  { %5318 = vmatpush1.bf16.msra.mxu0 %v8263_v39  ;;  %5851 = vmatpush1.bf16.msra.mxu1 %v8266_v40  ;;  %v8358_v39 = vld [vmem:[%s11267_s1 + $0x1428] ss:$16 sps:$4 sm:$0xff]   ;;  %v8363_v40 = vld [vmem:[%s11267_s1 + $0x1444] ss:$16 sps:$4 sm:$0xff]  }
 0x24c   :  { %5319 = vmatprep.subr.bf16.mxu0 %v8271_v41  ;;  %5852 = vmatprep.subr.bf16.mxu1 %v8274_v42  ;;  %v8366_v41 = vld [vmem:[%s11267_s1 + $0x144c] ss:$16 sps:$4 sm:$0xff]   ;;  %v8361_v42 = vld [vmem:[%s11267_s1 + $0x1440] ss:$16 sps:$4 sm:$0xff]  }
 0x24f   :  { %5320 = vmatpush1.bf16.msra.mxu0 %v8269_v43  ;;  %5853 = vmatpush1.bf16.msra.mxu1 %v8272_v44  ;;  %v8364_v43 = vld [vmem:[%s11267_s1 + $0x1448] ss:$16 sps:$4 sm:$0xff]   ;;  %v8369_v44 = vld [vmem:[%s11267_s1 + $0x1464] ss:$16 sps:$4 sm:$0xff]  }
 0x250   :  { %5321 = vmatprep.subr.bf16.mxu0 %v8277_v45  ;;  %5854 = vmatprep.subr.bf16.mxu1 %v8280_v46  ;;  %v8372_v45 = vld [vmem:[%s11267_s1 + $0x146c] ss:$16 sps:$4 sm:$0xff]   ;;  %v8367_v46 = vld [vmem:[%s11267_s1 + $0x1460] ss:$16 sps:$4 sm:$0xff]  }
 0x253   :  { %5322 = vmatpush1.bf16.msra.mxu0 %v8275_v47  ;;  %5855 = vmatpush1.bf16.msra.mxu1 %v8278_v48  ;;  %v8370_v47 = vld [vmem:[%s11267_s1 + $0x1468] ss:$16 sps:$4 sm:$0xff]   ;;  %v8375_v48 = vld [vmem:[%s11267_s1 + $0x1484] ss:$16 sps:$4 sm:$0xff]  }
 0x254   :  { %5323 = vmatprep.subr.bf16.mxu0 %v8283_v49  ;;  %5856 = vmatprep.subr.bf16.mxu1 %v8286_v50  ;;  %v8378_v49 = vld [vmem:[%s11267_s1 + $0x148c] ss:$16 sps:$4 sm:$0xff]   ;;  %v8373_v50 = vld [vmem:[%s11267_s1 + $0x1480] ss:$16 sps:$4 sm:$0xff]  }
 0x257   :  { %5324 = vmatpush1.bf16.msra.mxu0 %v8281_v51  ;;  %5857 = vmatpush1.bf16.msra.mxu1 %v8284_v52  ;;  %v8376_v51 = vld [vmem:[%s11267_s1 + $0x1488] ss:$16 sps:$4 sm:$0xff]   ;;  %v8381_v52 = vld [vmem:[%s11267_s1 + $0x14a4] ss:$16 sps:$4 sm:$0xff]  }
 0x258   :  { %5325 = vmatprep.subr.bf16.mxu0 %v8289_v53  ;;  %5858 = vmatprep.subr.bf16.mxu1 %v8292_v54  ;;  %v8384_v53 = vld [vmem:[%s11267_s1 + $0x14ac] ss:$16 sps:$4 sm:$0xff]   ;;  %v8379_v54 = vld [vmem:[%s11267_s1 + $0x14a0] ss:$16 sps:$4 sm:$0xff]  }
 0x25b   :  { %5326 = vmatpush1.bf16.msra.mxu0 %v8287_v55  ;;  %5859 = vmatpush1.bf16.msra.mxu1 %v8290_v56  ;;  %v8382_v55 = vld [vmem:[%s11267_s1 + $0x14a8] ss:$16 sps:$4 sm:$0xff]   ;;  %v8387_v56 = vld [vmem:[%s11267_s1 + $0x14c4] ss:$16 sps:$4 sm:$0xff]  }
 0x25c   :  { %5327 = vmatprep.subr.bf16.mxu0 %v8295_v57  ;;  %5860 = vmatprep.subr.bf16.mxu1 %v8298_v58  ;;  %v8390_v57 = vld [vmem:[%s11267_s1 + $0x14cc] ss:$16 sps:$4 sm:$0xff]   ;;  %v8385_v58 = vld [vmem:[%s11267_s1 + $0x14c0] ss:$16 sps:$4 sm:$0xff]  }
 0x25f   :  { %5328 = vmatpush1.bf16.msra.mxu0 %v8293_v59  ;;  %5861 = vmatpush1.bf16.msra.mxu1 %v8296_v60  ;;  %v8388_v59 = vld [vmem:[%s11267_s1 + $0x14c8] ss:$16 sps:$4 sm:$0xff]   ;;  %v8393_v60 = vld [vmem:[%s11267_s1 + $0x14e4] ss:$16 sps:$4 sm:$0xff]  }
 0x260   :  { %5329 = vmatprep.subr.bf16.mxu0 %v8301_v61  ;;  %5862 = vmatprep.subr.bf16.mxu1 %v8304_v62  ;;  %v8396_v61 = vld [vmem:[%s11267_s1 + $0x14ec] ss:$16 sps:$4 sm:$0xff]   ;;  %v8391_v62 = vld [vmem:[%s11267_s1 + $0x14e0] ss:$16 sps:$4 sm:$0xff]  }
 0x263   :  { %5330 = vmatpush1.bf16.msra.mxu0 %v8299_v63  ;;  %5863 = vmatpush1.bf16.msra.mxu1 %v8302_v0  ;;  %v8394_v63 = vld [vmem:[%s11267_s1 + $0x14e8] ss:$16 sps:$4 sm:$0xff]   ;;  %v8399_v0 = vld [vmem:[%s11267_s1 + $0x1504] ss:$16 sps:$4 sm:$0xff]  }
 0x264   :  { %5331 = vmatprep.subr.bf16.mxu0 %v8307_v1  ;;  %5864 = vmatprep.subr.bf16.mxu1 %v8310_v2  ;;  %v8402_v1 = vld [vmem:[%s11267_s1 + $0x150c] ss:$16 sps:$4 sm:$0xff]   ;;  %v8397_v2 = vld [vmem:[%s11267_s1 + $0x1500] ss:$16 sps:$4 sm:$0xff]  }
 0x267   :  { %5332 = vmatpush1.bf16.msra.mxu0 %v8305_v3  ;;  %5865 = vmatpush1.bf16.msra.mxu1 %v8308_v4  ;;  %v8400_v3 = vld [vmem:[%s11267_s1 + $0x1508] ss:$16 sps:$4 sm:$0xff]   ;;  %v8405_v4 = vld [vmem:[%s11267_s1 + $0x1524] ss:$16 sps:$4 sm:$0xff]  }
 0x268   :  { %5333 = vmatprep.subr.bf16.mxu0 %v8313_v5  ;;  %5866 = vmatprep.subr.bf16.mxu1 %v8316_v6  ;;  %v8408_v5 = vld [vmem:[%s11267_s1 + $0x152c] ss:$16 sps:$4 sm:$0xff]   ;;  %v8403_v6 = vld [vmem:[%s11267_s1 + $0x1520] ss:$16 sps:$4 sm:$0xff]  }
 0x26b   :  { %5334 = vmatpush1.bf16.msra.mxu0 %v8311_v7  ;;  %5867 = vmatpush1.bf16.msra.mxu1 %v8314_v8  ;;  %v8406_v7 = vld [vmem:[%s11267_s1 + $0x1528] ss:$16 sps:$4 sm:$0xff]   ;;  %v8411_v8 = vld [vmem:[%s11267_s1 + $0x1544] ss:$16 sps:$4 sm:$0xff]  }
 0x26c   :  { %5335 = vmatprep.subr.bf16.mxu0 %v8319_v9  ;;  %5868 = vmatprep.subr.bf16.mxu1 %v8322_v10  ;;  %v8414_v9 = vld [vmem:[%s11267_s1 + $0x154c] ss:$16 sps:$4 sm:$0xff]   ;;  %v8409_v10 = vld [vmem:[%s11267_s1 + $0x1540] ss:$16 sps:$4 sm:$0xff]  }
 0x26f   :  { %5336 = vmatpush1.bf16.msra.mxu0 %v8317_v12  ;;  %5869 = vmatpush1.bf16.msra.mxu1 %v8320_v13  ;;  %v8412_v12 = vld [vmem:[%s11267_s1 + $0x1548] ss:$16 sps:$4 sm:$0xff]   ;;  %v8417_v13 = vld [vmem:[%s11267_s1 + $0x1564] ss:$16 sps:$4 sm:$0xff]  }
 0x270   :  { %5337 = vmatprep.subr.bf16.mxu0 %v8325_v15  ;;  %5870 = vmatprep.subr.bf16.mxu1 %v8328_v11  ;;  %v8420_v15 = vld [vmem:[%s11267_s1 + $0x156c] ss:$16 sps:$4 sm:$0xff]   ;;  %v8415_v11 = vld [vmem:[%s11267_s1 + $0x1560] ss:$16 sps:$4 sm:$0xff]  }
 0x273   :  { %5338 = vmatpush1.bf16.msra.mxu0 %v8323_v17  ;;  %5871 = vmatpush1.bf16.msra.mxu1 %v8326_v14  ;;  %v8418_v17 = vld [vmem:[%s11267_s1 + $0x1568] ss:$16 sps:$4 sm:$0xff]   ;;  %v8423_v14 = vld [vmem:[%s11267_s1 + $0x1584] ss:$16 sps:$4 sm:$0xff]  }
 0x274   :  { %5339 = vmatprep.subr.bf16.mxu0 %v8331_v19  ;;  %5872 = vmatprep.subr.bf16.mxu1 %v8334_v20  ;;  %v8426_v19 = vld [vmem:[%s11267_s1 + $0x158c] ss:$16 sps:$4 sm:$0xff]   ;;  %v8421_v20 = vld [vmem:[%s11267_s1 + $0x1580] ss:$16 sps:$4 sm:$0xff]  }
 0x277   :  { %5340 = vmatpush1.bf16.msra.mxu0 %v8329_v16  ;;  %5873 = vmatpush1.bf16.msra.mxu1 %v8332_v22  ;;  %v8424_v16 = vld [vmem:[%s11267_s1 + $0x1588] ss:$16 sps:$4 sm:$0xff]   ;;  %v8429_v22 = vld [vmem:[%s11267_s1 + $0x15a4] ss:$16 sps:$4 sm:$0xff]  }
 0x278   :  { %5341 = vmatprep.subr.bf16.mxu0 %v8337_v23  ;;  %5874 = vmatprep.subr.bf16.mxu1 %v8340_v18  ;;  %v8432_v23 = vld [vmem:[%s11267_s1 + $0x15ac] ss:$16 sps:$4 sm:$0xff]   ;;  %v8427_v18 = vld [vmem:[%s11267_s1 + $0x15a0] ss:$16 sps:$4 sm:$0xff]  }
 0x27b   :  { %5342 = vmatpush1.bf16.msra.mxu0 %v8335_v25  ;;  %5875 = vmatpush1.bf16.msra.mxu1 %v8338_v26  ;;  %v8430_v25 = vld [vmem:[%s11267_s1 + $0x15a8] ss:$16 sps:$4 sm:$0xff]   ;;  %v8435_v26 = vld [vmem:[%s11267_s1 + $0x15c4] ss:$16 sps:$4 sm:$0xff]  }
 0x27c   :  { %5343 = vmatprep.subr.bf16.mxu0 %v8343_v27  ;;  %5876 = vmatprep.subr.bf16.mxu1 %v8346_v28  ;;  %v8438_v27 = vld [vmem:[%s11267_s1 + $0x15cc] ss:$16 sps:$4 sm:$0xff]   ;;  %v8433_v28 = vld [vmem:[%s11267_s1 + $0x15c0] ss:$16 sps:$4 sm:$0xff]  }
 0x27f   :  { %5344 = vmatpush1.bf16.msra.mxu0 %v8341_v29  ;;  %5877 = vmatpush1.bf16.msra.mxu1 %v8344_v24  ;;  %v8436_v29 = vld [vmem:[%s11267_s1 + $0x15c8] ss:$16 sps:$4 sm:$0xff]   ;;  %v8441_v24 = vld [vmem:[%s11267_s1 + $0x15e4] ss:$16 sps:$4 sm:$0xff]  }
 0x280   :  { %5354 = vmatprep.subr.bf16.mxu0 %v8351_v31  ;;  %5887 = vmatprep.subr.bf16.mxu1 %v8354_v32  ;;  %v8444_v31 = vld [vmem:[%s11267_s1 + $0x15ec] ss:$16 sps:$4 sm:$0xff]   ;;  %v8439_v32 = vld [vmem:[%s11267_s1 + $0x15e0] ss:$16 sps:$4 sm:$0xff]  }
 0x282   :  { %5346 = vmatmul.mubr.bf16.vlgmr.msra.gmra.mrb[0].mxu0 %v6384_v21  ;;  %5879 = vmatmul.mubr.bf16.vlgmr.msra.gmra.mrb[0].mxu1 %v6384_v21  ;;  %v8442_v21 = vld [vmem:[%s11267_s1 + $0x15e8] ss:$16 sps:$4 sm:$0xff]  }
 0x283   :  { %5355 = vmatpush1.bf16.msra.mxu0 %v8349_v34  ;;  %5888 = vmatpush1.bf16.msra.mxu1 %v8352_v35  ;;  %v8449_v34 = vld [vmem:[%s11267_s1 + $0x1604] ss:$16 sps:$4 sm:$0xff]   ;;  %v8452_v35 = vld [vmem:[%s11267_s1 + $0x160c] ss:$16 sps:$4 sm:$0xff]  }
 0x284   :  { %5356 = vmatprep.subr.bf16.mxu0 %v8357_v30  ;;  %5889 = vmatprep.subr.bf16.mxu1 %v8360_v36  ;;  %v10869_v30 = vld [vmem:[%s11268_s0 + $0x58] sm:$0xff]  ;;  %v8447_v36 = vld [vmem:[%s11267_s1 + $0x1600] ss:$16 sps:$4 sm:$0xff]  }
 0x285   :  { %5386 = vmatprep.mubr.bf16.mxu0 %v6387_v37  ;;  %5919 = vmatprep.mubr.bf16.mxu1 %v6387_v37  ;;  %v8450_v37 = vld [vmem:[%s11267_s1 + $0x1608] ss:$16 sps:$4 sm:$0xff]  }
 0x287   :  { %5357 = vmatpush1.bf16.msra.mxu0 %v8355_v38  ;;  %5890 = vmatpush1.bf16.msra.mxu1 %v8358_v39  ;;  %v6386_v38 = vcombine.low %v10670_v33, %v10670_v33  ;;  %v8455_v39 = vld [vmem:[%s11267_s1 + $0x1624] ss:$16 sps:$4 sm:$0xff]   ;;  %v8453_v33 = vld [vmem:[%s11267_s1 + $0x1620] ss:$16 sps:$4 sm:$0xff]  }
 0x288   :  { %5358 = vmatprep.subr.bf16.mxu0 %v8363_v40  ;;  %5891 = vmatprep.subr.bf16.mxu1 %v8366_v41  ;;  %v8458_v40 = vld [vmem:[%s11267_s1 + $0x162c] ss:$16 sps:$4 sm:$0xff]   ;;  %v6389_v41 = vcombine.high %v10869_v30, %v10869_v30 }
 0x28b   :  { %5359 = vmatpush1.bf16.msra.mxu0 %v8361_v42  ;;  %5892 = vmatpush1.bf16.msra.mxu1 %v8364_v43  ;;  %v8456_v42 = vld [vmem:[%s11267_s1 + $0x1628] ss:$16 sps:$4 sm:$0xff]   ;;  %v8461_v43 = vld [vmem:[%s11267_s1 + $0x1644] ss:$16 sps:$4 sm:$0xff]  }
 0x28c   :  { %5360 = vmatprep.subr.bf16.mxu0 %v8369_v44  ;;  %5893 = vmatprep.subr.bf16.mxu1 %v8372_v45  ;;  %v8464_v44 = vld [vmem:[%s11267_s1 + $0x164c] ss:$16 sps:$4 sm:$0xff]   ;;  %v8459_v45 = vld [vmem:[%s11267_s1 + $0x1640] ss:$16 sps:$4 sm:$0xff]  }
 0x28f   :  { %5361 = vmatpush1.bf16.msra.mxu0 %v8367_v46  ;;  %5894 = vmatpush1.bf16.msra.mxu1 %v8370_v47  ;;  %v8462_v46 = vld [vmem:[%s11267_s1 + $0x1648] ss:$16 sps:$4 sm:$0xff]   ;;  %v8467_v47 = vld [vmem:[%s11267_s1 + $0x1664] ss:$16 sps:$4 sm:$0xff]  }
 0x290   :  { %5362 = vmatprep.subr.bf16.mxu0 %v8375_v48  ;;  %5895 = vmatprep.subr.bf16.mxu1 %v8378_v49  ;;  %v8470_v48 = vld [vmem:[%s11267_s1 + $0x166c] ss:$16 sps:$4 sm:$0xff]   ;;  %v8465_v49 = vld [vmem:[%s11267_s1 + $0x1660] ss:$16 sps:$4 sm:$0xff]  }
 0x293   :  { %5363 = vmatpush1.bf16.msra.mxu0 %v8373_v50  ;;  %5896 = vmatpush1.bf16.msra.mxu1 %v8376_v51  ;;  %v8468_v50 = vld [vmem:[%s11267_s1 + $0x1668] ss:$16 sps:$4 sm:$0xff]   ;;  %v8473_v51 = vld [vmem:[%s11267_s1 + $0x1684] ss:$16 sps:$4 sm:$0xff]  }
 0x294   :  { %5364 = vmatprep.subr.bf16.mxu0 %v8381_v52  ;;  %5897 = vmatprep.subr.bf16.mxu1 %v8384_v53  ;;  %v8476_v52 = vld [vmem:[%s11267_s1 + $0x168c] ss:$16 sps:$4 sm:$0xff]   ;;  %v8471_v53 = vld [vmem:[%s11267_s1 + $0x1680] ss:$16 sps:$4 sm:$0xff]  }
 0x297   :  { %5365 = vmatpush1.bf16.msra.mxu0 %v8379_v54  ;;  %5898 = vmatpush1.bf16.msra.mxu1 %v8382_v55  ;;  %v8474_v54 = vld [vmem:[%s11267_s1 + $0x1688] ss:$16 sps:$4 sm:$0xff]   ;;  %v8479_v55 = vld [vmem:[%s11267_s1 + $0x16a4] ss:$16 sps:$4 sm:$0xff]  }
 0x298   :  { %5366 = vmatprep.subr.bf16.mxu0 %v8387_v56  ;;  %5899 = vmatprep.subr.bf16.mxu1 %v8390_v57  ;;  %v8482_v56 = vld [vmem:[%s11267_s1 + $0x16ac] ss:$16 sps:$4 sm:$0xff]   ;;  %v8477_v57 = vld [vmem:[%s11267_s1 + $0x16a0] ss:$16 sps:$4 sm:$0xff]  }
 0x29b   :  { %5367 = vmatpush1.bf16.msra.mxu0 %v8385_v58  ;;  %5900 = vmatpush1.bf16.msra.mxu1 %v8388_v59  ;;  %v8480_v58 = vld [vmem:[%s11267_s1 + $0x16a8] ss:$16 sps:$4 sm:$0xff]   ;;  %v8485_v59 = vld [vmem:[%s11267_s1 + $0x16c4] ss:$16 sps:$4 sm:$0xff]  }
 0x29c   :  { %5368 = vmatprep.subr.bf16.mxu0 %v8393_v60  ;;  %5901 = vmatprep.subr.bf16.mxu1 %v8396_v61  ;;  %v8488_v60 = vld [vmem:[%s11267_s1 + $0x16cc] ss:$16 sps:$4 sm:$0xff]   ;;  %v8483_v61 = vld [vmem:[%s11267_s1 + $0x16c0] ss:$16 sps:$4 sm:$0xff]  }
 0x29f   :  { %5369 = vmatpush1.bf16.msra.mxu0 %v8391_v62  ;;  %5902 = vmatpush1.bf16.msra.mxu1 %v8394_v63  ;;  %v8486_v62 = vld [vmem:[%s11267_s1 + $0x16c8] ss:$16 sps:$4 sm:$0xff]   ;;  %v8491_v63 = vld [vmem:[%s11267_s1 + $0x16e4] ss:$16 sps:$4 sm:$0xff]  }
 0x2a0   :  { %5370 = vmatprep.subr.bf16.mxu0 %v8399_v0  ;;  %5903 = vmatprep.subr.bf16.mxu1 %v8402_v1  ;;  %v8494_v0 = vld [vmem:[%s11267_s1 + $0x16ec] ss:$16 sps:$4 sm:$0xff]   ;;  %v8489_v1 = vld [vmem:[%s11267_s1 + $0x16e0] ss:$16 sps:$4 sm:$0xff]  }
 0x2a3   :  { %5371 = vmatpush1.bf16.msra.mxu0 %v8397_v2  ;;  %5904 = vmatpush1.bf16.msra.mxu1 %v8400_v3  ;;  %v8492_v2 = vld [vmem:[%s11267_s1 + $0x16e8] ss:$16 sps:$4 sm:$0xff]   ;;  %v8497_v3 = vld [vmem:[%s11267_s1 + $0x1704] ss:$16 sps:$4 sm:$0xff]  }
 0x2a4   :  { %5372 = vmatprep.subr.bf16.mxu0 %v8405_v4  ;;  %5905 = vmatprep.subr.bf16.mxu1 %v8408_v5  ;;  %v8500_v4 = vld [vmem:[%s11267_s1 + $0x170c] ss:$16 sps:$4 sm:$0xff]   ;;  %v8495_v5 = vld [vmem:[%s11267_s1 + $0x1700] ss:$16 sps:$4 sm:$0xff]  }
 0x2a7   :  { %5373 = vmatpush1.bf16.msra.mxu0 %v8403_v6  ;;  %5906 = vmatpush1.bf16.msra.mxu1 %v8406_v7  ;;  %v8498_v6 = vld [vmem:[%s11267_s1 + $0x1708] ss:$16 sps:$4 sm:$0xff]   ;;  %v8503_v7 = vld [vmem:[%s11267_s1 + $0x1724] ss:$16 sps:$4 sm:$0xff]  }
 0x2a8   :  { %5374 = vmatprep.subr.bf16.mxu0 %v8411_v8  ;;  %5907 = vmatprep.subr.bf16.mxu1 %v8414_v9  ;;  %v8506_v8 = vld [vmem:[%s11267_s1 + $0x172c] ss:$16 sps:$4 sm:$0xff]   ;;  %v8501_v9 = vld [vmem:[%s11267_s1 + $0x1720] ss:$16 sps:$4 sm:$0xff]  }
 0x2ab   :  { %5375 = vmatpush1.bf16.msra.mxu0 %v8409_v10  ;;  %5908 = vmatpush1.bf16.msra.mxu1 %v8412_v12  ;;  %v8504_v10 = vld [vmem:[%s11267_s1 + $0x1728] ss:$16 sps:$4 sm:$0xff]   ;;  %v8509_v12 = vld [vmem:[%s11267_s1 + $0x1744] ss:$16 sps:$4 sm:$0xff]  }
 0x2ac   :  { %5376 = vmatprep.subr.bf16.mxu0 %v8417_v13  ;;  %5909 = vmatprep.subr.bf16.mxu1 %v8420_v15  ;;  %v8512_v13 = vld [vmem:[%s11267_s1 + $0x174c] ss:$16 sps:$4 sm:$0xff]   ;;  %v8507_v15 = vld [vmem:[%s11267_s1 + $0x1740] ss:$16 sps:$4 sm:$0xff]  }
 0x2af   :  { %5377 = vmatpush1.bf16.msra.mxu0 %v8415_v11  ;;  %5910 = vmatpush1.bf16.msra.mxu1 %v8418_v17  ;;  %v8510_v11 = vld [vmem:[%s11267_s1 + $0x1748] ss:$16 sps:$4 sm:$0xff]   ;;  %v8515_v17 = vld [vmem:[%s11267_s1 + $0x1764] ss:$16 sps:$4 sm:$0xff]  }
 0x2b0   :  { %5378 = vmatprep.subr.bf16.mxu0 %v8423_v14  ;;  %5911 = vmatprep.subr.bf16.mxu1 %v8426_v19  ;;  %v8518_v14 = vld [vmem:[%s11267_s1 + $0x176c] ss:$16 sps:$4 sm:$0xff]   ;;  %v8513_v19 = vld [vmem:[%s11267_s1 + $0x1760] ss:$16 sps:$4 sm:$0xff]  }
 0x2b3   :  { %5379 = vmatpush1.bf16.msra.mxu0 %v8421_v20  ;;  %5912 = vmatpush1.bf16.msra.mxu1 %v8424_v16  ;;  %v8516_v20 = vld [vmem:[%s11267_s1 + $0x1768] ss:$16 sps:$4 sm:$0xff]   ;;  %v8521_v16 = vld [vmem:[%s11267_s1 + $0x1784] ss:$16 sps:$4 sm:$0xff]  }
 0x2b4   :  { %5380 = vmatprep.subr.bf16.mxu0 %v8429_v22  ;;  %5913 = vmatprep.subr.bf16.mxu1 %v8432_v23  ;;  %v8524_v22 = vld [vmem:[%s11267_s1 + $0x178c] ss:$16 sps:$4 sm:$0xff]   ;;  %v8519_v23 = vld [vmem:[%s11267_s1 + $0x1780] ss:$16 sps:$4 sm:$0xff]  }
 0x2b7   :  { %5381 = vmatpush1.bf16.msra.mxu0 %v8427_v18  ;;  %5914 = vmatpush1.bf16.msra.mxu1 %v8430_v25  ;;  %v8522_v18 = vld [vmem:[%s11267_s1 + $0x1788] ss:$16 sps:$4 sm:$0xff]   ;;  %v8527_v25 = vld [vmem:[%s11267_s1 + $0x17a4] ss:$16 sps:$4 sm:$0xff]  }
 0x2b8   :  { %5382 = vmatprep.subr.bf16.mxu0 %v8435_v26  ;;  %5915 = vmatprep.subr.bf16.mxu1 %v8438_v27  ;;  %v8530_v26 = vld [vmem:[%s11267_s1 + $0x17ac] ss:$16 sps:$4 sm:$0xff]   ;;  %v8525_v27 = vld [vmem:[%s11267_s1 + $0x17a0] ss:$16 sps:$4 sm:$0xff]  }
 0x2bb   :  { %5383 = vmatpush1.bf16.msra.mxu0 %v8433_v28  ;;  %5916 = vmatpush1.bf16.msra.mxu1 %v8436_v29  ;;  %v8528_v28 = vld [vmem:[%s11267_s1 + $0x17a8] ss:$16 sps:$4 sm:$0xff]   ;;  %v8533_v29 = vld [vmem:[%s11267_s1 + $0x17c4] ss:$16 sps:$4 sm:$0xff]  }
 0x2bc   :  { %5384 = vmatprep.subr.bf16.mxu0 %v8441_v24  ;;  %5917 = vmatprep.subr.bf16.mxu1 %v8444_v31  ;;  %v8536_v24 = vld [vmem:[%s11267_s1 + $0x17cc] ss:$16 sps:$4 sm:$0xff]   ;;  %v8531_v31 = vld [vmem:[%s11267_s1 + $0x17c0] ss:$16 sps:$4 sm:$0xff]  }
 0x2bf   :  { %5385 = vmatpush1.bf16.msra.mxu0 %v8439_v32  ;;  %5918 = vmatpush1.bf16.msra.mxu1 %v8442_v21  ;;  %v8534_v32 = vld [vmem:[%s11267_s1 + $0x17c8] ss:$16 sps:$4 sm:$0xff]   ;;  %v8539_v21 = vld [vmem:[%s11267_s1 + $0x17e4] ss:$16 sps:$4 sm:$0xff]  }
 0x2c0   :  { %5395 = vmatprep.subr.bf16.mxu0 %v8449_v34  ;;  %5928 = vmatprep.subr.bf16.mxu1 %v8452_v35  ;;  %v8542_v34 = vld [vmem:[%s11267_s1 + $0x17ec] ss:$16 sps:$4 sm:$0xff]   ;;  %v8537_v35 = vld [vmem:[%s11267_s1 + $0x17e0] ss:$16 sps:$4 sm:$0xff]  }
 0x2c2   :  { %5387 = vmatmul.mubr.bf16.vlgmr.msra.gmra.mrb[0].mxu0 %v6386_v38  ;;  %5920 = vmatmul.mubr.bf16.vlgmr.msra.gmra.mrb[0].mxu1 %v6386_v38  ;;  %v8550_v38 = vld [vmem:[%s11267_s1 + $0x180c] ss:$16 sps:$4 sm:$0xff]  }
 0x2c3   :  { %5396 = vmatpush1.bf16.msra.mxu0 %v8447_v36  ;;  %5929 = vmatpush1.bf16.msra.mxu1 %v8450_v37  ;;  %v8540_v36 = vld [vmem:[%s11267_s1 + $0x17e8] ss:$16 sps:$4 sm:$0xff]   ;;  %v8547_v37 = vld [vmem:[%s11267_s1 + $0x1804] ss:$16 sps:$4 sm:$0xff]  }
 0x2c4   :  { %5397 = vmatprep.subr.bf16.mxu0 %v8455_v39  ;;  %5930 = vmatprep.subr.bf16.mxu1 %v8458_v40  ;;  %v6388_v39 = vcombine.low %v10869_v30, %v10869_v30  ;;  %v8545_v40 = vld [vmem:[%s11267_s1 + $0x1800] ss:$16 sps:$4 sm:$0xff]   ;;  %v8556_v30 = vld [vmem:[%s11267_s1 + $0x182c] ss:$16 sps:$4 sm:$0xff]  }
 0x2c5   :  { %5427 = vmatprep.mubr.bf16.mxu0 %v6389_v41  ;;  %5960 = vmatprep.mubr.bf16.mxu1 %v6389_v41  ;;  %v8548_v41 = vld [vmem:[%s11267_s1 + $0x1808] ss:$16 sps:$4 sm:$0xff]  }
 0x2c7   :  { %5398 = vmatpush1.bf16.msra.mxu0 %v8453_v33  ;;  %5931 = vmatpush1.bf16.msra.mxu1 %v8456_v42  ;;  %v8553_v33 = vld [vmem:[%s11267_s1 + $0x1824] ss:$16 sps:$4 sm:$0xff]   ;;  %v8551_v42 = vld [vmem:[%s11267_s1 + $0x1820] ss:$16 sps:$4 sm:$0xff]  }
 0x2c8   :  { %5399 = vmatprep.subr.bf16.mxu0 %v8461_v43  ;;  %5932 = vmatprep.subr.bf16.mxu1 %v8464_v44  ;;  %v8554_v43 = vld [vmem:[%s11267_s1 + $0x1828] ss:$16 sps:$4 sm:$0xff]   ;;  %v8559_v44 = vld [vmem:[%s11267_s1 + $0x1844] ss:$16 sps:$4 sm:$0xff]  }
 0x2cb   :  { %5400 = vmatpush1.bf16.msra.mxu0 %v8459_v45  ;;  %5933 = vmatpush1.bf16.msra.mxu1 %v8462_v46  ;;  %v8562_v45 = vld [vmem:[%s11267_s1 + $0x184c] ss:$16 sps:$4 sm:$0xff]   ;;  %v8626_v46 = vmov 0  }
 0x2cc   :  { %5401 = vmatprep.subr.bf16.mxu0 %v8467_v47  ;;  %5934 = vmatprep.subr.bf16.mxu1 %v8470_v48  ;;  %v8557_v47 = vld [vmem:[%s11267_s1 + $0x1840] ss:$16 sps:$4 sm:$0xff]   ;;  %v8560_v48 = vld [vmem:[%s11267_s1 + $0x1848] ss:$16 sps:$4 sm:$0xff]  }
 0x2cf   :  { %5402 = vmatpush1.bf16.msra.mxu0 %v8465_v49  ;;  %5935 = vmatpush1.bf16.msra.mxu1 %v8468_v50  ;;  %v8565_v49 = vld [vmem:[%s11267_s1 + $0x1864] ss:$16 sps:$4 sm:$0xff]   ;;  %v8568_v50 = vld [vmem:[%s11267_s1 + $0x186c] ss:$16 sps:$4 sm:$0xff]  }
 0x2d0   :  { %5403 = vmatprep.subr.bf16.mxu0 %v8473_v51  ;;  %5936 = vmatprep.subr.bf16.mxu1 %v8476_v52  ;;  %v8563_v51 = vld [vmem:[%s11267_s1 + $0x1860] ss:$16 sps:$4 sm:$0xff]   ;;  %v8566_v52 = vld [vmem:[%s11267_s1 + $0x1868] ss:$16 sps:$4 sm:$0xff]  }
 0x2d3   :  { %5404 = vmatpush1.bf16.msra.mxu0 %v8471_v53  ;;  %5937 = vmatpush1.bf16.msra.mxu1 %v8474_v54  ;;  %v8571_v53 = vld [vmem:[%s11267_s1 + $0x1884] ss:$16 sps:$4 sm:$0xff]   ;;  %v8574_v54 = vld [vmem:[%s11267_s1 + $0x188c] ss:$16 sps:$4 sm:$0xff]  }
 0x2d4   :  { %5405 = vmatprep.subr.bf16.mxu0 %v8479_v55  ;;  %5938 = vmatprep.subr.bf16.mxu1 %v8482_v56  ;;  %v8569_v55 = vld [vmem:[%s11267_s1 + $0x1880] ss:$16 sps:$4 sm:$0xff]   ;;  %v8572_v56 = vld [vmem:[%s11267_s1 + $0x1888] ss:$16 sps:$4 sm:$0xff]  }
 0x2d7   :  { %5406 = vmatpush1.bf16.msra.mxu0 %v8477_v57  ;;  %5939 = vmatpush1.bf16.msra.mxu1 %v8480_v58  ;;  %v8577_v57 = vld [vmem:[%s11267_s1 + $0x18a4] ss:$16 sps:$4 sm:$0xff]   ;;  %v8580_v58 = vld [vmem:[%s11267_s1 + $0x18ac] ss:$16 sps:$4 sm:$0xff]  }
 0x2d8   :  { %5407 = vmatprep.subr.bf16.mxu0 %v8485_v59  ;;  %5940 = vmatprep.subr.bf16.mxu1 %v8488_v60  ;;  %v8575_v59 = vld [vmem:[%s11267_s1 + $0x18a0] ss:$16 sps:$4 sm:$0xff]   ;;  %v8578_v60 = vld [vmem:[%s11267_s1 + $0x18a8] ss:$16 sps:$4 sm:$0xff]  }
 0x2db   :  { %5408 = vmatpush1.bf16.msra.mxu0 %v8483_v61  ;;  %5941 = vmatpush1.bf16.msra.mxu1 %v8486_v62  ;;  %v8583_v61 = vld [vmem:[%s11267_s1 + $0x18c4] ss:$16 sps:$4 sm:$0xff]   ;;  %v8586_v62 = vld [vmem:[%s11267_s1 + $0x18cc] ss:$16 sps:$4 sm:$0xff]  }
 0x2dc   :  { %5409 = vmatprep.subr.bf16.mxu0 %v8491_v63  ;;  %5942 = vmatprep.subr.bf16.mxu1 %v8494_v0  ;;  %v8581_v63 = vld [vmem:[%s11267_s1 + $0x18c0] ss:$16 sps:$4 sm:$0xff]   ;;  %v8584_v0 = vld [vmem:[%s11267_s1 + $0x18c8] ss:$16 sps:$4 sm:$0xff]  }
 0x2df   :  { %5410 = vmatpush1.bf16.msra.mxu0 %v8489_v1  ;;  %5943 = vmatpush1.bf16.msra.mxu1 %v8492_v2  ;;  %v8589_v1 = vld [vmem:[%s11267_s1 + $0x18e4] ss:$16 sps:$4 sm:$0xff]   ;;  %v8592_v2 = vld [vmem:[%s11267_s1 + $0x18ec] ss:$16 sps:$4 sm:$0xff]  }
 0x2e0   :  { %5411 = vmatprep.subr.bf16.mxu0 %v8497_v3  ;;  %5944 = vmatprep.subr.bf16.mxu1 %v8500_v4  ;;  %v8587_v3 = vld [vmem:[%s11267_s1 + $0x18e0] ss:$16 sps:$4 sm:$0xff]   ;;  %v8590_v4 = vld [vmem:[%s11267_s1 + $0x18e8] ss:$16 sps:$4 sm:$0xff]  }
 0x2e3   :  { %5412 = vmatpush1.bf16.msra.mxu0 %v8495_v5  ;;  %5945 = vmatpush1.bf16.msra.mxu1 %v8498_v6  ;;  %v8594_v5 = vld [vmem:[%s11269_s3 + $0x40] sm:$0xff]  }
 0x2e4   :  { %5413 = vmatprep.subr.bf16.mxu0 %v8503_v7  ;;  %5946 = vmatprep.subr.bf16.mxu1 %v8506_v8  ;;  %v8595_v6 = vld [vmem:[%s11269_s3 + $0xc0] sm:$0xff]  }
 0x2e5   :  { %v8593_v7 = vld [vmem:[%s11268_s0 + $0x60] ss:$0 sps:$4 sm:$0xff]  }
 0x2e6   :  { %v8596_v8 = vld [vmem:[%s11269_s3] sm:$0xff]  }
 0x2e7   :  { %5414 = vmatpush1.bf16.msra.mxu0 %v8501_v9  ;;  %5947 = vmatpush1.bf16.msra.mxu1 %v8504_v10  ;;  %v8597_v9 = vld [vmem:[%s11269_s3 + $0x80] sm:$0xff]   ;;  %v8598_v10 = vld [vmem:[%s11269_s3 + $0x48] sm:$0xff]  }
 0x2e8   :  { %5415 = vmatprep.subr.bf16.mxu0 %v8509_v12  ;;  %5948 = vmatprep.subr.bf16.mxu1 %v8512_v13  ;;  %v8599_v12 = vld [vmem:[%s11269_s3 + $0xc8] sm:$0xff]  }
 0x2e9   :  { %v8600_v13 = vld [vmem:[%s11269_s3 + $0x8] sm:$0xff]  }
 0x2eb   :  { %5416 = vmatpush1.bf16.msra.mxu0 %v8507_v15  ;;  %5949 = vmatpush1.bf16.msra.mxu1 %v8510_v11  ;;  %v8601_v15 = vld [vmem:[%s11269_s3 + $0x88] sm:$0xff]   ;;  %v8602_v11 = vld [vmem:[%s11269_s3 + $0x50] sm:$0xff]  }
 0x2ec   :  { %5417 = vmatprep.subr.bf16.mxu0 %v8515_v17  ;;  %5950 = vmatprep.subr.bf16.mxu1 %v8518_v14  ;;  %v8603_v17 = vld [vmem:[%s11269_s3 + $0xd0] sm:$0xff]  }
 0x2ed   :  { %v8604_v14 = vld [vmem:[%s11269_s3 + $0x10] sm:$0xff]  }
 0x2ef   :  { %5418 = vmatpush1.bf16.msra.mxu0 %v8513_v19  ;;  %5951 = vmatpush1.bf16.msra.mxu1 %v8516_v20  ;;  %v8605_v19 = vld [vmem:[%s11269_s3 + $0x90] sm:$0xff]   ;;  %v8606_v20 = vld [vmem:[%s11269_s3 + $0x58] sm:$0xff]  }
 0x2f0   :  { %5419 = vmatprep.subr.bf16.mxu0 %v8521_v16  ;;  %5952 = vmatprep.subr.bf16.mxu1 %v8524_v22  ;;  %v8607_v16 = vld [vmem:[%s11269_s3 + $0xd8] sm:$0xff]  }
 0x2f1   :  { %v8608_v22 = vld [vmem:[%s11269_s3 + $0x18] sm:$0xff]  }
 0x2f3   :  { %5420 = vmatpush1.bf16.msra.mxu0 %v8519_v23  ;;  %5953 = vmatpush1.bf16.msra.mxu1 %v8522_v18  ;;  %v8609_v23 = vld [vmem:[%s11269_s3 + $0x98] sm:$0xff]   ;;  %v8610_v18 = vld [vmem:[%s11269_s3 + $0x60] sm:$0xff]  }
 0x2f4   :  { %5421 = vmatprep.subr.bf16.mxu0 %v8527_v25  ;;  %5954 = vmatprep.subr.bf16.mxu1 %v8530_v26  ;;  %v8611_v25 = vld [vmem:[%s11269_s3 + $0xe0] sm:$0xff]  }
 0x2f5   :  { %v8612_v26 = vld [vmem:[%s11269_s3 + $0x20] sm:$0xff]  }
 0x2f7   :  { %5422 = vmatpush1.bf16.msra.mxu0 %v8525_v27  ;;  %5955 = vmatpush1.bf16.msra.mxu1 %v8528_v28  ;;  %v8613_v27 = vld [vmem:[%s11269_s3 + $0xa0] sm:$0xff]   ;;  %v8614_v28 = vld [vmem:[%s11269_s3 + $0x68] sm:$0xff]  }
 0x2f8   :  { %5423 = vmatprep.subr.bf16.mxu0 %v8533_v29  ;;  %5956 = vmatprep.subr.bf16.mxu1 %v8536_v24  ;;  %v8615_v29 = vld [vmem:[%s11269_s3 + $0xe8] sm:$0xff]  }
 0x2f9   :  { %v8616_v24 = vld [vmem:[%s11269_s3 + $0x28] sm:$0xff]  }
 0x2fb   :  { %5424 = vmatpush1.bf16.msra.mxu0 %v8531_v31  ;;  %5957 = vmatpush1.bf16.msra.mxu1 %v8534_v32  ;;  %v8617_v31 = vld [vmem:[%s11269_s3 + $0xa8] sm:$0xff]   ;;  %v8618_v32 = vld [vmem:[%s11269_s3 + $0x70] sm:$0xff]  }
 0x2fc   :  { %5425 = vmatprep.subr.bf16.mxu0 %v8539_v21  ;;  %5958 = vmatprep.subr.bf16.mxu1 %v8542_v34  ;;  %v8619_v21 = vld [vmem:[%s11269_s3 + $0xf0] sm:$0xff]  }
 0x2fd   :  { %v8620_v34 = vld [vmem:[%s11269_s3 + $0x30] sm:$0xff]  }
 0x2ff   :  { %5426 = vmatpush1.bf16.msra.mxu0 %v8537_v35  ;;  %5959 = vmatpush1.bf16.msra.mxu1 %v8540_v36  ;;  %v8621_v35 = vld [vmem:[%s11269_s3 + $0xb0] sm:$0xff]   ;;  %v8622_v36 = vld [vmem:[%s11269_s3 + $0x78] sm:$0xff]  }
 0x300   :  { %5436 = vmatprep.subr.bf16.mxu0 %v8547_v37  ;;  %5969 = vmatprep.subr.bf16.mxu1 %v8550_v38  ;;  %v8623_v37 = vld [vmem:[%s11269_s3 + $0xf8] sm:$0xff]  }
 0x301   :  { %v8624_v38 = vld [vmem:[%s11269_s3 + $0x38] sm:$0xff]  }
 0x302   :  { %5428 = vmatmul.mubr.bf16.vlgmr.msra.gmra.mrb[0].mxu0 %v6388_v39  ;;  %5961 = vmatmul.mubr.bf16.vlgmr.msra.gmra.mrb[0].mxu1 %v6388_v39  ;;  %v8625_v39 = vld [vmem:[%s11269_s3 + $0xb8] sm:$0xff]  }
 0x303   :  { %5437 = vmatpush1.bf16.msra.mxu0 %v8545_v40  ;;  %5970 = vmatpush1.bf16.msra.mxu1 %v8548_v41  ;;  %v836_v40 = vlaneseq }
 0x304   :  { %5438 = vmatprep.subr.bf16.mxu0 %v8553_v33  ;;  %5971 = vmatprep.subr.bf16.mxu1 %v8556_v30 }
 0x305   :  { %5468 = vmatprep.mubr.bf16.mxu0 %v8626_v46  ;;  %6001 = vmatprep.mubr.bf16.mxu1 %v8626_v46  ;;  %v837_v41 = vshrl.u32 %v836_v40, 7 }
 0x307   :  { %5439 = vmatpush1.bf16.msra.mxu0 %v8551_v42  ;;  %5972 = vmatpush1.bf16.msra.mxu1 %v8554_v43  ;;  %v838_v33 = vsub.s32 0, %v837_v41  ;;  %v846_v30 = vsub.s32 2, %v837_v41  ;;  %v834_v42 = vld [vmem:[%s11270_s2] sm:$0xf]  ;;  %v842_v43 = vsub.s32 1, %v837_v41 }
 0x308   :  { %5440 = vmatprep.subr.bf16.mxu0 %v8559_v44  ;;  %5973 = vmatprep.subr.bf16.mxu1 %v8562_v45  ;;  %v850_v44 = vsub.s32 3, %v837_v41 }
 0x309   :  { %v839_v45 = vrot.slane %v834_v42, %v838_v33  ;;  %v847_v46 = vrot.slane %v834_v42, %v846_v30 }
 0x30b   :  { %5441 = vmatpush1.bf16.msra.mxu0 %v8557_v47  ;;  %5974 = vmatpush1.bf16.msra.mxu1 %v8560_v48  ;;  %v843_v47 = vrot.slane %v834_v42, %v842_v43  ;;  %v851_v48 = vrot.slane %v834_v42, %v850_v44 }
 0x30c   :  { %5442 = vmatprep.subr.bf16.mxu0 %v8565_v49  ;;  %5975 = vmatprep.subr.bf16.mxu1 %v8568_v50 }
 0x30f   :  { %5443 = vmatpush1.bf16.msra.mxu0 %v8563_v51  ;;  %5976 = vmatpush1.bf16.msra.mxu1 %v8566_v52 }
 0x310   :  { %5444 = vmatprep.subr.bf16.mxu0 %v8571_v53  ;;  %5977 = vmatprep.subr.bf16.mxu1 %v8574_v54 }
 0x313   :  { %5445 = vmatpush1.bf16.msra.mxu0 %v8569_v55  ;;  %5978 = vmatpush1.bf16.msra.mxu1 %v8572_v56 }
 0x314   :  { %5446 = vmatprep.subr.bf16.mxu0 %v8577_v57  ;;  %5979 = vmatprep.subr.bf16.mxu1 %v8580_v58 }
 0x317   :  { %5447 = vmatpush1.bf16.msra.mxu0 %v8575_v59  ;;  %5980 = vmatpush1.bf16.msra.mxu1 %v8578_v60 }
 0x318   :  { %5448 = vmatprep.subr.bf16.mxu0 %v8583_v61  ;;  %5981 = vmatprep.subr.bf16.mxu1 %v8586_v62 }
 0x31b   :  { %5449 = vmatpush1.bf16.msra.mxu0 %v8581_v63  ;;  %5982 = vmatpush1.bf16.msra.mxu1 %v8584_v0 }
 0x31c   :  { %5450 = vmatprep.subr.bf16.mxu0 %v8589_v1  ;;  %5983 = vmatprep.subr.bf16.mxu1 %v8592_v2 }
 0x31f   :  { %5451 = vmatpush1.bf16.msra.mxu0 %v8587_v3  ;;  %5984 = vmatpush1.bf16.msra.mxu1 %v8590_v4 }
 0x320   :  { %7224 = vmatprep.subr.bf16.mxu0 %v8594_v5  ;;  %7246 = vmatprep.subr.bf16.mxu1 %v8595_v6 }
 0x322   :  { %5469 = vmatmul.mubr.bf16.vlgmr.msra.gmra.mrb[0].mxu0 %v8593_v7  ;;  %6002 = vmatmul.mubr.bf16.vlgmr.msra.gmra.mrb[0].mxu1 %v8593_v7  ;;  %v7191_v7 = vld [vmem:[%s11271_s4] ss:$0 sm:$0xff] }
 0x323   :  { %7225 = vmatpush3.bf16.msra.mxu0 %v8596_v8  ;;  %7247 = vmatpush3.bf16.msra.mxu1 %v8597_v9 }
 0x324   :  { %7226 = vmatprep.subr.bf16.mxu0 %v8598_v10  ;;  %7248 = vmatprep.subr.bf16.mxu1 %v8599_v12 }
 0x327   :  { %7227 = vmatpush3.bf16.msra.mxu0 %v8600_v13  ;;  %7249 = vmatpush3.bf16.msra.mxu1 %v8601_v15 }
 0x328   :  { %7228 = vmatprep.subr.bf16.mxu0 %v8602_v11  ;;  %7250 = vmatprep.subr.bf16.mxu1 %v8603_v17 }
 0x32b   :  { %7229 = vmatpush3.bf16.msra.mxu0 %v8604_v14  ;;  %7251 = vmatpush3.bf16.msra.mxu1 %v8605_v19 }
 0x32c   :  { %7230 = vmatprep.subr.bf16.mxu0 %v8606_v20  ;;  %7252 = vmatprep.subr.bf16.mxu1 %v8607_v16 }
 0x32f   :  { %7231 = vmatpush3.bf16.msra.mxu0 %v8608_v22  ;;  %7253 = vmatpush3.bf16.msra.mxu1 %v8609_v23 }
 0x330   :  { %7232 = vmatprep.subr.bf16.mxu0 %v8610_v18  ;;  %7254 = vmatprep.subr.bf16.mxu1 %v8611_v25 }
 0x333   :  { %7233 = vmatpush3.bf16.msra.mxu0 %v8612_v26  ;;  %7255 = vmatpush3.bf16.msra.mxu1 %v8613_v27 }
 0x334   :  { %7234 = vmatprep.subr.bf16.mxu0 %v8614_v28  ;;  %7256 = vmatprep.subr.bf16.mxu1 %v8615_v29 }
 0x337   :  { %7235 = vmatpush3.bf16.msra.mxu0 %v8616_v24  ;;  %7257 = vmatpush3.bf16.msra.mxu1 %v8617_v31 }
 0x338   :  { %7236 = vmatprep.subr.bf16.mxu0 %v8618_v32  ;;  %7258 = vmatprep.subr.bf16.mxu1 %v8619_v21 }
 0x33b   :  { %7237 = vmatpush3.bf16.msra.mxu0 %v8620_v34  ;;  %7259 = vmatpush3.bf16.msra.mxu1 %v8621_v35 }
 0x33c   :  { %7238 = vmatprep.subr.bf16.mxu0 %v8622_v36  ;;  %7260 = vmatprep.subr.bf16.mxu1 %v8623_v37 }
 0x33f   :  { %7239 = vmatpush3.bf16.msra.mxu0 %v8624_v38  ;;  %7261 = vmatpush3.bf16.msra.mxu1 %v8625_v39 }
 0x3f5   :  { %v5470_v49 = vpop.f32.mrb[0].mxu0  ;;  %v6003_v50 = vpop.f32.mrb[0].mxu1 }
 0x3f6   :  { %v7268_v51 = vadd.f32 %v5470_v49, %v839_v45  ;;  %v7270_v52 = vadd.f32 %v6003_v50, %v847_v46  ;;  %v5472_v53 = vpop.f32.mrb[1].mxu0  ;;  %v6005_v54 = vpop.f32.mrb[1].mxu1 }
 0x3f7   :  { %v7269_v55 = vadd.f32 %v5472_v53, %v843_v47  ;;  %v7271_v56 = vadd.f32 %v6005_v54, %v851_v48  ;;  %v5474_v57 = vpop.f32.mrb[2].mxu0  ;;  %v6007_v58 = vpop.f32.mrb[2].mxu1 }
 0x3f8   :  { %v6010_v59 = vmax.f32 %v7268_v51, 0.0  ;;  %v6012_v60 = vmax.f32 %v7270_v52, 0.0  ;;  %v5475_v61 = vpop.f32.mrb[3].mxu0  ;;  %v6008_v62 = vpop.f32.mrb[3].mxu1 }
 0x3f9   :  { %v6011_v63 = vmax.f32 %v7269_v55, 0.0  ;;  %v6013_v0 = vmax.f32 %v7271_v56, 0.0 }
 0x3fa   :  { %v6014_v3 = vpack.c.bf16 %v6010_v59, %v6010_v59  ;;  %v6016_v4 = vpack.c.bf16 %v6012_v60, %v6012_v60 }
 0x3fb   :  { %v6015_v1 = vpack.c.bf16 %v6011_v63, %v6011_v63  ;;  %v6017_v2 = vpack.c.bf16 %v6013_v0, %v6013_v0 }
 0x3fd   :  { %6313 = vmatprep.mubr.bf16.mxu0 %v6015_v1  ;;  %6353 = vmatprep.mubr.bf16.mxu1 %v6017_v2 }
 0x3fe   :  { %6314 = vmatmul.mubr.bf16.vlgmr.msra.gmra.mrb[4].mxu0 %v6014_v3  ;;  %6354 = vmatmul.mubr.bf16.vlgmr.msra.gmra.mrb[4].mxu1 %v6016_v4 }
 0x4d1   :  { %v7240_v5 = vpop.f32.mrb[4].mxu0  ;;  %v7262_v6 = vpop.f32.mrb[4].mxu1 }
 0x4d2   :  { %v7241_v8 = vpop.f32.mrb[5].mxu0  ;;  %v7263_v9 = vpop.f32.mrb[5].mxu1 }
 0x4d3   :  { %v7242_v10 = vadd.f32 %v7241_v8, %v7240_v5  ;;  %v7264_v12 = vadd.f32 %v7263_v9, %v7262_v6  ;;  %v7243_v13 = vpop.f32.mrb[6].mxu0  ;;  %v7265_v15 = vpop.f32.mrb[6].mxu1 }
 0x4d4   :  { %v7244_v11 = vpop.f32.mrb[7].mxu0  ;;  %v7266_v17 = vpop.f32.mrb[7].mxu1 }
 0x4d5   :  { %v6316_v14 = vadd.f32 %v7242_v10, %v7191_v7 }
 0x4d7   :  { %v6356_v19 = vadd.f32 %v7264_v12, %v6316_v14 }
 0x4d9   :  { %6361 = vst [vmem:[%s11272_s5] sm:$0xff] %v6356_v19 }

</bundles_post_ra>
